<compile_context>
chip_gen: v7x
topology: tpu7x:2x2x1
jax: 0.10.0
libtpu: 0.0.40
codegen_flags: <defaults>
</compile_context>

<pallas_src>
import functools

import jax
import jax.numpy as jnp
from jax.experimental import pallas as pl
from jax.experimental.pallas import tpu as pltpu

EPS = 1e-5
NB_FILTER = 32          # nb_filter = [32] in the PyTorch reference
FINAL_PAD = 128         # lane width used for the final 1x1 conv MXU dot
_BORDER = -1e30         # halo sentinel: relu(_BORDER*scale + shift) == 0 exactly


def _round_up(n, m):
    return ((n + m - 1) // m) * m


def _chunk_rows(h, w, cin, budget_bytes=1 << 20):
    """Output rows processed per in-kernel im2col chunk (bounds VMEM slab size)."""
    per_row = max(1, w * 9 * cin * 2)        # bf16 slab bytes per output row
    return max(1, min(h, budget_bytes // per_row))


# ---------------------------------------------------------------------------
# Pallas kernels
# ---------------------------------------------------------------------------
def _conv_bn_stats_kernel(x_ref, scale_ref, shift_ref, w_ref, b_ref,
                          y_ref, stats_ref, *, apply_act, hc):
    """One batch element: [prev-layer BN+ReLU] -> 3x3 conv + bias -> BN partials.

    x_ref:     (1, H+2, W+2, Cin)  bf16  padded prev conv output (or raw input)
    scale_ref: (1, 1, Cin) f32     prev-layer BN scale  (unused if apply_act=False)
    shift_ref: (1, 1, Cin) f32     prev-layer BN shift
    w_ref:     (9*Cin, Cout) bf16  im2col weights, row order (dy, dx, ci)
    b_ref:     (1, Cout) f32       conv bias
    y_ref:     (1, H+2, W+2, Cout) bf16  padded conv output (halo = sentinel)
    stats_ref: (1, 2, Cout) f32    row 0 = sum, row 1 = sum of squares (this elem)
    """
    _, hp, wp, cin = x_ref.shape
    h, w = hp - 2, wp - 2
    cout = y_ref.shape[3]

    xp = x_ref[0]                                          # (hp, wp, cin) bf16
    if apply_act:
        a = jnp.maximum(xp.astype(jnp.float32) * scale_ref[...]
                        + shift_ref[...], 0.0).astype(jnp.bfloat16)
    else:
        a = xp                                             # raw zero-padded input

    wk = w_ref[...]                                        # (9*cin, cout) bf16
    b = b_ref[...]                                         # (1, cout) f32

    # Fill the whole padded output block with the halo sentinel, then overwrite
    # the interior with the conv result.
    y_ref[...] = jnp.full(y_ref.shape, _BORDER, dtype=y_ref.dtype)

    s_tot = jnp.zeros((1, cout), jnp.float32)
    q_tot = jnp.zeros((1, cout), jnp.float32)
    for h0 in range(0, h, hc):                             # static Python loop
        hh = min(hc, h - h0)
        # in-VMEM im2col: 9 shifted taps -> one long-K bf16 MXU matmul
        taps = [a[h0 + dy:h0 + dy + hh, dx:dx + w, :]
                for dy in range(3) for dx in range(3)]
        slab = jnp.concatenate(taps, axis=-1).reshape(hh * w, 9 * cin)
        acc = jnp.dot(slab, wk, preferred_element_type=jnp.float32) + b
        s_tot = s_tot + jnp.sum(acc, axis=0, keepdims=True)
        q_tot = q_tot + jnp.sum(acc * acc, axis=0, keepdims=True)
        y_ref[0, 1 + h0:1 + h0 + hh, 1:1 + w, :] = (
            acc.reshape(hh, w, cout).astype(y_ref.dtype))

    stats_ref[...] = jnp.concatenate([s_tot, q_tot], axis=0)[None]


def _final_kernel(y_ref, scale_ref, shift_ref, wf_ref, bf_ref, o_ref, *, num_classes):
    """Last BN+ReLU fused with the final 1x1 conv; store only num_classes lanes."""
    _, hp, wp, cin = y_ref.shape
    h, w = hp - 2, wp - 2
    cpad = wf_ref.shape[1]
    yi = y_ref[0, 1:1 + h, 1:1 + w, :].astype(jnp.float32)           # interior only
    a = jnp.maximum(yi * scale_ref[...] + shift_ref[...], 0.0).astype(jnp.bfloat16)
    full = jnp.dot(a.reshape(h * w, cin), wf_ref[...],
                   preferred_element_type=jnp.float32) + bf_ref[...]  # (h*w, cpad)
    o_ref[0] = full.reshape(h, w, cpad)[:, :, :num_classes]


# ---------------------------------------------------------------------------
# Wrappers
# ---------------------------------------------------------------------------
def _conv_layer(xp, scale, shift, w, b, *, apply_act):
    n, hp, wp, cin = xp.shape
    h, wd = hp - 2, wp - 2
    kdim, cout = w.shape
    hc = _chunk_rows(h, wd, cin)
    kern = functools.partial(_conv_bn_stats_kernel, apply_act=apply_act, hc=hc)
    cost = pl.CostEstimate(
        flops=2 * n * h * wd * kdim * cout, transcendentals=0,
        bytes_accessed=int(xp.size) * 2 + int(w.size) * 2 + int(b.size) * 4
        + n * hp * wp * cout * 2 + n * 2 * cout * 4)
    y, stats = pl.pallas_call(
        kern,
        grid=(n,),
        in_specs=[
            pl.BlockSpec((1, hp, wp, cin), lambda i: (i, 0, 0, 0)),
            pl.BlockSpec((1, 1, cin), lambda i: (0, 0, 0)),
            pl.BlockSpec((1, 1, cin), lambda i: (0, 0, 0)),
            pl.BlockSpec((kdim, cout), lambda i: (0, 0)),
            pl.BlockSpec((1, cout), lambda i: (0, 0)),
        ],
        out_specs=[
            pl.BlockSpec((1, hp, wp, cout), lambda i: (i, 0, 0, 0)),
            pl.BlockSpec((1, 2, cout), lambda i: (i, 0, 0)),
        ],
        out_shape=[
            jax.ShapeDtypeStruct((n, hp, wp, cout), jnp.bfloat16),
            jax.ShapeDtypeStruct((n, 2, cout), jnp.float32),
        ],
        compiler_params=pltpu.CompilerParams(dimension_semantics=("parallel",)),
        cost_estimate=cost,
    )(xp, scale, shift, w, b)
    return y, stats


def _bn_from_stats(stats, count):
    """Exact training-mode BatchNorm2d (gamma=1, beta=0) scale/shift from partials."""
    s = jnp.sum(stats[:, 0, :], axis=0)
    q = jnp.sum(stats[:, 1, :], axis=0)
    mean = s / count
    var = jnp.maximum(q / count - mean * mean, 0.0)
    scale = jax.lax.rsqrt(var + EPS)
    shift = -mean * scale
    c = scale.shape[0]
    return scale.reshape(1, 1, c), shift.reshape(1, 1, c)


def _final_layer(y4, scale, shift, wf, bf, num_classes):
    n, hp, wp, cin = y4.shape
    h, wd = hp - 2, wp - 2
    cpad = wf.shape[1]
    kern = functools.partial(_final_kernel, num_classes=num_classes)
    cost = pl.CostEstimate(
        flops=2 * n * h * wd * cin * cpad, transcendentals=0,
        bytes_accessed=int(y4.size) * 2 + int(wf.size) * 2
        + n * h * wd * num_classes * 4)
    return pl.pallas_call(
        kern,
        grid=(n,),
        in_specs=[
            pl.BlockSpec((1, hp, wp, cin), lambda i: (i, 0, 0, 0)),
            pl.BlockSpec((1, 1, cin), lambda i: (0, 0, 0)),
            pl.BlockSpec((1, 1, cin), lambda i: (0, 0, 0)),
            pl.BlockSpec((cin, cpad), lambda i: (0, 0)),
            pl.BlockSpec((1, cpad), lambda i: (0, 0)),
        ],
        out_specs=pl.BlockSpec((1, h, wd, num_classes), lambda i: (i, 0, 0, 0)),
        out_shape=jax.ShapeDtypeStruct((n, h, wd, num_classes), jnp.float32),
        compiler_params=pltpu.CompilerParams(dimension_semantics=("parallel",)),
        cost_estimate=cost,
    )(y4, scale, shift, wf, bf)


# ---------------------------------------------------------------------------
# Parameters (deterministic synthetic init, kernel-friendly layouts)
# ---------------------------------------------------------------------------
def init_params(key, in_channels, num_classes):
    cin = _round_up(in_channels, 8)          # channel padding (input zero-padded)
    f = NB_FILTER
    keys = jax.random.split(key, 10)

    def conv3_w(k, ci, co):
        # im2col layout: rows ordered (dy, dx, ci) to match the in-kernel tap order
        w = jax.random.normal(k, (9 * ci, co), jnp.float32) / jnp.sqrt(9.0 * ci)
        return w.astype(jnp.bfloat16)

    def bias(k, co):
        return jax.random.normal(k, (1, co), jnp.float32) * 0.05

    params = {
        "w1": conv3_w(keys[0], cin, f), "b1": bias(keys[1], f),
        "w2": conv3_w(keys[2], f, f),   "b2": bias(keys[3], f),
        "w3": conv3_w(keys[4], f, f),   "b3": bias(keys[5], f),
        "w4": conv3_w(keys[6], f, f),   "b4": bias(keys[7], f),
    }
    wf = jax.random.normal(keys[8], (f, num_classes), jnp.float32) / jnp.sqrt(float(f))
    bf = jax.random.normal(keys[9], (1, num_classes), jnp.float32) * 0.05
    params["wf"] = jnp.pad(
        wf, ((0, 0), (0, FINAL_PAD - num_classes))).astype(jnp.bfloat16)
    params["bf"] = jnp.pad(bf, ((0, 0), (0, FINAL_PAD - num_classes)))
    return params


# ---------------------------------------------------------------------------
# Forward pass (matches FCNN.forward: conv0_0 -> conv0_1 -> final)
# ---------------------------------------------------------------------------
def fcnn_forward(x_nchw, params, *, num_classes):
    x = jnp.transpose(x_nchw, (0, 2, 3, 1)).astype(jnp.bfloat16)   # NCHW -> NHWC
    cin_pad = params["w1"].shape[0] // 9
    c_extra = cin_pad - x.shape[-1]
    # zero spatial halo + channel padding in one tiny fused XLA pad
    xp = jnp.pad(x, ((0, 0), (1, 1), (1, 1), (0, c_extra)))
    n, hp, wp, _ = xp.shape
    count = n * (hp - 2) * (wp - 2)
    one = jnp.ones((1, 1, cin_pad), jnp.float32)
    zero = jnp.zeros((1, 1, cin_pad), jnp.float32)

    # conv0_0 (VGGBlock): conv3x3 -> BN -> ReLU -> conv3x3 -> BN -> ReLU
    y, st = _conv_layer(xp, one, zero, params["w1"], params["b1"], apply_act=False)
    sc, sh = _bn_from_stats(st, count)
    y, st = _conv_layer(y, sc, sh, params["w2"], params["b2"], apply_act=True)
    sc, sh = _bn_from_stats(st, count)

    # conv0_1 (VGGBlock)
    y, st = _conv_layer(y, sc, sh, params["w3"], params["b3"], apply_act=True)
    sc, sh = _bn_from_stats(st, count)
    y, st = _conv_layer(y, sc, sh, params["w4"], params["b4"], apply_act=True)
    sc, sh = _bn_from_stats(st, count)

    # last BN+ReLU fused with the final 1x1 conv
    out = _final_layer(y, sc, sh, params["wf"], params["bf"], num_classes)
    return jnp.transpose(out, (0, 3, 1, 2))                         # NHWC -> NCHW


if __name__ == "__main__":
    # args.input_channels = 3, args.num_classes = 2, batch = 2, spatial = 16
    key = jax.random.PRNGKey(0)
    pkey, xkey = jax.random.split(key)
    in_channels, num_classes = 3, 2
    params = init_params(pkey, in_channels, num_classes)
    x = jax.random.normal(xkey, (2, in_channels, 16, 16), jnp.float32)

    fwd = jax.jit(functools.partial(fcnn_forward, num_classes=num_classes))
    out = jax.block_until_ready(fwd(x, params))
    assert out.shape == (2, num_classes, 16, 16), out.shape
    assert bool(jnp.all(jnp.isfinite(out)))
    print("KERNEL_OK")
</pallas_src>

<mosaic_0001>
module attributes {stable_mosaic.version = 11 : i64} {
  func.func @_conv_bn_stats_kernel(%arg0: i32, %arg1: memref<1x18x18x8xbf16, #tpu.memory_space<vmem>>, %arg2: memref<1x1x8xf32, #tpu.memory_space<vmem>>, %arg3: memref<1x1x8xf32, #tpu.memory_space<vmem>>, %arg4: memref<72x32xbf16, #tpu.memory_space<vmem>>, %arg5: memref<1x32xf32, #tpu.memory_space<vmem>>, %arg6: memref<1x18x18x32xbf16, #tpu.memory_space<vmem>>, %arg7: memref<1x2x32xf32, #tpu.memory_space<vmem>>) attributes {dimension_semantics = [#tpu.dimension_semantics<parallel>], iteration_bounds = array<i64: 2>, scalar_prefetch = 0 : i64, scratch_operands = 0 : i64, tpu.core_type = #tpu.core_type<tc>, window_params = [{transform_indices = @transform_0, window_bounds = array<i64: 1, 18, 18, 8>}, {pipeline_mode = #tpu.pipeline_mode<synchronous>, transform_indices = @transform_1, window_bounds = array<i64: 1, 1, 8>}, {pipeline_mode = #tpu.pipeline_mode<synchronous>, transform_indices = @transform_2, window_bounds = array<i64: 1, 1, 8>}, {pipeline_mode = #tpu.pipeline_mode<synchronous>, transform_indices = @transform_3, window_bounds = array<i64: 72, 32>}, {pipeline_mode = #tpu.pipeline_mode<synchronous>, transform_indices = @transform_4, window_bounds = array<i64: 1, 32>}, {transform_indices = @transform_5, window_bounds = array<i64: 1, 18, 18, 32>}, {transform_indices = @transform_6, window_bounds = array<i64: 1, 2, 32>}]} {
    %c0 = arith.constant 0 : index
    %c0_0 = arith.constant 0 : index
    %c0_1 = arith.constant 0 : index
    %c0_2 = arith.constant 0 : index
    %0 = vector.load %arg1[%c0, %c0_0, %c0_1, %c0_2] : memref<1x18x18x8xbf16, #tpu.memory_space<vmem>>, vector<1x18x18x8xbf16>
    %1 = vector.shape_cast %0 : vector<1x18x18x8xbf16> to vector<18x18x8xbf16>
    %c0_3 = arith.constant 0 : index
    %c0_4 = arith.constant 0 : index
    %2 = vector.load %arg4[%c0_3, %c0_4] : memref<72x32xbf16, #tpu.memory_space<vmem>>, vector<72x32xbf16>
    %c0_5 = arith.constant 0 : index
    %c0_6 = arith.constant 0 : index
    %3 = vector.load %arg5[%c0_5, %c0_6] : memref<1x32xf32, #tpu.memory_space<vmem>>, vector<1x32xf32>
    %cst = arith.constant -1.000260e+30 : bf16
    %4 = vector.broadcast %cst : bf16 to vector<1x18x18x32xbf16>
    %c0_7 = arith.constant 0 : index
    %c0_8 = arith.constant 0 : index
    %c0_9 = arith.constant 0 : index
    %c0_10 = arith.constant 0 : index
    %5 = vector.load %arg6[%c0_7, %c0_8, %c0_9, %c0_10] : memref<1x18x18x32xbf16, #tpu.memory_space<vmem>>, vector<1x18x18x32xbf16>
    tpu.vector_store %arg6[%c0_7, %c0_8, %c0_9, %c0_10], %4 {strides = array<i32>} : memref<1x18x18x32xbf16, #tpu.memory_space<vmem>>, vector<1x18x18x32xbf16>,
    %cst_11 = arith.constant 0.000000e+00 : f32
    %6 = vector.broadcast %cst_11 : f32 to vector<1x32xf32>
    %cst_12 = arith.constant 0.000000e+00 : f32
    %7 = vector.broadcast %cst_12 : f32 to vector<1x32xf32>
    %8 = vector.extract_strided_slice %1 {offsets = [0, 0, 0], sizes = [16, 16, 8], strides = [1, 1, 1]} : vector<18x18x8xbf16> to vector<16x16x8xbf16>
    %9 = vector.extract_strided_slice %1 {offsets = [0, 1, 0], sizes = [16, 16, 8], strides = [1, 1, 1]} : vector<18x18x8xbf16> to vector<16x16x8xbf16>
    %10 = vector.extract_strided_slice %1 {offsets = [0, 2, 0], sizes = [16, 16, 8], strides = [1, 1, 1]} : vector<18x18x8xbf16> to vector<16x16x8xbf16>
    %11 = vector.extract_strided_slice %1 {offsets = [1, 0, 0], sizes = [16, 16, 8], strides = [1, 1, 1]} : vector<18x18x8xbf16> to vector<16x16x8xbf16>
    %12 = vector.extract_strided_slice %1 {offsets = [1, 1, 0], sizes = [16, 16, 8], strides = [1, 1, 1]} : vector<18x18x8xbf16> to vector<16x16x8xbf16>
    %13 = vector.extract_strided_slice %1 {offsets = [1, 2, 0], sizes = [16, 16, 8], strides = [1, 1, 1]} : vector<18x18x8xbf16> to vector<16x16x8xbf16>
    %14 = vector.extract_strided_slice %1 {offsets = [2, 0, 0], sizes = [16, 16, 8], strides = [1, 1, 1]} : vector<18x18x8xbf16> to vector<16x16x8xbf16>
    %15 = vector.extract_strided_slice %1 {offsets = [2, 1, 0], sizes = [16, 16, 8], strides = [1, 1, 1]} : vector<18x18x8xbf16> to vector<16x16x8xbf16>
    %16 = vector.extract_strided_slice %1 {offsets = [2, 2, 0], sizes = [16, 16, 8], strides = [1, 1, 1]} : vector<18x18x8xbf16> to vector<16x16x8xbf16>
    %17 = tpu.concatenate %8, %9, %10, %11, %12, %13, %14, %15, %16 in 2 : vector<16x16x8xbf16>, vector<16x16x8xbf16>, vector<16x16x8xbf16>, vector<16x16x8xbf16>, vector<16x16x8xbf16>, vector<16x16x8xbf16>, vector<16x16x8xbf16>, vector<16x16x8xbf16>, vector<16x16x8xbf16> -> vector<16x16x72xbf16>
    %18 = vector.shape_cast %17 : vector<16x16x72xbf16> to vector<256x72xbf16>
    %cst_13 = arith.constant dense<0.000000e+00> : vector<256x32xf32>
    %19 = tpu.matmul %18, %2, %cst_13 {dimension_numbers = #tpu.dot_dimension_numbers<[1], [0], [0], [1], [0, 0, 1, 1], [], []>} : vector<256x72xbf16>, vector<72x32xbf16>, vector<256x32xf32> -> vector<256x32xf32>
    %20 = vector.broadcast %3 : vector<1x32xf32> to vector<256x32xf32>
    %21 = arith.addf %19, %20 : vector<256x32xf32>
    %cst_14 = arith.constant dense<0.000000e+00> : vector<32xf32>
    %22 = vector.multi_reduction <add>, %21, %cst_14 [0] : vector<256x32xf32> to vector<32xf32>
    %23 = vector.shape_cast %22 : vector<32xf32> to vector<1x32xf32>
    %24 = arith.addf %6, %23 : vector<1x32xf32>
    %25 = arith.mulf %21, %21 : vector<256x32xf32>
    %cst_15 = arith.constant dense<0.000000e+00> : vector<32xf32>
    %26 = vector.multi_reduction <add>, %25, %cst_15 [0] : vector<256x32xf32> to vector<32xf32>
    %27 = vector.shape_cast %26 : vector<32xf32> to vector<1x32xf32>
    %28 = arith.addf %7, %27 : vector<1x32xf32>
    %29 = vector.shape_cast %21 : vector<256x32xf32> to vector<16x16x32xf32>
    %30 = arith.truncf %29 : vector<16x16x32xf32> to vector<16x16x32xbf16>
    %c0_16 = arith.constant 0 : index
    %c1 = arith.constant 1 : index
    %c1_17 = arith.constant 1 : index
    %c0_18 = arith.constant 0 : index
    %31 = vector.load %arg6[%c0_16, %c1, %c1_17, %c0_18] : memref<1x18x18x32xbf16, #tpu.memory_space<vmem>>, vector<1x16x16x32xbf16>
    %32 = vector.shape_cast %31 : vector<1x16x16x32xbf16> to vector<16x16x32xbf16>
    %33 = vector.shape_cast %30 : vector<16x16x32xbf16> to vector<1x16x16x32xbf16>
    tpu.vector_store %arg6[%c0_16, %c1, %c1_17, %c0_18], %33 {strides = array<i32>} : memref<1x18x18x32xbf16, #tpu.memory_space<vmem>>, vector<1x16x16x32xbf16>,
    %34 = tpu.concatenate %24, %28 in 0 : vector<1x32xf32>, vector<1x32xf32> -> vector<2x32xf32>
    %35 = vector.shape_cast %34 : vector<2x32xf32> to vector<1x2x32xf32>
    %c0_19 = arith.constant 0 : index
    %c0_20 = arith.constant 0 : index
    %c0_21 = arith.constant 0 : index
    %36 = vector.load %arg7[%c0_19, %c0_20, %c0_21] : memref<1x2x32xf32, #tpu.memory_space<vmem>>, vector<1x2x32xf32>
    tpu.vector_store %arg7[%c0_19, %c0_20, %c0_21], %35 {strides = array<i32>} : memref<1x2x32xf32, #tpu.memory_space<vmem>>, vector<1x2x32xf32>,
    return
  }
  func.func @transform_0(%arg0: i32) -> (i32, i32, i32, i32) {
    %c0_i32 = arith.constant 0 : i32
    %c0_i32_0 = arith.constant 0 : i32
    %c0_i32_1 = arith.constant 0 : i32
    %c0_i32_2 = arith.constant 0 : i32
    return %arg0, %c0_i32, %c0_i32_0, %c0_i32_1 : i32, i32, i32, i32
  }
  func.func @transform_1(%arg0: i32) -> (i32, i32, i32) {
    %c0_i32 = arith.constant 0 : i32
    %c0_i32_0 = arith.constant 0 : i32
    %c0_i32_1 = arith.constant 0 : i32
    %c0_i32_2 = arith.constant 0 : i32
    return %c0_i32, %c0_i32_0, %c0_i32_1 : i32, i32, i32
  }
  func.func @transform_2(%arg0: i32) -> (i32, i32, i32) {
    %c0_i32 = arith.constant 0 : i32
    %c0_i32_0 = arith.constant 0 : i32
    %c0_i32_1 = arith.constant 0 : i32
    %c0_i32_2 = arith.constant 0 : i32
    return %c0_i32, %c0_i32_0, %c0_i32_1 : i32, i32, i32
  }
  func.func @transform_3(%arg0: i32) -> (i32, i32) {
    %c0_i32 = arith.constant 0 : i32
    %c0_i32_0 = arith.constant 0 : i32
    %c0_i32_1 = arith.constant 0 : i32
    return %c0_i32, %c0_i32_0 : i32, i32
  }
  func.func @transform_4(%arg0: i32) -> (i32, i32) {
    %c0_i32 = arith.constant 0 : i32
    %c0_i32_0 = arith.constant 0 : i32
    %c0_i32_1 = arith.constant 0 : i32
    return %c0_i32, %c0_i32_0 : i32, i32
  }
  func.func @transform_5(%arg0: i32) -> (i32, i32, i32, i32) {
    %c0_i32 = arith.constant 0 : i32
    %c0_i32_0 = arith.constant 0 : i32
    %c0_i32_1 = arith.constant 0 : i32
    %c0_i32_2 = arith.constant 0 : i32
    return %arg0, %c0_i32, %c0_i32_0, %c0_i32_1 : i32, i32, i32, i32
  }
  func.func @transform_6(%arg0: i32) -> (i32, i32, i32) {
    %c0_i32 = arith.constant 0 : i32
    %c0_i32_0 = arith.constant 0 : i32
    %c0_i32_1 = arith.constant 0 : i32
    return %arg0, %c0_i32, %c0_i32_0 : i32, i32, i32
  }
}

module attributes {stable_mosaic.version = 11 : i64} {
  func.func @_conv_bn_stats_kernel(%arg0: i32, %arg1: memref<1x18x18x32xbf16, #tpu.memory_space<vmem>>, %arg2: memref<1x1x32xf32, #tpu.memory_space<vmem>>, %arg3: memref<1x1x32xf32, #tpu.memory_space<vmem>>, %arg4: memref<288x32xbf16, #tpu.memory_space<vmem>>, %arg5: memref<1x32xf32, #tpu.memory_space<vmem>>, %arg6: memref<1x18x18x32xbf16, #tpu.memory_space<vmem>>, %arg7: memref<1x2x32xf32, #tpu.memory_space<vmem>>) attributes {dimension_semantics = [#tpu.dimension_semantics<parallel>], iteration_bounds = array<i64: 2>, scalar_prefetch = 0 : i64, scratch_operands = 0 : i64, tpu.core_type = #tpu.core_type<tc>, window_params = [{transform_indices = @transform_0, window_bounds = array<i64: 1, 18, 18, 32>}, {pipeline_mode = #tpu.pipeline_mode<synchronous>, transform_indices = @transform_1, window_bounds = array<i64: 1, 1, 32>}, {pipeline_mode = #tpu.pipeline_mode<synchronous>, transform_indices = @transform_2, window_bounds = array<i64: 1, 1, 32>}, {pipeline_mode = #tpu.pipeline_mode<synchronous>, transform_indices = @transform_3, window_bounds = array<i64: 288, 32>}, {pipeline_mode = #tpu.pipeline_mode<synchronous>, transform_indices = @transform_4, window_bounds = array<i64: 1, 32>}, {transform_indices = @transform_5, window_bounds = array<i64: 1, 18, 18, 32>}, {transform_indices = @transform_6, window_bounds = array<i64: 1, 2, 32>}]} {
    %c0 = arith.constant 0 : index
    %c0_0 = arith.constant 0 : index
    %c0_1 = arith.constant 0 : index
    %c0_2 = arith.constant 0 : index
    %0 = vector.load %arg1[%c0, %c0_0, %c0_1, %c0_2] : memref<1x18x18x32xbf16, #tpu.memory_space<vmem>>, vector<1x18x18x32xbf16>
    %1 = vector.shape_cast %0 : vector<1x18x18x32xbf16> to vector<18x18x32xbf16>
    %2 = arith.extf %1 : vector<18x18x32xbf16> to vector<18x18x32xf32>
    %c0_3 = arith.constant 0 : index
    %c0_4 = arith.constant 0 : index
    %c0_5 = arith.constant 0 : index
    %3 = vector.load %arg2[%c0_3, %c0_4, %c0_5] : memref<1x1x32xf32, #tpu.memory_space<vmem>>, vector<1x1x32xf32>
    %4 = vector.broadcast %3 : vector<1x1x32xf32> to vector<18x18x32xf32>
    %5 = arith.mulf %2, %4 : vector<18x18x32xf32>
    %c0_6 = arith.constant 0 : index
    %c0_7 = arith.constant 0 : index
    %c0_8 = arith.constant 0 : index
    %6 = vector.load %arg3[%c0_6, %c0_7, %c0_8] : memref<1x1x32xf32, #tpu.memory_space<vmem>>, vector<1x1x32xf32>
    %7 = vector.broadcast %6 : vector<1x1x32xf32> to vector<18x18x32xf32>
    %8 = arith.addf %5, %7 : vector<18x18x32xf32>
    %cst = arith.constant 0.000000e+00 : f32
    %9 = vector.broadcast %cst : f32 to vector<18x18x32xf32>
    %10 = arith.maximumf %8, %9 : vector<18x18x32xf32>
    %11 = arith.truncf %10 : vector<18x18x32xf32> to vector<18x18x32xbf16>
    %c0_9 = arith.constant 0 : index
    %c0_10 = arith.constant 0 : index
    %12 = vector.load %arg4[%c0_9, %c0_10] : memref<288x32xbf16, #tpu.memory_space<vmem>>, vector<288x32xbf16>
    %c0_11 = arith.constant 0 : index
    %c0_12 = arith.constant 0 : index
    %13 = vector.load %arg5[%c0_11, %c0_12] : memref<1x32xf32, #tpu.memory_space<vmem>>, vector<1x32xf32>
    %cst_13 = arith.constant -1.000260e+30 : bf16
    %14 = vector.broadcast %cst_13 : bf16 to vector<1x18x18x32xbf16>
    %c0_14 = arith.constant 0 : index
    %c0_15 = arith.constant 0 : index
    %c0_16 = arith.constant 0 : index
    %c0_17 = arith.constant 0 : index
    %15 = vector.load %arg6[%c0_14, %c0_15, %c0_16, %c0_17] : memref<1x18x18x32xbf16, #tpu.memory_space<vmem>>, vector<1x18x18x32xbf16>
    tpu.vector_store %arg6[%c0_14, %c0_15, %c0_16, %c0_17], %14 {strides = array<i32>} : memref<1x18x18x32xbf16, #tpu.memory_space<vmem>>, vector<1x18x18x32xbf16>,
    %cst_18 = arith.constant 0.000000e+00 : f32
    %16 = vector.broadcast %cst_18 : f32 to vector<1x32xf32>
    %cst_19 = arith.constant 0.000000e+00 : f32
    %17 = vector.broadcast %cst_19 : f32 to vector<1x32xf32>
    %18 = vector.extract_strided_slice %11 {offsets = [0, 0, 0], sizes = [16, 16, 32], strides = [1, 1, 1]} : vector<18x18x32xbf16> to vector<16x16x32xbf16>
    %19 = vector.extract_strided_slice %11 {offsets = [0, 1, 0], sizes = [16, 16, 32], strides = [1, 1, 1]} : vector<18x18x32xbf16> to vector<16x16x32xbf16>
    %20 = vector.extract_strided_slice %11 {offsets = [0, 2, 0], sizes = [16, 16, 32], strides = [1, 1, 1]} : vector<18x18x32xbf16> to vector<16x16x32xbf16>
    %21 = vector.extract_strided_slice %11 {offsets = [1, 0, 0], sizes = [16, 16, 32], strides = [1, 1, 1]} : vector<18x18x32xbf16> to vector<16x16x32xbf16>
    %22 = vector.extract_strided_slice %11 {offsets = [1, 1, 0], sizes = [16, 16, 32], strides = [1, 1, 1]} : vector<18x18x32xbf16> to vector<16x16x32xbf16>
    %23 = vector.extract_strided_slice %11 {offsets = [1, 2, 0], sizes = [16, 16, 32], strides = [1, 1, 1]} : vector<18x18x32xbf16> to vector<16x16x32xbf16>
    %24 = vector.extract_strided_slice %11 {offsets = [2, 0, 0], sizes = [16, 16, 32], strides = [1, 1, 1]} : vector<18x18x32xbf16> to vector<16x16x32xbf16>
    %25 = vector.extract_strided_slice %11 {offsets = [2, 1, 0], sizes = [16, 16, 32], strides = [1, 1, 1]} : vector<18x18x32xbf16> to vector<16x16x32xbf16>
    %26 = vector.extract_strided_slice %11 {offsets = [2, 2, 0], sizes = [16, 16, 32], strides = [1, 1, 1]} : vector<18x18x32xbf16> to vector<16x16x32xbf16>
    %27 = tpu.concatenate %18, %19, %20, %21, %22, %23, %24, %25, %26 in 2 : vector<16x16x32xbf16>, vector<16x16x32xbf16>, vector<16x16x32xbf16>, vector<16x16x32xbf16>, vector<16x16x32xbf16>, vector<16x16x32xbf16>, vector<16x16x32xbf16>, vector<16x16x32xbf16>, vector<16x16x32xbf16> -> vector<16x16x288xbf16>
    %28 = vector.shape_cast %27 : vector<16x16x288xbf16> to vector<256x288xbf16>
    %cst_20 = arith.constant dense<0.000000e+00> : vector<256x32xf32>
    %29 = tpu.matmul %28, %12, %cst_20 {dimension_numbers = #tpu.dot_dimension_numbers<[1], [0], [0], [1], [0, 0, 1, 1], [], []>} : vector<256x288xbf16>, vector<288x32xbf16>, vector<256x32xf32> -> vector<256x32xf32>
    %30 = vector.broadcast %13 : vector<1x32xf32> to vector<256x32xf32>
    %31 = arith.addf %29, %30 : vector<256x32xf32>
    %cst_21 = arith.constant dense<0.000000e+00> : vector<32xf32>
    %32 = vector.multi_reduction <add>, %31, %cst_21 [0] : vector<256x32xf32> to vector<32xf32>
    %33 = vector.shape_cast %32 : vector<32xf32> to vector<1x32xf32>
    %34 = arith.addf %16, %33 : vector<1x32xf32>
    %35 = arith.mulf %31, %31 : vector<256x32xf32>
    %cst_22 = arith.constant dense<0.000000e+00> : vector<32xf32>
    %36 = vector.multi_reduction <add>, %35, %cst_22 [0] : vector<256x32xf32> to vector<32xf32>
    %37 = vector.shape_cast %36 : vector<32xf32> to vector<1x32xf32>
    %38 = arith.addf %17, %37 : vector<1x32xf32>
    %39 = vector.shape_cast %31 : vector<256x32xf32> to vector<16x16x32xf32>
    %40 = arith.truncf %39 : vector<16x16x32xf32> to vector<16x16x32xbf16>
    %c0_23 = arith.constant 0 : index
    %c1 = arith.constant 1 : index
    %c1_24 = arith.constant 1 : index
    %c0_25 = arith.constant 0 : index
    %41 = vector.load %arg6[%c0_23, %c1, %c1_24, %c0_25] : memref<1x18x18x32xbf16, #tpu.memory_space<vmem>>, vector<1x16x16x32xbf16>
    %42 = vector.shape_cast %41 : vector<1x16x16x32xbf16> to vector<16x16x32xbf16>
    %43 = vector.shape_cast %40 : vector<16x16x32xbf16> to vector<1x16x16x32xbf16>
    tpu.vector_store %arg6[%c0_23, %c1, %c1_24, %c0_25], %43 {strides = array<i32>} : memref<1x18x18x32xbf16, #tpu.memory_space<vmem>>, vector<1x16x16x32xbf16>,
    %44 = tpu.concatenate %34, %38 in 0 : vector<1x32xf32>, vector<1x32xf32> -> vector<2x32xf32>
    %45 = vector.shape_cast %44 : vector<2x32xf32> to vector<1x2x32xf32>
    %c0_26 = arith.constant 0 : index
    %c0_27 = arith.constant 0 : index
    %c0_28 = arith.constant 0 : index
    %46 = vector.load %arg7[%c0_26, %c0_27, %c0_28] : memref<1x2x32xf32, #tpu.memory_space<vmem>>, vector<1x2x32xf32>
    tpu.vector_store %arg7[%c0_26, %c0_27, %c0_28], %45 {strides = array<i32>} : memref<1x2x32xf32, #tpu.memory_space<vmem>>, vector<1x2x32xf32>,
    return
  }
  func.func @transform_0(%arg0: i32) -> (i32, i32, i32, i32) {
    %c0_i32 = arith.constant 0 : i32
    %c0_i32_0 = arith.constant 0 : i32
    %c0_i32_1 = arith.constant 0 : i32
    %c0_i32_2 = arith.constant 0 : i32
    return %arg0, %c0_i32, %c0_i32_0, %c0_i32_1 : i32, i32, i32, i32
  }
  func.func @transform_1(%arg0: i32) -> (i32, i32, i32) {
    %c0_i32 = arith.constant 0 : i32
    %c0_i32_0 = arith.constant 0 : i32
    %c0_i32_1 = arith.constant 0 : i32
    %c0_i32_2 = arith.constant 0 : i32
    return %c0_i32, %c0_i32_0, %c0_i32_1 : i32, i32, i32
  }
  func.func @transform_2(%arg0: i32) -> (i32, i32, i32) {
    %c0_i32 = arith.constant 0 : i32
    %c0_i32_0 = arith.constant 0 : i32
    %c0_i32_1 = arith.constant 0 : i32
    %c0_i32_2 = arith.constant 0 : i32
    return %c0_i32, %c0_i32_0, %c0_i32_1 : i32, i32, i32
  }
  func.func @transform_3(%arg0: i32) -> (i32, i32) {
    %c0_i32 = arith.constant 0 : i32
    %c0_i32_0 = arith.constant 0 : i32
    %c0_i32_1 = arith.constant 0 : i32
    return %c0_i32, %c0_i32_0 : i32, i32
  }
  func.func @transform_4(%arg0: i32) -> (i32, i32) {
    %c0_i32 = arith.constant 0 : i32
    %c0_i32_0 = arith.constant 0 : i32
    %c0_i32_1 = arith.constant 0 : i32
    return %c0_i32, %c0_i32_0 : i32, i32
  }
  func.func @transform_5(%arg0: i32) -> (i32, i32, i32, i32) {
    %c0_i32 = arith.constant 0 : i32
    %c0_i32_0 = arith.constant 0 : i32
    %c0_i32_1 = arith.constant 0 : i32
    %c0_i32_2 = arith.constant 0 : i32
    return %arg0, %c0_i32, %c0_i32_0, %c0_i32_1 : i32, i32, i32, i32
  }
  func.func @transform_6(%arg0: i32) -> (i32, i32, i32) {
    %c0_i32 = arith.constant 0 : i32
    %c0_i32_0 = arith.constant 0 : i32
    %c0_i32_1 = arith.constant 0 : i32
    return %arg0, %c0_i32, %c0_i32_0 : i32, i32, i32
  }
}

module attributes {stable_mosaic.version = 11 : i64} {
  func.func @_final_kernel(%arg0: i32, %arg1: memref<1x18x18x32xbf16, #tpu.memory_space<vmem>>, %arg2: memref<1x1x32xf32, #tpu.memory_space<vmem>>, %arg3: memref<1x1x32xf32, #tpu.memory_space<vmem>>, %arg4: memref<32x128xbf16, #tpu.memory_space<vmem>>, %arg5: memref<1x128xf32, #tpu.memory_space<vmem>>, %arg6: memref<1x16x16x2xf32, #tpu.memory_space<vmem>>) attributes {dimension_semantics = [#tpu.dimension_semantics<parallel>], iteration_bounds = array<i64: 2>, scalar_prefetch = 0 : i64, scratch_operands = 0 : i64, tpu.core_type = #tpu.core_type<tc>, window_params = [{transform_indices = @transform_0, window_bounds = array<i64: 1, 18, 18, 32>}, {pipeline_mode = #tpu.pipeline_mode<synchronous>, transform_indices = @transform_1, window_bounds = array<i64: 1, 1, 32>}, {pipeline_mode = #tpu.pipeline_mode<synchronous>, transform_indices = @transform_2, window_bounds = array<i64: 1, 1, 32>}, {pipeline_mode = #tpu.pipeline_mode<synchronous>, transform_indices = @transform_3, window_bounds = array<i64: 32, 128>}, {pipeline_mode = #tpu.pipeline_mode<synchronous>, transform_indices = @transform_4, window_bounds = array<i64: 1, 128>}, {transform_indices = @transform_5, window_bounds = array<i64: 1, 16, 16, 2>}]} {
    %c0 = arith.constant 0 : index
    %c1 = arith.constant 1 : index
    %c1_0 = arith.constant 1 : index
    %c0_1 = arith.constant 0 : index
    %0 = vector.load %arg1[%c0, %c1, %c1_0, %c0_1] : memref<1x18x18x32xbf16, #tpu.memory_space<vmem>>, vector<1x16x16x32xbf16>
    %1 = vector.shape_cast %0 : vector<1x16x16x32xbf16> to vector<16x16x32xbf16>
    %2 = arith.extf %1 : vector<16x16x32xbf16> to vector<16x16x32xf32>
    %c0_2 = arith.constant 0 : index
    %c0_3 = arith.constant 0 : index
    %c0_4 = arith.constant 0 : index
    %3 = vector.load %arg2[%c0_2, %c0_3, %c0_4] : memref<1x1x32xf32, #tpu.memory_space<vmem>>, vector<1x1x32xf32>
    %4 = vector.broadcast %3 : vector<1x1x32xf32> to vector<16x16x32xf32>
    %5 = arith.mulf %2, %4 : vector<16x16x32xf32>
    %c0_5 = arith.constant 0 : index
    %c0_6 = arith.constant 0 : index
    %c0_7 = arith.constant 0 : index
    %6 = vector.load %arg3[%c0_5, %c0_6, %c0_7] : memref<1x1x32xf32, #tpu.memory_space<vmem>>, vector<1x1x32xf32>
    %7 = vector.broadcast %6 : vector<1x1x32xf32> to vector<16x16x32xf32>
    %8 = arith.addf %5, %7 : vector<16x16x32xf32>
    %cst = arith.constant 0.000000e+00 : f32
    %9 = vector.broadcast %cst : f32 to vector<16x16x32xf32>
    %10 = arith.maximumf %8, %9 : vector<16x16x32xf32>
    %11 = arith.truncf %10 : vector<16x16x32xf32> to vector<16x16x32xbf16>
    %12 = vector.shape_cast %11 : vector<16x16x32xbf16> to vector<256x32xbf16>
    %c0_8 = arith.constant 0 : index
    %c0_9 = arith.constant 0 : index
    %13 = vector.load %arg4[%c0_8, %c0_9] : memref<32x128xbf16, #tpu.memory_space<vmem>>, vector<32x128xbf16>
    %cst_10 = arith.constant dense<0.000000e+00> : vector<256x128xf32>
    %14 = tpu.matmul %12, %13, %cst_10 {dimension_numbers = #tpu.dot_dimension_numbers<[1], [0], [0], [1], [0, 0, 1, 1], [], []>} : vector<256x32xbf16>, vector<32x128xbf16>, vector<256x128xf32> -> vector<256x128xf32>
    %c0_11 = arith.constant 0 : index
    %c0_12 = arith.constant 0 : index
    %15 = vector.load %arg5[%c0_11, %c0_12] : memref<1x128xf32, #tpu.memory_space<vmem>>, vector<1x128xf32>
    %16 = vector.broadcast %15 : vector<1x128xf32> to vector<256x128xf32>
    %17 = arith.addf %14, %16 : vector<256x128xf32>
    %18 = vector.shape_cast %17 : vector<256x128xf32> to vector<16x16x128xf32>
    %19 = vector.extract_strided_slice %18 {offsets = [0, 0, 0], sizes = [16, 16, 2], strides = [1, 1, 1]} : vector<16x16x128xf32> to vector<16x16x2xf32>
    %c0_13 = arith.constant 0 : index
    %c0_14 = arith.constant 0 : index
    %c0_15 = arith.constant 0 : index
    %c0_16 = arith.constant 0 : index
    %20 = vector.load %arg6[%c0_13, %c0_14, %c0_15, %c0_16] : memref<1x16x16x2xf32, #tpu.memory_space<vmem>>, vector<1x16x16x2xf32>
    %21 = vector.shape_cast %20 : vector<1x16x16x2xf32> to vector<16x16x2xf32>
    %22 = vector.shape_cast %19 : vector<16x16x2xf32> to vector<1x16x16x2xf32>
    tpu.vector_store %arg6[%c0_13, %c0_14, %c0_15, %c0_16], %22 {strides = array<i32>} : memref<1x16x16x2xf32, #tpu.memory_space<vmem>>, vector<1x16x16x2xf32>,
    return
  }
  func.func @transform_0(%arg0: i32) -> (i32, i32, i32, i32) {
    %c0_i32 = arith.constant 0 : i32
    %c0_i32_0 = arith.constant 0 : i32
    %c0_i32_1 = arith.constant 0 : i32
    %c0_i32_2 = arith.constant 0 : i32
    return %arg0, %c0_i32, %c0_i32_0, %c0_i32_1 : i32, i32, i32, i32
  }
  func.func @transform_1(%arg0: i32) -> (i32, i32, i32) {
    %c0_i32 = arith.constant 0 : i32
    %c0_i32_0 = arith.constant 0 : i32
    %c0_i32_1 = arith.constant 0 : i32
    %c0_i32_2 = arith.constant 0 : i32
    return %c0_i32, %c0_i32_0, %c0_i32_1 : i32, i32, i32
  }
  func.func @transform_2(%arg0: i32) -> (i32, i32, i32) {
    %c0_i32 = arith.constant 0 : i32
    %c0_i32_0 = arith.constant 0 : i32
    %c0_i32_1 = arith.constant 0 : i32
    %c0_i32_2 = arith.constant 0 : i32
    return %c0_i32, %c0_i32_0, %c0_i32_1 : i32, i32, i32
  }
  func.func @transform_3(%arg0: i32) -> (i32, i32) {
    %c0_i32 = arith.constant 0 : i32
    %c0_i32_0 = arith.constant 0 : i32
    %c0_i32_1 = arith.constant 0 : i32
    return %c0_i32, %c0_i32_0 : i32, i32
  }
  func.func @transform_4(%arg0: i32) -> (i32, i32) {
    %c0_i32 = arith.constant 0 : i32
    %c0_i32_0 = arith.constant 0 : i32
    %c0_i32_1 = arith.constant 0 : i32
    return %c0_i32, %c0_i32_0 : i32, i32
  }
  func.func @transform_5(%arg0: i32) -> (i32, i32, i32, i32) {
    %c0_i32 = arith.constant 0 : i32
    %c0_i32_0 = arith.constant 0 : i32
    %c0_i32_1 = arith.constant 0 : i32
    %c0_i32_2 = arith.constant 0 : i32
    return %arg0, %c0_i32, %c0_i32_0, %c0_i32_1 : i32, i32, i32, i32
  }
}

</mosaic_0001>

<bundles_post_ra>
// kernel: fcnn_forward.9
= control target key start
LH: loop header
LB: loop body
LE: loop exit
PB: predicated region body
PF: predicated region fallthrough
CT: control target
= control target key end

     0   :  { %s1254_s18 = smov 0   ;;  %s1556_s0 = inlined_call_operand.vmem [shape: bf16[2,18,18,32], index: 0, kind: input, shape index: {}]   ;;  %s1557_s1 = inlined_call_operand.vmem [shape: f32[1,1,32], index: 1, kind: input, shape index: {}]   ;;  %s1558_s2 = inlined_call_operand.vmem [shape: f32[1,1,32], index: 2, kind: input, shape index: {}]   ;;  %s1559_s3 = inlined_call_operand.vmem [shape: bf16[32,128], index: 3, kind: input, shape index: {}]   ;;  %s1560_s4 = inlined_call_operand.vmem [shape: f32[1,128], index: 4, kind: input, shape index: {}]   ;;  %s1561_s5 = inlined_call_operand.vmem [shape: f32[2,16,16,2], index: 5, kind: output, shape index: {}]  }
   0x1 LB: > { %s1027_s19 = sadd.s32 4294967295, %s1222_s18   ;;  %p1031_p0 = scmp.ge.s32.totalorder %s1222_s18, 1  ;;  %s1222_s18 = sphi %s1254_s18, %s15_s18  }
   0x2   : > { %p187_p1 = scmp.lt.s32.totalorder %s1222_s18, 3 }
   0x4   : > { %p188_p2 = pnand %p1031_p0, %p187_p1 }
   0x5   : > { %v1214_v0 = vld [vmem:[%s1559_s3] sm:$0xff] (!%p188_p2)   ;;  %p215_p3 = scmp.lt.s32.totalorder (!%p188_p2), %s1027_s19, 1  ;;  %v1215_v1 = vld [vmem:[%s1559_s3 + $0x8] sm:$0xff] (!%p188_p2)   ;;  %vm513_vm0 = vsmask.f32 (!%p188_p2), 7424  ;;  %vm729_vm1 = vcmask (!%p188_p2), 261120  }
   0x6   : > { %191 = sbr.rel (%p188_p2) target bundleno = 327 (0x147), region = 40  ;;  %1165 = vmatprep.subr.bf16.mxu0 (!%p188_p2), %v1214_v0  ;;  %1201 = vmatprep.subr.bf16.mxu1 (!%p188_p2), %v1214_v0  ;;  %v1279_v2 = vld [vmem:[%s1557_s1] ss:$0 sm:$0xff] (!%p188_p2)  ;;  %vm939_vm2 = vcmask (!%p188_p2), 15360  }
   0x7   : > { %1166 = vmatpush3.bf16.msra.mxu0 (!%p188_p2), %v1214_v0  ;;  %1203 = vmatpush3.bf16.msra.mxu1 (!%p188_p2), %v1214_v0  ;;  %v1290_v13 = vld [vmem:[%s1558_s2] ss:$0 sm:$0xff] (!%p188_p2) }
   0x8   : > { %1167 = vmatprep.subr.bf16.mxu0 (!%p188_p2), %v1215_v1  ;;  %1202 = vmatprep.subr.bf16.mxu1 (!%p188_p2), %v1215_v1 }
   0xb   : > { %1168 = vmatpush3.bf16.msra.mxu0 (!%p188_p2), %v1215_v1  ;;  %1204 = vmatpush3.bf16.msra.mxu1 (!%p188_p2), %v1215_v1 }
   0xd   : > { %s1563_s19 = smov (!%p215_p3, %s1027_s19), 1 }
   0xe   : > { %s1205_s24 = smul.u32 216, %s1563_s19  ;;  %s1106_s7 = sshll.u32 %s1563_s19, 8 }
   0xf   : > { %s1455_s12 = scalar_lea.vmem %s1561_s5, %s1106_s7 }
  0x10   : > { %s1274_s27 = scalar_lea.vmem %s1556_s0, %s1205_s24 }
  0x11   : > { %v1035_v3 = vld [vmem:[%s1274_s27 + $0xc] sm:$0xff]   ;;  %v1037_v4 = vld [vmem:[%s1274_s27 + $0x14] sm:$0x1]  ;;  %v1139_v11 = vld [vmem:[%s1274_s27 + $0x18] sm:$0xff]  }
  0x12   : > { %v1059_v5 = vld [vmem:[%s1274_s27 + $0x6c] sm:$0xff]   ;;  %v275_v6 = vunpack.c.l.bf16 %v1035_v3  ;;  %v276_v7 = vunpack.c.h.bf16 %v1035_v3  ;;  %v277_v8 = vunpack.c.l.bf16 %v1037_v4  ;;  %v1061_v9 = vld [vmem:[%s1274_s27 + $0x74] sm:$0x1]  ;;  %v1040_v12 = vld [vmem:[%s1274_s27 + $0x20] sm:$0x1]  ;;  %v1109_v16 = vunpack.c.l.bf16 %v1139_v11 }
  0x13   : > { %v299_v10 = vunpack.c.l.bf16 %v1059_v5  ;;  %v300_v14 = vunpack.c.h.bf16 %v1059_v5  ;;  %v301_v15 = vunpack.c.l.bf16 %v1061_v9  ;;  %v1110_v17 = vunpack.c.h.bf16 %v1139_v11  ;;  %v1143_v34 = vld [vmem:[%s1274_s27 + $0x78] sm:$0xff]   ;;  %v1064_v59 = vld [vmem:[%s1274_s27 + $0x80] sm:$0x1]  ;;  %v1041_v0 = vld [vmem:[%s1274_s27 + $0x24] sm:$0xff]  }
  0x14   : > { %v330_v18 = vmul.f32 %v1279_v2, %v275_v6  ;;  %v331_v19 = vmul.f32 %v1279_v2, %v276_v7  ;;  %v332_v20 = vmul.f32 %v1279_v2, %v277_v8  ;;  %v280_v24 = vunpack.c.l.bf16 %v1040_v12 }
  0x15   : > { %v354_v21 = vmul.f32 %v1279_v2, %v299_v10  ;;  %v355_v22 = vmul.f32 %v1279_v2, %v300_v14  ;;  %v356_v23 = vmul.f32 %v1279_v2, %v301_v15  ;;  %v333_v25 = vmul.f32 %v1109_v16, %v1279_v2  ;;  %v1043_v14 = vld [vmem:[%s1274_s27 + $0x2c] sm:$0x1] }
  0x16   : > { %v385_v26 = vadd.f32 %v1290_v13, %v330_v18  ;;  %v386_v27 = vadd.f32 %v1290_v13, %v331_v19  ;;  %v387_v28 = vadd.f32 %v1290_v13, %v332_v20  ;;  %v334_v32 = vmul.f32 %v1110_v17, %v1279_v2  ;;  %v1065_v20 = vld [vmem:[%s1274_s27 + $0x84] sm:$0xff]  }
  0x17   : > { %v409_v29 = vadd.f32 %v1290_v13, %v354_v21  ;;  %v410_v30 = vadd.f32 %v1290_v13, %v355_v22  ;;  %v411_v31 = vadd.f32 %v1290_v13, %v356_v23  ;;  %v335_v33 = vmul.f32 %v1279_v2, %v280_v24 }
  0x18   : > { %v433_v35 = vmax.f32 %v385_v26, 0.0  ;;  %v434_v36 = vmax.f32 %v386_v27, 0.0  ;;  %v435_v37 = vmax.f32 %v387_v28, 0.0  ;;  %v388_v41 = vadd.f32 %v1290_v13, %v333_v25 }
  0x19   : > { %v457_v38 = vmax.f32 %v409_v29, 0.0  ;;  %v458_v39 = vmax.f32 %v410_v30, 0.0  ;;  %v459_v40 = vmax.f32 %v411_v31, 0.0  ;;  %v389_v42 = vadd.f32 %v1290_v13, %v334_v32  ;;  %v1067_v29 = vld [vmem:[%s1274_s27 + $0x8c] sm:$0x1] }
  0x1a   : > { %v481_v43 = vpack.c.bf16 %v434_v36, %v433_v35  ;;  %v482_v44 = vpack.c.bf16 %v435_v37, %v435_v37  ;;  %v390_v45 = vadd.f32 %v1290_v13, %v335_v33  ;;  %v1125_v46 = vunpack.c.l.bf16 %v1143_v34 }
  0x1b   : > { %v497_v47 = vpack.c.bf16 %v458_v39, %v457_v38  ;;  %v498_v48 = vpack.c.bf16 %v459_v40, %v459_v40  ;;  %v436_v49 = vmax.f32 %v388_v41, 0.0  ;;  %v437_v50 = vmax.f32 %v389_v42, 0.0 }
  0x1c   : > { %v515_v51 = vshrl.u32 %v481_v43, 16  ;;  %v517_v52 = vshll.u32 %v481_v43, 16  ;;  %v522_v53 = vshll.u32 %v482_v44, 16  ;;  %v438_v54 = vmax.f32 %v390_v45, 0.0 }
  0x1d   : > { %v611_v55 = vshrl.u32 %v497_v47, 16  ;;  %v613_v56 = vshll.u32 %v497_v47, 16  ;;  %v618_v57 = vshll.u32 %v498_v48, 16  ;;  %v483_v58 = vpack.c.bf16 %v437_v50, %v436_v49 }
  0x1e   : > { %v519_v60 = vrot.slane %v517_v52, 1  ;;  %v524_v61 = vrot.slane %v522_v53, 1  ;;  %v484_v62 = vpack.c.bf16 %v438_v54, %v438_v54  ;;  %v1126_v63 = vunpack.c.h.bf16 %v1143_v34 }
  0x1f   : > { %v615_v1 = vrot.slane %v613_v56, 1  ;;  %v620_v3 = vrot.slane %v618_v57, 1  ;;  %v527_v4 = vshrl.u32 %v483_v58, 16  ;;  %v529_v5 = vshll.u32 %v483_v58, 16 }
  0x20   : > { %v520_v6 = vor.u32 %v519_v60, %v515_v51  ;;  %v534_v7 = vshll.u32 %v484_v62, 16  ;;  %v304_v8 = vunpack.c.l.bf16 %v1064_v59  ;;  %v357_v9 = vmul.f32 %v1125_v46, %v1279_v2  ;;  %v1140_v46 = vld [vmem:[%s1274_s27 + $0x30] sm:$0xff]   ;;  %v1046_v59 = vld [vmem:[%s1274_s27 + $0x38] sm:$0x1] }
  0x21   : > { %v616_v10 = vor.u32 %v615_v1, %v611_v55  ;;  %v531_v11 = vrot.slane %v529_v5, 1  ;;  %v358_v12 = vmul.f32 %v1126_v63, %v1279_v2  ;;  %v281_v15 = vunpack.c.l.bf16 %v1041_v0 }
  0x22   : > { %v525_v16 = vsel %vm513_vm0, %v520_v6, %v524_v61  ;;  %v536_v17 = vrot.slane %v534_v7, 1  ;;  %v359_v18 = vmul.f32 %v1279_v2, %v304_v8  ;;  %v412_v19 = vadd.f32 %v1290_v13, %v357_v9 }
  0x23   : > { %1169 = vmatprep.mubr.msk.bf16.mxu0 %vm729_vm1, %v525_v16  ;;  %v621_v21 = vsel %vm513_vm0, %v616_v10, %v620_v3  ;;  %v532_v22 = vor.u32 %v531_v11, %v527_v4  ;;  %v413_v23 = vadd.f32 %v1290_v13, %v358_v12  ;;  %v282_v24 = vunpack.c.h.bf16 %v1041_v0 }
  0x24   : > { %1185 = vmatprep.mubr.msk.bf16.mxu1 %vm729_vm1, %v621_v21  ;;  %v414_v25 = vadd.f32 %v1290_v13, %v359_v18  ;;  %v460_v26 = vmax.f32 %v412_v19, 0.0  ;;  %v283_v27 = vunpack.c.l.bf16 %v1043_v14  ;;  %v336_v28 = vmul.f32 %v1279_v2, %v281_v15  ;;  %v1144_v14 = vld [vmem:[%s1274_s27 + $0x90] sm:$0xff]  }
  0x25   : > { %v537_v30 = vsel %vm513_vm0, %v532_v22, %v536_v17  ;;  %v461_v31 = vmax.f32 %v413_v23, 0.0  ;;  %v337_v32 = vmul.f32 %v1279_v2, %v282_v24  ;;  %v305_v33 = vunpack.c.l.bf16 %v1065_v20  ;;  %v1070_v23 = vld [vmem:[%s1274_s27 + $0x98] sm:$0x1] }
  0x26   : > { %1170 = vmatmul.mubr.msk.bf16.vlgmr.msra.gmra.mrb[0].mxu0 %vm729_vm1, %v537_v30  ;;  %v462_v34 = vmax.f32 %v414_v25, 0.0  ;;  %v338_v35 = vmul.f32 %v1279_v2, %v283_v27  ;;  %v391_v36 = vadd.f32 %v1290_v13, %v336_v28  ;;  %v306_v37 = vunpack.c.h.bf16 %v1065_v20  ;;  %v1047_v28 = vld [vmem:[%s1274_s27 + $0x3c] sm:$0xff]  }
  0x27   : > { %v499_v38 = vpack.c.bf16 %v461_v31, %v460_v26  ;;  %v392_v39 = vadd.f32 %v1290_v13, %v337_v32  ;;  %v307_v40 = vunpack.c.l.bf16 %v1067_v29  ;;  %v360_v41 = vmul.f32 %v1279_v2, %v305_v33 }
  0x28   : > { %v500_v42 = vpack.c.bf16 %v462_v34, %v462_v34  ;;  %v393_v43 = vadd.f32 %v1290_v13, %v338_v35  ;;  %v439_v44 = vmax.f32 %v391_v36, 0.0  ;;  %v361_v45 = vmul.f32 %v1279_v2, %v306_v37  ;;  %v1049_v37 = vld [vmem:[%s1274_s27 + $0x44] sm:$0x1] }
  0x29   : > { %v623_v47 = vshrl.u32 %v499_v38, 16  ;;  %v625_v48 = vshll.u32 %v499_v38, 16  ;;  %v440_v49 = vmax.f32 %v392_v39, 0.0  ;;  %v362_v50 = vmul.f32 %v1279_v2, %v307_v40 }
  0x2a   : > { %v630_v51 = vshll.u32 %v500_v42, 16  ;;  %v441_v52 = vmax.f32 %v393_v43, 0.0  ;;  %v415_v53 = vadd.f32 %v1290_v13, %v360_v41  ;;  %v416_v54 = vadd.f32 %v1290_v13, %v361_v45 }
  0x2b   : > { %v627_v55 = vrot.slane %v625_v48, 1  ;;  %v485_v56 = vpack.c.bf16 %v440_v49, %v439_v44  ;;  %v417_v57 = vadd.f32 %v1290_v13, %v362_v50  ;;  %v1113_v58 = vunpack.c.l.bf16 %v1140_v46  ;;  %v1071_v50 = vld [vmem:[%s1274_s27 + $0x9c] sm:$0xff]  }
  0x2c   : > { %v632_v60 = vrot.slane %v630_v51, 1  ;;  %v486_v61 = vpack.c.bf16 %v441_v52, %v441_v52  ;;  %v463_v62 = vmax.f32 %v415_v53, 0.0  ;;  %v464_v63 = vmax.f32 %v416_v54, 0.0 }
  0x2d   : > { %v628_v0 = vor.u32 %v627_v55, %v623_v47  ;;  %v539_v1 = vshrl.u32 %v485_v56, 16  ;;  %v541_v3 = vshll.u32 %v485_v56, 16  ;;  %v465_v4 = vmax.f32 %v417_v57, 0.0 }
  0x2e   : > { %v546_v5 = vshll.u32 %v486_v61, 16  ;;  %v501_v6 = vpack.c.bf16 %v464_v63, %v463_v62  ;;  %v1114_v7 = vunpack.c.h.bf16 %v1140_v46  ;;  %v286_v8 = vunpack.c.l.bf16 %v1046_v59 }
  0x2f   : > { %v633_v9 = vsel %vm513_vm0, %v628_v0, %v632_v60  ;;  %v543_v10 = vrot.slane %v541_v3, 1  ;;  %v502_v11 = vpack.c.bf16 %v465_v4, %v465_v4  ;;  %v339_v12 = vmul.f32 %v1113_v58, %v1279_v2  ;;  %v1073_v4 = vld [vmem:[%s1274_s27 + $0xa4] sm:$0x1] }
  0x30   : > { %1186 = vmatmul.mubr.msk.bf16.vlgmr.msra.gmra.mrb[0].mxu1 %vm729_vm1, %v633_v9  ;;  %v548_v15 = vrot.slane %v546_v5, 1  ;;  %v635_v16 = vshrl.u32 %v501_v6, 16  ;;  %v637_v17 = vshll.u32 %v501_v6, 16  ;;  %v340_v18 = vmul.f32 %v1114_v7, %v1279_v2 }
  0x31   : > { %v544_v19 = vor.u32 %v543_v10, %v539_v1  ;;  %v642_v20 = vshll.u32 %v502_v11, 16  ;;  %v341_v21 = vmul.f32 %v1279_v2, %v286_v8  ;;  %v394_v22 = vadd.f32 %v1290_v13, %v339_v12 }
  0x32   : > { %v639_v24 = vrot.slane %v637_v17, 1  ;;  %v395_v25 = vadd.f32 %v1290_v13, %v340_v18  ;;  %v1129_v26 = vunpack.c.l.bf16 %v1144_v14  ;;  %v1130_v27 = vunpack.c.h.bf16 %v1144_v14  ;;  %v1141_v14 = vld [vmem:[%s1274_s27 + $0x48] sm:$0xff]  }
  0x33   : > { %v549_v29 = vsel %vm513_vm0, %v544_v19, %v548_v15  ;;  %v644_v30 = vrot.slane %v642_v20, 1  ;;  %v396_v31 = vadd.f32 %v1290_v13, %v341_v21  ;;  %v442_v32 = vmax.f32 %v394_v22, 0.0 }
  0x34   : > { %1173 = vmatprep.mubr.msk.bf16.mxu0 %vm729_vm1, %v549_v29  ;;  %v640_v33 = vor.u32 %v639_v24, %v635_v16  ;;  %v443_v34 = vmax.f32 %v395_v25, 0.0  ;;  %v310_v35 = vunpack.c.l.bf16 %v1070_v23  ;;  %v363_v36 = vmul.f32 %v1129_v26, %v1279_v2 }
  0x35   : > { %v444_v38 = vmax.f32 %v396_v31, 0.0  ;;  %v364_v39 = vmul.f32 %v1130_v27, %v1279_v2  ;;  %v287_v40 = vunpack.c.l.bf16 %v1047_v28  ;;  %v288_v41 = vunpack.c.h.bf16 %v1047_v28  ;;  %v1052_v27 = vld [vmem:[%s1274_s27 + $0x50] sm:$0x1] }
  0x36   : > { %v645_v42 = vsel %vm513_vm0, %v640_v33, %v644_v30  ;;  %v487_v43 = vpack.c.bf16 %v443_v34, %v442_v32  ;;  %v365_v44 = vmul.f32 %v1279_v2, %v310_v35  ;;  %v418_v45 = vadd.f32 %v1290_v13, %v363_v36  ;;  %v1145_v36 = vld [vmem:[%s1274_s27 + $0xa8] sm:$0xff]  }
  0x37   : > { %1189 = vmatprep.mubr.msk.bf16.mxu1 %vm729_vm1, %v645_v42  ;;  %v488_v46 = vpack.c.bf16 %v444_v38, %v444_v38  ;;  %v419_v47 = vadd.f32 %v1290_v13, %v364_v39  ;;  %v289_v48 = vunpack.c.l.bf16 %v1049_v37  ;;  %v342_v49 = vmul.f32 %v1279_v2, %v287_v40 }
  0x38   : > { %v551_v51 = vshrl.u32 %v487_v43, 16  ;;  %v553_v52 = vshll.u32 %v487_v43, 16  ;;  %v420_v53 = vadd.f32 %v1290_v13, %v365_v44  ;;  %v466_v54 = vmax.f32 %v418_v45, 0.0  ;;  %v1076_v45 = vld [vmem:[%s1274_s27 + $0xb0] sm:$0x1] }
  0x39   : > { %v558_v55 = vshll.u32 %v488_v46, 16  ;;  %v467_v56 = vmax.f32 %v419_v47, 0.0  ;;  %v343_v57 = vmul.f32 %v1279_v2, %v288_v41  ;;  %v344_v58 = vmul.f32 %v1279_v2, %v289_v48 }
  0x3a   : > { %v555_v59 = vrot.slane %v553_v52, 1  ;;  %v468_v60 = vmax.f32 %v420_v53, 0.0  ;;  %v397_v61 = vadd.f32 %v1290_v13, %v342_v49  ;;  %v311_v62 = vunpack.c.l.bf16 %v1071_v50 }
  0x3b   : > { %v560_v63 = vrot.slane %v558_v55, 1  ;;  %v503_v0 = vpack.c.bf16 %v467_v56, %v466_v54  ;;  %v398_v1 = vadd.f32 %v1290_v13, %v343_v57  ;;  %v399_v3 = vadd.f32 %v1290_v13, %v344_v58  ;;  %v1053_v58 = vld [vmem:[%s1274_s27 + $0x54] sm:$0xff]  }
  0x3c   : > { %v556_v5 = vor.u32 %v555_v59, %v551_v51  ;;  %v504_v6 = vpack.c.bf16 %v468_v60, %v468_v60  ;;  %v445_v7 = vmax.f32 %v397_v61, 0.0  ;;  %v312_v8 = vunpack.c.h.bf16 %v1071_v50 }
  0x3d   : > { %v647_v9 = vshrl.u32 %v503_v0, 16  ;;  %v649_v10 = vshll.u32 %v503_v0, 16  ;;  %v446_v11 = vmax.f32 %v398_v1, 0.0  ;;  %v447_v12 = vmax.f32 %v399_v3, 0.0 }
  0x3e   : > { %v561_v15 = vsel %vm513_vm0, %v556_v5, %v560_v63  ;;  %v654_v16 = vshll.u32 %v504_v6, 16  ;;  %v313_v17 = vunpack.c.l.bf16 %v1073_v4  ;;  %v366_v18 = vmul.f32 %v1279_v2, %v311_v62  ;;  %v1055_v4 = vld [vmem:[%s1274_s27 + $0x5c] sm:$0x1] }
  0x3f   : > { %1174 = vmatmul.mubr.msk.bf16.gmra.mrb[4].mxu0 %vm729_vm1, %v561_v15  ;;  %v651_v19 = vrot.slane %v649_v10, 1  ;;  %v489_v20 = vpack.c.bf16 %v446_v11, %v445_v7  ;;  %v490_v21 = vpack.c.bf16 %v447_v12, %v447_v12  ;;  %v367_v22 = vmul.f32 %v1279_v2, %v312_v8 }
  0x40   : > { %v656_v23 = vrot.slane %v654_v16, 1  ;;  %v368_v24 = vmul.f32 %v1279_v2, %v313_v17  ;;  %v421_v25 = vadd.f32 %v1290_v13, %v366_v18  ;;  %v1117_v26 = vunpack.c.l.bf16 %v1141_v14 }
  0x41   : > { %v652_v28 = vor.u32 %v651_v19, %v647_v9  ;;  %v563_v29 = vshrl.u32 %v489_v20, 16  ;;  %v565_v30 = vshll.u32 %v489_v20, 16  ;;  %v570_v31 = vshll.u32 %v490_v21, 16 }
  0x42   : > { %v422_v32 = vadd.f32 %v1290_v13, %v367_v22  ;;  %v423_v33 = vadd.f32 %v1290_v13, %v368_v24  ;;  %v469_v34 = vmax.f32 %v421_v25, 0.0  ;;  %v1118_v35 = vunpack.c.h.bf16 %v1141_v14  ;;  %v1077_v22 = vld [vmem:[%s1274_s27 + $0xb4] sm:$0xff]  }
  0x43   : > { %v657_v37 = vsel %vm513_vm0, %v652_v28, %v656_v23  ;;  %v567_v38 = vrot.slane %v565_v30, 1  ;;  %v572_v39 = vrot.slane %v570_v31, 1  ;;  %v292_v40 = vunpack.c.l.bf16 %v1052_v27 }
  0x44   : > { %1190 = vmatmul.mubr.msk.bf16.gmra.mrb[4].mxu1 %vm729_vm1, %v657_v37  ;;  %v470_v41 = vmax.f32 %v422_v32, 0.0  ;;  %v471_v42 = vmax.f32 %v423_v33, 0.0  ;;  %v345_v43 = vmul.f32 %v1117_v26, %v1279_v2  ;;  %v346_v44 = vmul.f32 %v1118_v35, %v1279_v2 }
  0x45   : > { %v568_v46 = vor.u32 %v567_v38, %v563_v29  ;;  %v347_v47 = vmul.f32 %v1279_v2, %v292_v40  ;;  %v1133_v48 = vunpack.c.l.bf16 %v1145_v36  ;;  %v1134_v49 = vunpack.c.h.bf16 %v1145_v36 }
  0x46   : > { %v505_v50 = vpack.c.bf16 %v470_v41, %v469_v34  ;;  %v506_v51 = vpack.c.bf16 %v471_v42, %v471_v42  ;;  %v400_v52 = vadd.f32 %v1290_v13, %v345_v43  ;;  %v401_v53 = vadd.f32 %v1290_v13, %v346_v44  ;;  %v1079_v34 = vld [vmem:[%s1274_s27 + $0xbc] sm:$0x1]  ;;  %v1142_v44 = vld [vmem:[%s1274_s27 + $0x60] sm:$0xff]  }
  0x47   : > { %v573_v54 = vsel %vm513_vm0, %v568_v46, %v572_v39  ;;  %v402_v55 = vadd.f32 %v1290_v13, %v347_v47  ;;  %v316_v56 = vunpack.c.l.bf16 %v1076_v45  ;;  %v369_v57 = vmul.f32 %v1133_v48, %v1279_v2 }
  0x48   : > { %1177 = vmatprep.mubr.msk.bf16.mxu0 %vm729_vm1, %v573_v54  ;;  %v659_v59 = vshrl.u32 %v505_v50, 16  ;;  %v661_v60 = vshll.u32 %v505_v50, 16  ;;  %v666_v61 = vshll.u32 %v506_v51, 16  ;;  %v448_v62 = vmax.f32 %v400_v52, 0.0 }
  0x49   : > { %v449_v63 = vmax.f32 %v401_v53, 0.0  ;;  %v450_v0 = vmax.f32 %v402_v55, 0.0  ;;  %v370_v1 = vmul.f32 %v1134_v49, %v1279_v2  ;;  %v371_v3 = vmul.f32 %v1279_v2, %v316_v56 }
  0x4a   : > { %v663_v5 = vrot.slane %v661_v60, 1  ;;  %v668_v6 = vrot.slane %v666_v61, 1  ;;  %v424_v7 = vadd.f32 %v1290_v13, %v369_v57  ;;  %v293_v8 = vunpack.c.l.bf16 %v1053_v58  ;;  %v1058_v57 = vld [vmem:[%s1274_s27 + $0x68] sm:$0x1] }
  0x4b   : > { %v491_v9 = vpack.c.bf16 %v449_v63, %v448_v62  ;;  %v492_v10 = vpack.c.bf16 %v450_v0, %v450_v0  ;;  %v425_v11 = vadd.f32 %v1290_v13, %v370_v1  ;;  %v426_v12 = vadd.f32 %v1290_v13, %v371_v3  ;;  %v1146_v3 = vld [vmem:[%s1274_s27 + $0xc0] sm:$0xff]  }
  0x4c   : > { %v664_v14 = vor.u32 %v663_v5, %v659_v59  ;;  %v472_v15 = vmax.f32 %v424_v7, 0.0  ;;  %v294_v16 = vunpack.c.h.bf16 %v1053_v58  ;;  %v295_v17 = vunpack.c.l.bf16 %v1055_v4 }
  0x4d   : > { %v575_v18 = vshrl.u32 %v491_v9, 16  ;;  %v577_v19 = vshll.u32 %v491_v9, 16  ;;  %v582_v20 = vshll.u32 %v492_v10, 16  ;;  %v473_v21 = vmax.f32 %v425_v11, 0.0 }
  0x4e   : > { %v669_v23 = vsel %vm513_vm0, %v664_v14, %v668_v6  ;;  %v474_v24 = vmax.f32 %v426_v12, 0.0  ;;  %v348_v25 = vmul.f32 %v1279_v2, %v293_v8  ;;  %v349_v26 = vmul.f32 %v1279_v2, %v294_v16 }
  0x4f   : > { %1193 = vmatprep.mubr.msk.bf16.mxu1 %vm729_vm1, %v669_v23  ;;  %v579_v27 = vrot.slane %v577_v19, 1  ;;  %v584_v28 = vrot.slane %v582_v20, 1  ;;  %v507_v29 = vpack.c.bf16 %v473_v21, %v472_v15  ;;  %v350_v30 = vmul.f32 %v1279_v2, %v295_v17  ;;  %v1082_v17 = vld [vmem:[%s1274_s27 + $0xc8] sm:$0x1] }
  0x50   : > { %v508_v31 = vpack.c.bf16 %v474_v24, %v474_v24  ;;  %v403_v32 = vadd.f32 %v1290_v13, %v348_v25  ;;  %v404_v33 = vadd.f32 %v1290_v13, %v349_v26  ;;  %v317_v35 = vunpack.c.l.bf16 %v1077_v22 }
  0x51   : > { %v580_v36 = vor.u32 %v579_v27, %v575_v18  ;;  %v671_v37 = vshrl.u32 %v507_v29, 16  ;;  %v673_v38 = vshll.u32 %v507_v29, 16  ;;  %v405_v39 = vadd.f32 %v1290_v13, %v350_v30 }
  0x52   : > { %v678_v40 = vshll.u32 %v508_v31, 16  ;;  %v451_v41 = vmax.f32 %v403_v32, 0.0  ;;  %v452_v42 = vmax.f32 %v404_v33, 0.0  ;;  %v318_v43 = vunpack.c.h.bf16 %v1077_v22 }
  0x53   : > { %v585_v45 = vsel %vm513_vm0, %v580_v36, %v584_v28  ;;  %v675_v46 = vrot.slane %v673_v38, 1  ;;  %v453_v47 = vmax.f32 %v405_v39, 0.0  ;;  %v319_v48 = vunpack.c.l.bf16 %v1079_v34 }
  0x54   : > { %1178 = vmatmul.mubr.msk.bf16.gmra.mrb[8].mxu0 %vm729_vm1, %v585_v45  ;;  %v680_v49 = vrot.slane %v678_v40, 1  ;;  %v493_v50 = vpack.c.bf16 %v452_v42, %v451_v41  ;;  %v372_v51 = vmul.f32 %v1279_v2, %v317_v35  ;;  %v373_v52 = vmul.f32 %v1279_v2, %v318_v43 }
  0x55   : > { %v676_v53 = vor.u32 %v675_v46, %v671_v37  ;;  %v494_v54 = vpack.c.bf16 %v453_v47, %v453_v47  ;;  %v374_v55 = vmul.f32 %v1279_v2, %v319_v48  ;;  %v1121_v56 = vunpack.c.l.bf16 %v1142_v44 }
  0x56   : > { %v587_v58 = vshrl.u32 %v493_v50, 16  ;;  %v589_v59 = vshll.u32 %v493_v50, 16  ;;  %v427_v60 = vadd.f32 %v1290_v13, %v372_v51  ;;  %v428_v61 = vadd.f32 %v1290_v13, %v373_v52 }
  0x57   : > { %v681_v62 = vsel %vm513_vm0, %v676_v53, %v680_v49  ;;  %v594_v63 = vshll.u32 %v494_v54, 16  ;;  %v429_v0 = vadd.f32 %v1290_v13, %v374_v55  ;;  %v1122_v1 = vunpack.c.h.bf16 %v1142_v44 }
  0x58   : > { %1194 = vmatmul.mubr.msk.bf16.gmra.mrb[8].mxu1 %vm729_vm1, %v681_v62  ;;  %v591_v4 = vrot.slane %v589_v59, 1  ;;  %v475_v5 = vmax.f32 %v427_v60, 0.0  ;;  %v476_v6 = vmax.f32 %v428_v61, 0.0  ;;  %v298_v7 = vunpack.c.l.bf16 %v1058_v57  ;;  %v1450_v60 = vld [vmem:[%s1560_s4] ss:$0 sm:$0xff] }
  0x59   : > { %v596_v8 = vrot.slane %v594_v63, 1  ;;  %v477_v9 = vmax.f32 %v429_v0, 0.0  ;;  %v351_v10 = vmul.f32 %v1121_v56, %v1279_v2  ;;  %v352_v11 = vmul.f32 %v1122_v1, %v1279_v2 }
  0x5a   : > { %v592_v12 = vor.u32 %v591_v4, %v587_v58  ;;  %v509_v14 = vpack.c.bf16 %v476_v6, %v475_v5  ;;  %v353_v15 = vmul.f32 %v1279_v2, %v298_v7  ;;  %v1137_v16 = vunpack.c.l.bf16 %v1146_v3 }
  0x5b   : > { %v510_v18 = vpack.c.bf16 %v477_v9, %v477_v9  ;;  %v406_v19 = vadd.f32 %v1290_v13, %v351_v10  ;;  %v407_v20 = vadd.f32 %v1290_v13, %v352_v11  ;;  %v1138_v21 = vunpack.c.h.bf16 %v1146_v3 }
  0x5c   : > { %v597_v22 = vsel %vm513_vm0, %v592_v12, %v596_v8  ;;  %v683_v23 = vshrl.u32 %v509_v14, 16  ;;  %v685_v24 = vshll.u32 %v509_v14, 16  ;;  %v408_v25 = vadd.f32 %v1290_v13, %v353_v15 }
  0x5d   : > { %1181 = vmatprep.mubr.msk.bf16.mxu0 %vm729_vm1, %v597_v22  ;;  %v690_v26 = vshll.u32 %v510_v18, 16  ;;  %v454_v27 = vmax.f32 %v406_v19, 0.0  ;;  %v455_v28 = vmax.f32 %v407_v20, 0.0  ;;  %v322_v29 = vunpack.c.l.bf16 %v1082_v17 }
  0x5e   : > { %v687_v30 = vrot.slane %v685_v24, 1  ;;  %v456_v31 = vmax.f32 %v408_v25, 0.0  ;;  %v375_v32 = vmul.f32 %v1137_v16, %v1279_v2  ;;  %v376_v33 = vmul.f32 %v1138_v21, %v1279_v2 }
  0x5f   : > { %v692_v34 = vrot.slane %v690_v26, 1  ;;  %v495_v35 = vpack.c.bf16 %v455_v28, %v454_v27  ;;  %v377_v36 = vmul.f32 %v1279_v2, %v322_v29 }
  0x60   : > { %v688_v37 = vor.u32 %v687_v30, %v683_v23  ;;  %v496_v38 = vpack.c.bf16 %v456_v31, %v456_v31  ;;  %v430_v39 = vadd.f32 %v1290_v13, %v375_v32  ;;  %v431_v40 = vadd.f32 %v1290_v13, %v376_v33 }
  0x61   : > { %v599_v41 = vshrl.u32 %v495_v35, 16  ;;  %v601_v42 = vshll.u32 %v495_v35, 16  ;;  %v432_v43 = vadd.f32 %v1290_v13, %v377_v36 }
  0x62   : > { %v693_v44 = vsel %vm513_vm0, %v688_v37, %v692_v34  ;;  %v606_v45 = vshll.u32 %v496_v38, 16  ;;  %v478_v46 = vmax.f32 %v430_v39, 0.0  ;;  %v479_v47 = vmax.f32 %v431_v40, 0.0 }
  0x63   : > { %1197 = vmatprep.mubr.msk.bf16.mxu1 %vm729_vm1, %v693_v44  ;;  %v603_v48 = vrot.slane %v601_v42, 1  ;;  %v480_v2 = vmax.f32 %v432_v43, 0.0 }
  0x64   : > { %v608_v49 = vrot.slane %v606_v45, 1  ;;  %v511_v50 = vpack.c.bf16 %v479_v47, %v478_v46 }
  0x65   : > { %v604_v51 = vor.u32 %v603_v48, %v599_v41  ;;  %v512_v52 = vpack.c.bf16 %v480_v2, %v480_v2 }
  0x66   : > { %v695_v53 = vshrl.u32 %v511_v50, 16  ;;  %v697_v54 = vshll.u32 %v511_v50, 16 }
  0x67   : > { %v609_v55 = vsel %vm513_vm0, %v604_v51, %v608_v49  ;;  %v702_v56 = vshll.u32 %v512_v52, 16 }
  0x68   : > { %1182 = vmatmul.mubr.msk.bf16.gmra.mrb[12].mxu0 %vm729_vm1, %v609_v55  ;;  %v699_v13 = vrot.slane %v697_v54, 1 }
  0x69   : > { %v704_v57 = vrot.slane %v702_v56, 1 }
  0x6a   : > { %v700_v58 = vor.u32 %v699_v13, %v695_v53 }
  0x6c   : > { %v705_v59 = vsel %vm513_vm0, %v700_v58, %v704_v57 }
  0x6d   : > { %1198 = vmatmul.mubr.msk.bf16.gmra.mrb[12].mxu1 %vm729_vm1, %v705_v59 }
  0xf9   : > { %v1171_v61 = vpop.f32.mrb[0].mxu0 }
  0xfa   : > { %v821_v62 = vadd.f32 %v1171_v61, %v1450_v60  ;;  %v812_v63 = vpop.f32.mrb[1].mxu0 }
  0xfb   : > { %v813_v0 = vadd.f32 %v1450_v60, %v812_v63  ;;  %v1172_v1 = vpop.f32.mrb[2].mxu0 }
  0xfc   : > { %942 = vst.msk [vmem:[%s1455_s12 + $0x10] sm:$0xff] %vm939_vm2, %v821_v62  ;;  %v824_v3 = vadd.f32 %v1172_v1, %v1450_v60  ;;  %v815_v4 = vpop.f32.mrb[3].mxu0 }
  0xfd   : > { %940 = vst.msk [vmem:[%s1455_s12] sm:$0xff] %vm939_vm2, %v813_v0  ;;  %v816_v5 = vadd.f32 %v1450_v60, %v815_v4 }
  0xfe   : > { %943 = vst.msk [vmem:[%s1455_s12 + $0x18] sm:$0xff] %vm939_vm2, %v824_v3 }
  0xff   : > { %941 = vst.msk [vmem:[%s1455_s12 + $0x8] sm:$0xff] %vm939_vm2, %v816_v5 }
 0x103   : > { %v1187_v6 = vpop.f32.mrb[0].mxu1 }
 0x104   : > { %v885_v7 = vadd.f32 %v1187_v6, %v1450_v60  ;;  %v876_v8 = vpop.f32.mrb[1].mxu1 }
 0x105   : > { %v877_v9 = vadd.f32 %v1450_v60, %v876_v8  ;;  %v1188_v10 = vpop.f32.mrb[2].mxu1 }
 0x106   : > { %958 = vst.msk [vmem:[%s1455_s12 + $0x90] sm:$0xff] %vm939_vm2, %v885_v7  ;;  %v888_v11 = vadd.f32 %v1188_v10, %v1450_v60  ;;  %v879_v12 = vpop.f32.mrb[3].mxu1 }
 0x107   : > { %956 = vst.msk [vmem:[%s1455_s12 + $0x80] sm:$0xff] %vm939_vm2, %v877_v9  ;;  %v880_v14 = vadd.f32 %v1450_v60, %v879_v12 }
 0x108   : > { %959 = vst.msk [vmem:[%s1455_s12 + $0x98] sm:$0xff] %vm939_vm2, %v888_v11 }
 0x109   : > { %957 = vst.msk [vmem:[%s1455_s12 + $0x88] sm:$0xff] %vm939_vm2, %v880_v14 }
 0x112   : > { %v1175_v15 = vpop.f32.mrb[4].mxu0 }
 0x113   : > { %v837_v16 = vadd.f32 %v1175_v15, %v1450_v60  ;;  %v828_v17 = vpop.f32.mrb[5].mxu0 }
 0x114   : > { %v829_v18 = vadd.f32 %v1450_v60, %v828_v17  ;;  %v1176_v19 = vpop.f32.mrb[6].mxu0 }
 0x115   : > { %946 = vst.msk [vmem:[%s1455_s12 + $0x30] sm:$0xff] %vm939_vm2, %v837_v16  ;;  %v840_v20 = vadd.f32 %v1176_v19, %v1450_v60  ;;  %v831_v21 = vpop.f32.mrb[7].mxu0 }
 0x116   : > { %944 = vst.msk [vmem:[%s1455_s12 + $0x20] sm:$0xff] %vm939_vm2, %v829_v18  ;;  %v832_v22 = vadd.f32 %v1450_v60, %v831_v21 }
 0x117   : > { %v1191_v23 = vpop.f32.mrb[4].mxu1  ;;  %947 = vst.msk [vmem:[%s1455_s12 + $0x38] sm:$0xff] %vm939_vm2, %v840_v20 }
 0x118   : > { %v901_v24 = vadd.f32 %v1191_v23, %v1450_v60  ;;  %v892_v25 = vpop.f32.mrb[5].mxu1  ;;  %945 = vst.msk [vmem:[%s1455_s12 + $0x28] sm:$0xff] %vm939_vm2, %v832_v22 }
 0x119   : > { %v893_v26 = vadd.f32 %v1450_v60, %v892_v25  ;;  %v1192_v27 = vpop.f32.mrb[6].mxu1 }
 0x11a   : > { %962 = vst.msk [vmem:[%s1455_s12 + $0xb0] sm:$0xff] %vm939_vm2, %v901_v24  ;;  %v904_v28 = vadd.f32 %v1192_v27, %v1450_v60  ;;  %v895_v29 = vpop.f32.mrb[7].mxu1 }
 0x11b   : > { %960 = vst.msk [vmem:[%s1455_s12 + $0xa0] sm:$0xff] %vm939_vm2, %v893_v26  ;;  %v896_v30 = vadd.f32 %v1450_v60, %v895_v29 }
 0x11c   : > { %963 = vst.msk [vmem:[%s1455_s12 + $0xb8] sm:$0xff] %vm939_vm2, %v904_v28 }
 0x11d   : > { %961 = vst.msk [vmem:[%s1455_s12 + $0xa8] sm:$0xff] %vm939_vm2, %v896_v30 }
 0x127   : > { %v1179_v31 = vpop.f32.mrb[8].mxu0 }
 0x128   : > { %v853_v32 = vadd.f32 %v1179_v31, %v1450_v60  ;;  %v844_v33 = vpop.f32.mrb[9].mxu0 }
 0x129   : > { %v845_v34 = vadd.f32 %v1450_v60, %v844_v33  ;;  %v1180_v35 = vpop.f32.mrb[10].mxu0 }
 0x12a   : > { %950 = vst.msk [vmem:[%s1455_s12 + $0x50] sm:$0xff] %vm939_vm2, %v853_v32  ;;  %v856_v36 = vadd.f32 %v1180_v35, %v1450_v60  ;;  %v847_v37 = vpop.f32.mrb[11].mxu0 }
 0x12b   : > { %v1195_v38 = vpop.f32.mrb[8].mxu1  ;;  %948 = vst.msk [vmem:[%s1455_s12 + $0x40] sm:$0xff] %vm939_vm2, %v845_v34  ;;  %v848_v39 = vadd.f32 %v1450_v60, %v847_v37 }
 0x12c   : > { %v917_v40 = vadd.f32 %v1195_v38, %v1450_v60  ;;  %v908_v41 = vpop.f32.mrb[9].mxu1  ;;  %951 = vst.msk [vmem:[%s1455_s12 + $0x58] sm:$0xff] %vm939_vm2, %v856_v36 }
 0x12d   : > { %v909_v42 = vadd.f32 %v1450_v60, %v908_v41  ;;  %v1196_v43 = vpop.f32.mrb[10].mxu1  ;;  %949 = vst.msk [vmem:[%s1455_s12 + $0x48] sm:$0xff] %vm939_vm2, %v848_v39 }
 0x12e   : > { %966 = vst.msk [vmem:[%s1455_s12 + $0xd0] sm:$0xff] %vm939_vm2, %v917_v40  ;;  %v920_v44 = vadd.f32 %v1196_v43, %v1450_v60  ;;  %v911_v45 = vpop.f32.mrb[11].mxu1 }
 0x12f   : > { %964 = vst.msk [vmem:[%s1455_s12 + $0xc0] sm:$0xff] %vm939_vm2, %v909_v42  ;;  %v912_v46 = vadd.f32 %v1450_v60, %v911_v45 }
 0x130   : > { %967 = vst.msk [vmem:[%s1455_s12 + $0xd8] sm:$0xff] %vm939_vm2, %v920_v44 }
 0x131   : > { %965 = vst.msk [vmem:[%s1455_s12 + $0xc8] sm:$0xff] %vm939_vm2, %v912_v46 }
 0x13b   : > { %v1183_v47 = vpop.f32.mrb[12].mxu0 }
 0x13c   : > { %v869_v48 = vadd.f32 %v1183_v47, %v1450_v60  ;;  %v860_v2 = vpop.f32.mrb[13].mxu0 }
 0x13d   : > { %v861_v49 = vadd.f32 %v1450_v60, %v860_v2  ;;  %v1184_v50 = vpop.f32.mrb[14].mxu0 }
 0x13e   : > { %954 = vst.msk [vmem:[%s1455_s12 + $0x70] sm:$0xff] %vm939_vm2, %v869_v48  ;;  %v872_v51 = vadd.f32 %v1184_v50, %v1450_v60  ;;  %v863_v52 = vpop.f32.mrb[15].mxu0 }
 0x13f   : > { %952 = vst.msk [vmem:[%s1455_s12 + $0x60] sm:$0xff] %vm939_vm2, %v861_v49  ;;  %v864_v53 = vadd.f32 %v1450_v60, %v863_v52 }
 0x140   : > { %v1199_v54 = vpop.f32.mrb[12].mxu1  ;;  %955 = vst.msk [vmem:[%s1455_s12 + $0x78] sm:$0xff] %vm939_vm2, %v872_v51 }
 0x141   : > { %v933_v55 = vadd.f32 %v1199_v54, %v1450_v60  ;;  %v924_v56 = vpop.f32.mrb[13].mxu1  ;;  %953 = vst.msk [vmem:[%s1455_s12 + $0x68] sm:$0xff] %vm939_vm2, %v864_v53 }
 0x142   : > { %v925_v13 = vadd.f32 %v1450_v60, %v924_v56  ;;  %v1200_v57 = vpop.f32.mrb[14].mxu1 }
 0x143   : > { %970 = vst.msk [vmem:[%s1455_s12 + $0xf0] sm:$0xff] %vm939_vm2, %v933_v55  ;;  %v936_v58 = vadd.f32 %v1200_v57, %v1450_v60  ;;  %v927_v59 = vpop.f32.mrb[15].mxu1 }
 0x144   : > { %968 = vst.msk [vmem:[%s1455_s12 + $0xe0] sm:$0xff] %vm939_vm2, %v925_v13  ;;  %v928_v61 = vadd.f32 %v1450_v60, %v927_v59 }
 0x145   : > { %971 = vst.msk [vmem:[%s1455_s12 + $0xf8] sm:$0xff] %vm939_vm2, %v936_v58 }
 0x146   : > { %969 = vst.msk [vmem:[%s1455_s12 + $0xe8] sm:$0xff] %vm939_vm2, %v928_v61 }
 0x147 PF: > { %s15_s18 = sadd.s32 1, %s1222_s18  }
 0x148   : > { %p12_p4 = scmp.ge.s32.totalorder %s15_s18, 4  }
 0x14a   :  { %14 = sbr.rel (!%p12_p4) target bundleno = 1 (0x1), region = 71 }

// kernel: fcnn_forward.5
= control target key start
LH: loop header
LB: loop body
LE: loop exit
PB: predicated region body
PF: predicated region fallthrough
CT: control target
= control target key end

     0   :  { %s2750_s21 = smov 0   ;;  %s3799_s0 = inlined_call_operand.vmem [shape: bf16[2,18,18,8], index: 0, kind: input, shape index: {}]   ;;  %s3800_s1 = inlined_call_operand.vmem [shape: f32[1,1,8], index: 1, kind: input, shape index: {}]   ;;  %s3801_s2 = inlined_call_operand.vmem [shape: f32[1,1,8], index: 2, kind: input, shape index: {}]   ;;  %s3802_s3 = inlined_call_operand.vmem [shape: bf16[72,32], index: 3, kind: input, shape index: {}]   ;;  %s3803_s4 = inlined_call_operand.vmem [shape: f32[1,32], index: 4, kind: input, shape index: {}]   ;;  %s3804_s5 = inlined_call_operand.vmem [shape: bf16[2,18,18,32], index: 5, kind: output, shape index: {0}]   ;;  %s3805_s6 = inlined_call_operand.vmem [shape: f32[2,2,32], index: 6, kind: output, shape index: {1}]  }
   0x1 LB: > { %s2351_s1 = sadd.s32 4294967295, %s2704_s21   ;;  %p2355_p0 = scmp.ge.s32.totalorder %s2704_s21, 1  ;;  %s2704_s21 = sphi %s2750_s21, %s17_s21  }
   0x2   : > { %p215_p1 = scmp.lt.s32.totalorder %s2704_s21, 3 }
   0x4   : > { %p216_p2 = pnand %p2355_p0, %p215_p1 }
   0x5   : > { %p249_p3 = scmp.lt.s32.totalorder (!%p216_p2), %s2351_s1, 1  ;;  %vm738_vm0 = vcmask (!%p216_p2), 1046528   ;;  %s2706_s25 = smov (!%p216_p2), 24   ;;  %vm513_vm1 = vsmask.f32 (!%p216_p2), 7424  ;;  %v2676_v44 = vld [vmem:[%s3802_s3] sm:$0xff] (!%p216_p2)  }
   0x6   : > { %219 = sbr.rel (%p216_p2) target bundleno = 636 (0x27c), region = 40  ;;  %s2707_s26 = smov (!%p216_p2), 40   ;;  %2584 = vmatprep.subr.bf16.mxu0 (!%p216_p2), %v2676_v44  ;;  %v2677_v45 = vld [vmem:[%s3802_s3 + $0x8] sm:$0xff] (!%p216_p2)   ;;  %2626 = vmatprep.subr.bf16.mxu1 (!%p216_p2), %v2676_v44  ;;  %v2678_v47 = vld [vmem:[%s3802_s3 + $0x10] sm:$0xff] (!%p216_p2)   ;;  %v2680_v51 = vld [vmem:[%s3802_s3 + $0x18] sm:$0xff] (!%p216_p2)   ;;  %vm1387_vm2 = vcmask (!%p216_p2), 1043456  }
   0x7   : > { %s2708_s27 = smov (!%p216_p2), 16   ;;  %s2709_s28 = smov (!%p216_p2), 8   ;;  %2585 = vmatpush3.bf16.msra.mxu0 (!%p216_p2), %v2676_v44  ;;  %2631 = vmatpush3.bf16.msra.mxu1 (!%p216_p2), %v2676_v44  ;;  %v2682_v55 = vld [vmem:[%s3802_s3 + $0x20] ss:$0 sps:$4 sm:$0xff] (!%p216_p2)   ;;  %vm1057_vm3 = vcmask (!%p216_p2), 64512   ;;  %vm1090_vm4 = vcmask (!%p216_p2), 130048  }
   0x8   : > { %s2710_s29 = smov (!%p216_p2), 32   ;;  %s2711_s8 = smov (!%p216_p2), 48   ;;  %2586 = vmatprep.subr.bf16.mxu0 (!%p216_p2), %v2677_v45  ;;  %2627 = vmatprep.subr.bf16.mxu1 (!%p216_p2), %v2677_v45  ;;  %v1389_v59 = vsel (!%p216_p2), %vm1387_vm2, %v2682_v55, 0  ;;  %vm1123_vm5 = vcmask (!%p216_p2), 195584   ;;  %vm1156_vm6 = vcmask (!%p216_p2), 261120   ;;  %vm1189_vm7 = vcmask (!%p216_p2), 326656  }
   0x9   : > { %s2712_s13 = smov (!%p216_p2), 56   ;;  %s2713_s16 = smov (!%p216_p2), 64   ;;  %vm1222_vm8 = vcmask (!%p216_p2), 392192   ;;  %vm1255_vm9 = vcmask (!%p216_p2), 457728   ;;  %vm1288_vm10 = vcmask (!%p216_p2), 523264   ;;  %vm1354_vm11 = vcmask (!%p216_p2), 588800  }
   0xa   : > { %vm329_vm12 = vcmask (!%p216_p2), 257024   ;;  %vm332_vm13 = vcmask (!%p216_p2), 253952   ;;  %vm2145_vm14 = vsmask.f32 (!%p216_p2), 7938  ;;  %vm1820_vm15 = vsmask.f32 (!%p216_p2), 256 }
   0xb   : > { %2587 = vmatpush3.bf16.msra.mxu0 (!%p216_p2), %v2677_v45  ;;  %2632 = vmatpush3.bf16.msra.mxu1 (!%p216_p2), %v2677_v45 }
   0xc   : > { %2588 = vmatprep.subr.bf16.mxu0 (!%p216_p2), %v2678_v47  ;;  %2628 = vmatprep.subr.bf16.mxu1 (!%p216_p2), %v2678_v47 }
   0xd   : > { %s3813_s1 = smov (!%p249_p3, %s2351_s1), 1 }
   0xe   : > { %s2638_s2 = smul.u32 216, %s3813_s1 }
   0xf   : > { %2589 = vmatpush3.bf16.msra.mxu0 %v2678_v47  ;;  %2633 = vmatpush3.bf16.msra.mxu1 %v2678_v47 }
  0x10   : > { %s2766_s24 = scalar_lea.vmem %s3799_s0, %s2638_s2  ;;  %2590 = vmatprep.subr.bf16.mxu0 %v2680_v51  ;;  %2629 = vmatprep.subr.bf16.mxu1 %v2680_v51  ;;  %s3169_s22 = scalar_lea.vmem %s3804_s5, %s2638_s2 }
  0x11   : > { %v2769_v0 = vld [vmem:[%s2766_s24 + $0x18] sm:$0xff]   ;;  %v2772_v1 = vld [vmem:[%s2766_s24 + $0xc] sm:$0xff]   ;;  %v2658_v2 = vld [vmem:[%s2766_s24 + $0x14] ss:$0 sps:$4 sm:$0x11]  }
  0x12   : > { %826 = vrot.lane.b32.xlu1 %v2769_v0, %s2706_s25  ;;  %v2778_v3 = vld [vmem:[%s2766_s24] sm:$0xff]   ;;  %824 = vrot.lane.b32.xlu0 %v2772_v1, %s2706_s25  ;;  %v742_v4 = vrot.slane %v2772_v1, 1  ;;  %v743_v5 = vrot.slane %v2658_v2, 1  ;;  %v2660_v6 = vld [vmem:[%s2766_s24 + $0x8] ss:$0 sps:$4 sm:$0x11]  }
  0x13   : > { %v739_v7 = vrot.slane %v2778_v3, 1  ;;  %v515_v8 = vshrl.u32 %v2778_v3, 16  ;;  %v517_v9 = vshll.u32 %v2778_v3, 16  ;;  %v527_v10 = vshrl.u32 %v2772_v1, 16  ;;  %v2798_v30 = vld [vmem:[%s2766_s24 + $0x24] sm:$0xff]   ;;  %v2831_v50 = vld [vmem:[%s2766_s24 + $0x30] sm:$0xff]   ;;  %2591 = vmatpush3.bf16.msra.mxu0 %v2680_v51  ;;  %2634 = vmatpush3.bf16.msra.mxu1 %v2680_v51 }
  0x14   : > { %v744_v11 = vsel %vm738_vm0, %v742_v4, %v743_v5  ;;  %v740_v12 = vrot.slane %v2660_v6, 1  ;;  %v522_v13 = vshll.u32 %v2660_v6, 16  ;;  %v2661_v14 = vld [vmem:[%s2766_s24 + $0x20] ss:$0 sps:$4 sm:$0x11]   ;;  %v529_v15 = vshll.u32 %v2772_v1, 16  ;;  %2636 = vmatprep.subr.msk.bf16.mxu0 %vm1387_vm2, %v2682_v55  ;;  %2637 = vmatprep.subr.msk.bf16.mxu1 %vm1387_vm2, %v2682_v55 }
  0x15   : > { %v519_v16 = vrot.slane %v517_v9, 1  ;;  %v534_v17 = vshll.u32 %v2658_v2, 16  ;;  %v541_v18 = vshll.u32 %v2769_v0, 16  ;;  %v745_v23 = vrot.slane %v2769_v0, 1  ;;  %v2850_v62 = vld [vmem:[%s2766_s24 + $0x3c] sm:$0xff]   ;;  %v2926_v51 = vld [vmem:[%s2766_s24 + $0x6c] sm:$0xff]  }
  0x16   : > { %906 = vrot.lane.b32.xlu0 %v744_v11, %s2707_s26  ;;  %v741_v19 = vsel %vm738_vm0, %v739_v7, %v740_v12  ;;  %v524_v20 = vrot.slane %v522_v13, 1  ;;  %v531_v21 = vrot.slane %v529_v15, 1  ;;  %v539_v25 = vshrl.u32 %v2769_v0, 16  ;;  %v2663_v33 = vld [vmem:[%s2766_s24 + $0x2c] ss:$0 sps:$4 sm:$0x11]  }
  0x17   : > { %787 = vrot.lane.b32.xlu1 %v741_v19, %s2708_s27  ;;  %v520_v22 = vor.u32 %v519_v16, %v515_v8  ;;  %v536_v24 = vrot.slane %v534_v17, 1  ;;  %v746_v26 = vrot.slane %v2661_v14, 1  ;;  %v543_v28 = vrot.slane %v541_v18, 1  ;;  %v2665_v53 = vld [vmem:[%s2766_s24 + $0x38] ss:$0 sps:$4 sm:$0x11]   ;;  %2593 = vmatpush3.bf16.msra.mxu0 %v1389_v59 }
  0x18   : > { %v532_v27 = vor.u32 %v531_v21, %v527_v10  ;;  %v546_v29 = vshll.u32 %v2661_v14, 16  ;;  %v553_v37 = vshll.u32 %v2798_v30, 16  ;;  %v551_v39 = vshrl.u32 %v2798_v30, 16  ;;  %2635 = vmatpush3.bf16.msra.mxu1 %v1389_v59  ;;  %v2667_v5 = vld [vmem:[%s2766_s24 + $0x44] ss:$0 sps:$4 sm:$0x11]  }
  0x19   : > { %v525_v31 = vsel %vm513_vm1, %v520_v22, %v524_v20  ;;  %v747_v34 = vsel %vm738_vm0, %v745_v23, %v746_v26  ;;  %v544_v35 = vor.u32 %v543_v28, %v539_v25  ;;  %v558_v41 = vshll.u32 %v2663_v33, 16  ;;  %v2875_v16 = vld [vmem:[%s2766_s24 + $0x48] sm:$0xff]   ;;  %v2669_v18 = vld [vmem:[%s2766_s24 + $0x50] ss:$0 sps:$4 sm:$0x11]   ;;  %v2888_v25 = vld [vmem:[%s2766_s24 + $0x54] sm:$0xff]  }
  0x1a   : > { %706 = vrot.lane.b32.xlu0 %v525_v31, %s2709_s28  ;;  %v537_v32 = vsel %vm513_vm1, %v532_v27, %v536_v24  ;;  %v548_v36 = vrot.slane %v546_v29, 1  ;;  %v555_v40 = vrot.slane %v553_v37, 1  ;;  %v748_v48 = vrot.slane %v2798_v30, 1  ;;  %v2671_v29 = vld [vmem:[%s2766_s24 + $0x5c] ss:$0 sps:$4 sm:$0x11]  }
  0x1b   : > { %789 = vrot.lane.b32.xlu1 %v744_v11, %s2708_s27  ;;  %v560_v43 = vrot.slane %v558_v41, 1  ;;  %v749_v49 = vrot.slane %v2663_v33, 1  ;;  %v565_v54 = vshll.u32 %v2831_v50, 16  ;;  %v563_v56 = vshrl.u32 %v2831_v50, 16  ;;  %v2913_v41 = vld [vmem:[%s2766_s24 + $0x60] sm:$0xff]  }
  0x1c   : > { %v549_v38 = vsel %vm513_vm1, %v544_v35, %v548_v36  ;;  %v556_v42 = vor.u32 %v555_v40, %v551_v39  ;;  %v570_v58 = vshll.u32 %v2665_v53, 16  ;;  %v751_v2 = vrot.slane %v2831_v50, 1  ;;  %v2675_v55 = vld [vmem:[%s2766_s24 + $0x74] ss:$0 sps:$4 sm:$0x11]  }
  0x1d   : > { %v750_v52 = vsel %vm738_vm0, %v748_v48, %v749_v49  ;;  %v567_v57 = vrot.slane %v565_v54, 1  ;;  %v752_v4 = vrot.slane %v2665_v53, 1  ;;  %v577_v6 = vshll.u32 %v2850_v62, 16 }
  0x1e   : > { %708 = vrot.lane.b32.xlu0 %v537_v32, %s2709_s28  ;;  %v561_v46 = vsel %vm513_vm1, %v556_v42, %v560_v43  ;;  %v572_v61 = vrot.slane %v570_v58, 1  ;;  %v575_v8 = vshrl.u32 %v2850_v62, 16  ;;  %v582_v10 = vshll.u32 %v2667_v5, 16  ;;  %v2673_v43 = vld [vmem:[%s2766_s24 + $0x68] ss:$0 sps:$4 sm:$0x11]  }
  0x1f   : > { %908 = vrot.lane.b32.xlu1 %v747_v34, %s2707_s26  ;;  %v568_v60 = vor.u32 %v567_v57, %v563_v56  ;;  %v753_v7 = vsel %vm738_vm0, %v751_v2, %v752_v4  ;;  %v579_v9 = vrot.slane %v577_v6, 1  ;;  %v754_v14 = vrot.slane %v2850_v62, 1 }
  0x20   : > { %v584_v12 = vrot.slane %v582_v10, 1  ;;  %v755_v15 = vrot.slane %v2667_v5, 1  ;;  %v589_v19 = vshll.u32 %v2875_v16, 16  ;;  %v587_v20 = vshrl.u32 %v2875_v16, 16 }
  0x21   : > { %v573_v63 = vsel %vm513_vm1, %v568_v60, %v572_v61  ;;  %v580_v11 = vor.u32 %v579_v9, %v575_v8  ;;  %v594_v22 = vshll.u32 %v2669_v18, 16  ;;  %v757_v27 = vrot.slane %v2875_v16, 1 }
  0x22   : > { %871 = vrot.lane.b32.xlu0 %v537_v32, %s2710_s29  ;;  %v756_v17 = vsel %vm738_vm0, %v754_v14, %v755_v15  ;;  %v591_v21 = vrot.slane %v589_v19, 1  ;;  %v758_v28 = vrot.slane %v2669_v18, 1  ;;  %v601_v31 = vshll.u32 %v2888_v25, 16  ;;  %v2681_v15 = vld [vmem:[%s2766_s24 + $0x80] ss:$0 sps:$4 sm:$0x11]  }
  0x23   : > { %873 = vrot.lane.b32.xlu1 %v549_v38, %s2710_s29  ;;  %v585_v13 = vsel %vm513_vm1, %v580_v11, %v584_v12  ;;  %v596_v24 = vrot.slane %v594_v22, 1  ;;  %v599_v33 = vshrl.u32 %v2888_v25, 16  ;;  %v606_v35 = vshll.u32 %v2671_v29, 16  ;;  %v2951_v11 = vld [vmem:[%s2766_s24 + $0x78] sm:$0xff]  }
  0x24   : > { %v592_v23 = vor.u32 %v591_v21, %v587_v20  ;;  %v759_v32 = vsel %vm738_vm0, %v757_v27, %v758_v28  ;;  %v760_v39 = vrot.slane %v2888_v25, 1  ;;  %v761_v40 = vrot.slane %v2671_v29, 1 }
  0x25   : > { %v608_v37 = vrot.slane %v606_v35, 1  ;;  %v613_v44 = vshll.u32 %v2913_v41, 16  ;;  %v611_v45 = vshrl.u32 %v2913_v41, 16  ;;  %v618_v47 = vshll.u32 %v2673_v43, 16 }
  0x26   : > { %943 = vrot.lane.b32.xlu0 %v2769_v0, %s2711_s8  ;;  %v597_v26 = vsel %vm513_vm1, %v592_v23, %v596_v24  ;;  %v762_v42 = vsel %vm738_vm0, %v760_v39, %v761_v40  ;;  %v763_v53 = vrot.slane %v2913_v41, 1  ;;  %v764_v54 = vrot.slane %v2673_v43, 1  ;;  %v2684_v40 = vld [vmem:[%s2766_s24 + $0x8c] ss:$0 sps:$4 sm:$0x11]  }
  0x27   : > { %945 = vrot.lane.b32.xlu1 %v2798_v30, %s2711_s8  ;;  %v620_v49 = vrot.slane %v618_v47, 1  ;;  %v625_v56 = vshll.u32 %v2926_v51, 16  ;;  %v623_v58 = vshrl.u32 %v2926_v51, 16  ;;  %v630_v60 = vshll.u32 %v2675_v55, 16 }
  0x28   : > { %v765_v57 = vsel %vm738_vm0, %v763_v53, %v764_v54  ;;  %v766_v8 = vrot.slane %v2926_v51, 1  ;;  %v767_v9 = vrot.slane %v2675_v55, 1  ;;  %v635_v21 = vshrl.u32 %v2951_v11, 16 }
  0x29   : > { %v627_v59 = vrot.slane %v625_v56, 1  ;;  %v632_v4 = vrot.slane %v630_v60, 1  ;;  %v642_v23 = vshll.u32 %v2681_v15, 16  ;;  %v769_v35 = vrot.slane %v2951_v11, 1 }
  0x2a   : > { %990 = vrot.lane.b32.xlu0 %v549_v38, %s2712_s13  ;;  %v654_v54 = vshll.u32 %v2684_v40, 16 }
  0x2b   : > { %992 = vrot.lane.b32.xlu1 %v561_v46, %s2712_s13  ;;  %v628_v2 = vor.u32 %v627_v59, %v623_v58 }
  0x2d   : > { %v633_v6 = vsel %vm513_vm1, %v628_v2, %v632_v4 }
  0x2e   : > { %1025 = vrot.lane.b32.xlu0 %v747_v34, %s2713_s16 }
  0x2f   : > { %710 = vrot.lane.b32.xlu1 %v549_v38, %s2709_s28 }
  0x32   : > { %1027 = vrot.lane.b32.xlu0 %v750_v52, %s2713_s16 }
  0x33   : > { %712 = vrot.lane.b32.xlu1 %v561_v46, %s2709_s28 }
  0x36   : > { %791 = vrot.lane.b32.xlu0 %v747_v34, %s2708_s27  ;;  %v603_v34 = vrot.slane %v601_v31, 1  ;;  %v2969_v31 = vld [vmem:[%s2766_s24 + $0x84] sm:$0xff]  }
  0x37   : > { %793 = vrot.lane.b32.xlu1 %v750_v52, %s2708_s27 }
  0x38   : > { %v604_v36 = vor.u32 %v603_v34, %v599_v33 }
  0x3a   : > { %828 = vrot.lane.b32.xlu0 %v2798_v30, %s2706_s25  ;;  %v609_v38 = vsel %vm513_vm1, %v604_v36, %v608_v37  ;;  %v770_v36 = vrot.slane %v2681_v15, 1 }
  0x3b   : > { %830 = vrot.lane.b32.xlu1 %v2831_v50, %s2706_s25 }
  0x3c   : > { %v771_v47 = vsel %vm738_vm0, %v769_v35, %v770_v36 }
  0x3e   : > { %875 = vrot.lane.b32.xlu0 %v561_v46, %s2710_s29  ;;  %v615_v46 = vrot.slane %v613_v44, 1 }
  0x3f   : > { %877 = vrot.lane.b32.xlu1 %v573_v63, %s2710_s29 }
  0x40   : > { %v616_v48 = vor.u32 %v615_v46, %v611_v45 }
  0x42   : > { %910 = vrot.lane.b32.xlu0 %v750_v52, %s2707_s26  ;;  %v621_v52 = vsel %vm513_vm1, %v616_v48, %v620_v49 }
  0x43   : > { %912 = vrot.lane.b32.xlu1 %v753_v7, %s2707_s26 }
  0x46   : > { %947 = vrot.lane.b32.xlu0 %v2831_v50, %s2711_s8 }
  0x47   : > { %949 = vrot.lane.b32.xlu1 %v2850_v62, %s2711_s8 }
  0x4a   : > { %994 = vrot.lane.b32.xlu0 %v573_v63, %s2712_s13 }
  0x4b   : > { %996 = vrot.lane.b32.xlu1 %v585_v13, %s2712_s13 }
  0x4e   : > { %1029 = vrot.lane.b32.xlu0 %v753_v7, %s2713_s16 }
  0x4f   : > { %714 = vrot.lane.b32.xlu1 %v573_v63, %s2709_s28 }
  0x52   : > { %1031 = vrot.lane.b32.xlu0 %v756_v17, %s2713_s16 }
  0x53   : > { %716 = vrot.lane.b32.xlu1 %v585_v13, %s2709_s28 }
  0x56   : > { %795 = vrot.lane.b32.xlu0 %v753_v7, %s2708_s27 }
  0x57   : > { %797 = vrot.lane.b32.xlu1 %v756_v17, %s2708_s27 }
  0x5a   : > { %832 = vrot.lane.b32.xlu0 %v2850_v62, %s2706_s25 }
  0x5b   : > { %834 = vrot.lane.b32.xlu1 %v2875_v16, %s2706_s25 }
  0x5e   : > { %879 = vrot.lane.b32.xlu0 %v585_v13, %s2710_s29  ;;  %v768_v13 = vsel %vm738_vm0, %v766_v8, %v767_v9  ;;  %v772_v8 = vrot.slane %v2969_v31, 1  ;;  %v773_v9 = vrot.slane %v2684_v40, 1 }
  0x5f   : > { %881 = vrot.lane.b32.xlu1 %v597_v26, %s2710_s29 }
  0x62   : > { %914 = vrot.lane.b32.xlu0 %v756_v17, %s2707_s26  ;;  %v637_v17 = vshll.u32 %v2951_v11, 16 }
  0x63   : > { %916 = vrot.lane.b32.xlu1 %v759_v32, %s2707_s26 }
  0x64   : > { %v639_v22 = vrot.slane %v637_v17, 1  ;;  %v2686_v17 = vld [vmem:[%s2766_s24 + $0x98] ss:$0 sps:$4 sm:$0x11]  }
  0x66   : > { %951 = vrot.lane.b32.xlu0 %v2875_v16, %s2711_s8  ;;  %v640_v29 = vor.u32 %v639_v22, %v635_v21 }
  0x67   : > { %953 = vrot.lane.b32.xlu1 %v2888_v25, %s2711_s8 }
  0x6a   : > { %998 = vrot.lane.b32.xlu0 %v597_v26, %s2712_s13 }
  0x6b   : > { %1000 = vrot.lane.b32.xlu1 %v609_v38, %s2712_s13 }
  0x6e   : > { %1033 = vrot.lane.b32.xlu0 %v759_v32, %s2713_s16 }
  0x6f   : > { %718 = vrot.lane.b32.xlu1 %v597_v26, %s2709_s28 }
  0x72   : > { %1035 = vrot.lane.b32.xlu0 %v762_v42, %s2713_s16 }
  0x73   : > { %720 = vrot.lane.b32.xlu1 %v609_v38, %s2709_s28 }
  0x76   : > { %799 = vrot.lane.b32.xlu0 %v759_v32, %s2708_s27 }
  0x77   : > { %801 = vrot.lane.b32.xlu1 %v762_v42, %s2708_s27 }
  0x7a   : > { %836 = vrot.lane.b32.xlu0 %v2888_v25, %s2706_s25 }
  0x7b   : > { %838 = vrot.lane.b32.xlu1 %v2913_v41, %s2706_s25 }
  0x7e   : > { %883 = vrot.lane.b32.xlu0 %v609_v38, %s2710_s29 }
  0x7f   : > { %885 = vrot.lane.b32.xlu1 %v621_v52, %s2710_s29 }
  0x82   : > { %918 = vrot.lane.b32.xlu0 %v762_v42, %s2707_s26  ;;  %v649_v42 = vshll.u32 %v2969_v31, 16 }
  0x83   : > { %920 = vrot.lane.b32.xlu1 %v765_v57, %s2707_s26 }
  0x84   : > { %v827_v61 = vpop.permute.xlu1 %826  ;;  %v825_v63 = vpop.permute.xlu0 %824  ;;  %v651_v53 = vrot.slane %v649_v42, 1 }
  0x86   : > { %955 = vrot.lane.b32.xlu0 %v2913_v41, %s2711_s8 }
  0x87   : > { %957 = vrot.lane.b32.xlu1 %v2926_v51, %s2711_s8 }
  0x88   : > { %v907_v5 = vpop.permute.xlu0 %906 }
  0x89   : > { %v788_v7 = vpop.permute.xlu1 %787 }
  0x8a   : > { %1002 = vrot.lane.b32.xlu0 %v621_v52, %s2712_s13 }
  0x8b   : > { %1004 = vrot.lane.b32.xlu1 %v633_v6, %s2712_s13 }
  0x8c   : > { %v707_v10 = vpop.permute.xlu0 %706 }
  0x8d   : > { %v790_v12 = vpop.permute.xlu1 %789  ;;  %v1059_v19 = vsel %vm1057_vm3, %v2778_v3, %v707_v10  ;;  %v644_v3 = vrot.slane %v642_v23, 1  ;;  %v666_v23 = vshll.u32 %v2686_v17, 16 }
  0x8e   : > { %1037 = vrot.lane.b32.xlu0 %v765_v57, %s2713_s16  ;;  %v1092_v27 = vsel %vm1090_vm4, %v1059_v19, %v788_v7 }
  0x8f   : > { %722 = vrot.lane.b32.xlu1 %v621_v52, %s2709_s28  ;;  %v1125_v34 = vsel %vm1123_vm5, %v1092_v27, %v825_v63  ;;  %v645_v39 = vsel %vm513_vm1, %v640_v29, %v644_v3  ;;  %v647_v52 = vshrl.u32 %v2969_v31, 16  ;;  %v656_v63 = vrot.slane %v654_v54, 1  ;;  %v3022_v29 = vld [vmem:[%s2766_s24 + $0x9c] sm:$0xff]  }
  0x90   : > { %v709_v14 = vpop.permute.xlu0 %708 }
  0x91   : > { %v909_v18 = vpop.permute.xlu1 %908  ;;  %v1061_v26 = vsel %vm1057_vm3, %v2772_v1, %v709_v14  ;;  %v774_v14 = vsel %vm738_vm0, %v772_v8, %v773_v9  ;;  %v778_v8 = vrot.slane %v3022_v29, 1 }
  0x92   : > { %1039 = vrot.lane.b32.xlu0 %v768_v13, %s2713_s16  ;;  %v1094_v32 = vsel %vm1090_vm4, %v1061_v26, %v790_v12  ;;  %v3009_v12 = vld [vmem:[%s2766_s24 + $0x90] sm:$0xff]  }
  0x93   : > { %724 = vrot.lane.b32.xlu1 %v633_v6, %s2709_s28  ;;  %v1127_v37 = vsel %vm1123_vm5, %v1094_v32, %v827_v61  ;;  %v652_v61 = vor.u32 %v651_v53, %v647_v52  ;;  %v659_v21 = vshrl.u32 %v3009_v12, 16 }
  0x94   : > { %v872_v20 = vpop.permute.xlu0 %871 }
  0x95   : > { %v874_v24 = vpop.permute.xlu1 %873  ;;  %v1158_v1 = vsel %vm1156_vm6, %v1125_v34, %v872_v20  ;;  %v775_v34 = vrot.slane %v3009_v12, 1 }
  0x96   : > { %803 = vrot.lane.b32.xlu0 %v765_v57, %s2708_s27  ;;  %v1191_v44 = vsel %vm1189_vm7, %v1158_v1, %v907_v5  ;;  %v1160_v45 = vsel %vm1156_vm6, %v1127_v37, %v874_v24  ;;  %v776_v1 = vrot.slane %v2686_v17, 1 }
  0x97   : > { %805 = vrot.lane.b32.xlu1 %v768_v13, %s2708_s27  ;;  %v1193_v57 = vsel %vm1189_vm7, %v1160_v45, %v909_v18  ;;  %v661_v18 = vshll.u32 %v3009_v12, 16 }
  0x98   : > { %v944_v28 = vpop.permute.xlu0 %943 }
  0x99   : > { %v946_v33 = vpop.permute.xlu1 %945  ;;  %v1224_v46 = vsel %vm1222_vm8, %v1191_v44, %v944_v28  ;;  %v663_v22 = vrot.slane %v661_v18, 1  ;;  %v668_v28 = vrot.slane %v666_v23, 1  ;;  %v2690_v18 = vld [vmem:[%s2766_s24 + $0xb0] ss:$0 sps:$4 sm:$0x11]  }
  0x9a   : > { %840 = vrot.lane.b32.xlu0 %v2926_v51, %s2706_s25  ;;  %v1226_v58 = vsel %vm1222_vm8, %v1193_v57, %v946_v33 }
  0x9b   : > { %842 = vrot.lane.b32.xlu1 %v2951_v11, %s2706_s25  ;;  %v664_v27 = vor.u32 %v663_v22, %v659_v21 }
  0x9c   : > { %v991_v38 = vpop.permute.xlu0 %990 }
  0x9d   : > { %v993_v43 = vpop.permute.xlu1 %992  ;;  %v1257_v48 = vsel %vm1255_vm9, %v1224_v46, %v991_v38  ;;  %v669_v37 = vsel %vm513_vm1, %v664_v27, %v668_v28  ;;  %v2688_v38 = vld [vmem:[%s2766_s24 + $0xa4] ss:$0 sps:$4 sm:$0x11]   ;;  %v777_v46 = vsel %vm738_vm0, %v775_v34, %v776_v1 }
  0x9e   : > { %887 = vrot.lane.b32.xlu0 %v633_v6, %s2710_s29  ;;  %v1259_v59 = vsel %vm1255_vm9, %v1226_v58, %v993_v43  ;;  %v657_v6 = vsel %vm513_vm1, %v652_v61, %v656_v63  ;;  %v678_v53 = vshll.u32 %v2688_v38, 16  ;;  %v779_v9 = vrot.slane %v2688_v38, 1 }
  0x9f   : > { %889 = vrot.lane.b32.xlu1 %v645_v39, %s2710_s29 }
  0xa0   : > { %v1026_v49 = vpop.permute.xlu0 %1025  ;;  %v680_v63 = vrot.slane %v678_v53, 1 }
  0xa1   : > { %v711_v55 = vpop.permute.xlu1 %710  ;;  %v1290_v56 = vsel %vm1288_vm10, %v1257_v48, %v1026_v49 }
  0xa2   : > { %922 = vrot.lane.b32.xlu0 %v768_v13, %s2707_s26  ;;  %2594 = vmatprep.mubr.msk.bf16.mxu0 %vm1354_vm11, %v1290_v56  ;;  %v1063_v32 = vsel %vm1057_vm3, %v2769_v0, %v711_v55 }
  0xa3   : > { %924 = vrot.lane.b32.xlu1 %v771_v47, %s2707_s26 }
  0xa4   : > { %v1028_v60 = vpop.permute.xlu0 %1027 }
  0xa5   : > { %v713_v2 = vpop.permute.xlu1 %712  ;;  %v1292_v4 = vsel %vm1288_vm10, %v1259_v59, %v1028_v60 }
  0xa6   : > { %959 = vrot.lane.b32.xlu0 %v2951_v11, %s2711_s8  ;;  %2595 = vmatmul.mubr.msk.bf16.vlgmr.msra.gmra.mrb[0].mxu0 %vm1354_vm11, %v1292_v4  ;;  %v1065_v42 = vsel %vm1057_vm3, %v2798_v30, %v713_v2 }
  0xa7   : > { %961 = vrot.lane.b32.xlu1 %v2969_v31, %s2711_s8 }
  0xa8   : > { %v792_v5 = vpop.permute.xlu0 %791 }
  0xa9   : > { %v794_v7 = vpop.permute.xlu1 %793  ;;  %v1096_v33 = vsel %vm1090_vm4, %v1063_v32, %v792_v5  ;;  %v3080_v32 = vld [vmem:[%s2766_s24 + $0xb4] sm:$0xff]  }
  0xaa   : > { %1006 = vrot.lane.b32.xlu0 %v645_v39, %s2712_s13  ;;  %v1098_v44 = vsel %vm1090_vm4, %v1065_v42, %v794_v7 }
  0xab   : > { %1008 = vrot.lane.b32.xlu1 %v657_v6, %s2712_s13 }
  0xac   : > { %v829_v10 = vpop.permute.xlu0 %828 }
  0xad   : > { %v831_v13 = vpop.permute.xlu1 %830  ;;  %v1129_v35 = vsel %vm1123_vm5, %v1096_v33, %v829_v10 }
  0xae   : > { %1041 = vrot.lane.b32.xlu0 %v771_v47, %s2713_s16  ;;  %v1131_v48 = vsel %vm1123_vm5, %v1098_v44, %v831_v13  ;;  %v3067_v13 = vld [vmem:[%s2766_s24 + $0xa8] sm:$0xff]  }
  0xaf   : > { %726 = vrot.lane.b32.xlu1 %v645_v39, %s2709_s28  ;;  %v673_v39 = vshll.u32 %v3022_v29, 16  ;;  %v683_v22 = vshrl.u32 %v3067_v13, 16 }
  0xb0   : > { %v876_v15 = vpop.permute.xlu0 %875 }
  0xb1   : > { %v878_v19 = vpop.permute.xlu1 %877  ;;  %v1162_v0 = vsel %vm1156_vm6, %v1129_v35, %v876_v15  ;;  %v675_v30 = vrot.slane %v673_v39, 1  ;;  %v780_v15 = vsel %vm738_vm0, %v778_v8, %v779_v9  ;;  %v781_v35 = vrot.slane %v3067_v13, 1 }
  0xb2   : > { %1043 = vrot.lane.b32.xlu0 %v774_v14, %s2713_s16  ;;  %v1164_v54 = vsel %vm1156_vm6, %v1131_v48, %v878_v19  ;;  %v685_v19 = vshll.u32 %v3067_v13, 16  ;;  %v695_v48 = vshrl.u32 %v3080_v32, 16  ;;  %v784_v8 = vrot.slane %v3080_v32, 1 }
  0xb3   : > { %728 = vrot.lane.b32.xlu1 %v657_v6, %s2709_s28 }
  0xb4   : > { %v911_v20 = vpop.permute.xlu0 %910  ;;  %v687_v23 = vrot.slane %v685_v19, 1  ;;  %v3146_v19 = vld [vmem:[%s2766_s24 + $0xc8] ss:$0 sps:$4 sm:$0x11]  }
  0xb5   : > { %v913_v24 = vpop.permute.xlu1 %912  ;;  %v1195_v43 = vsel %vm1189_vm7, %v1162_v0, %v911_v20  ;;  %v2692_v0 = vld [vmem:[%s2766_s24 + $0xbc] ss:$0 sps:$4 sm:$0x11]  }
  0xb6   : > { %807 = vrot.lane.b32.xlu0 %v771_v47, %s2708_s27  ;;  %v671_v47 = vshrl.u32 %v3022_v29, 16  ;;  %v1197_v57 = vsel %vm1189_vm7, %v1164_v54, %v913_v24  ;;  %v690_v24 = vshll.u32 %v2690_v18, 16  ;;  %v688_v28 = vor.u32 %v687_v23, %v683_v22 }
  0xb7   : > { %809 = vrot.lane.b32.xlu1 %v774_v14, %s2708_s27  ;;  %v702_v53 = vshll.u32 %v2692_v0, 16  ;;  %v785_v9 = vrot.slane %v2692_v0, 1 }
  0xb8   : > { %v948_v26 = vpop.permute.xlu0 %947  ;;  %v676_v61 = vor.u32 %v675_v30, %v671_v47 }
  0xb9   : > { %v950_v3 = vpop.permute.xlu1 %949  ;;  %v1228_v45 = vsel %vm1222_vm8, %v1195_v43, %v948_v26 }
  0xba   : > { %844 = vrot.lane.b32.xlu0 %v2969_v31, %s2706_s25  ;;  %v1230_v58 = vsel %vm1222_vm8, %v1197_v57, %v950_v3  ;;  %v692_v3 = vrot.slane %v690_v24, 1 }
  0xbb   : > { %846 = vrot.lane.b32.xlu1 %v3009_v12, %s2706_s25 }
  0xbc   : > { %v995_v36 = vpop.permute.xlu0 %994  ;;  %v693_v39 = vsel %vm513_vm1, %v688_v28, %v692_v3 }
  0xbd   : > { %v997_v40 = vpop.permute.xlu1 %996  ;;  %v1261_v49 = vsel %vm1255_vm9, %v1228_v45, %v995_v36  ;;  %v782_v36 = vrot.slane %v2690_v18, 1 }
  0xbe   : > { %891 = vrot.lane.b32.xlu0 %v657_v6, %s2710_s29  ;;  %v1263_v59 = vsel %vm1255_vm9, %v1230_v58, %v997_v40  ;;  %v681_v6 = vsel %vm513_vm1, %v676_v61, %v680_v63  ;;  %v697_v40 = vshll.u32 %v3080_v32, 16  ;;  %v704_v63 = vrot.slane %v702_v53, 1 }
  0xbf   : > { %893 = vrot.lane.b32.xlu1 %v669_v37, %s2710_s29  ;;  %v783_v47 = vsel %vm738_vm0, %v781_v35, %v782_v36 }
  0xc0   : > { %v1030_v52 = vpop.permute.xlu0 %1029 }
  0xc1   : > { %v715_v55 = vpop.permute.xlu1 %714  ;;  %v1294_v56 = vsel %vm1288_vm10, %v1261_v49, %v1030_v52 }
  0xc2   : > { %926 = vrot.lane.b32.xlu0 %v774_v14, %s2707_s26  ;;  %2598 = vmatprep.mubr.msk.bf16.mxu0 %vm1354_vm11, %v1294_v56  ;;  %v1067_v34 = vsel %vm1057_vm3, %v2831_v50, %v715_v55 }
  0xc3   : > { %928 = vrot.lane.b32.xlu1 %v777_v46, %s2707_s26 }
  0xc4   : > { %v1032_v60 = vpop.permute.xlu0 %1031 }
  0xc5   : > { %v717_v2 = vpop.permute.xlu1 %716  ;;  %v1296_v4 = vsel %vm1288_vm10, %v1263_v59, %v1032_v60 }
  0xc6   : > { %963 = vrot.lane.b32.xlu0 %v3009_v12, %s2711_s8  ;;  %2599 = vmatmul.mubr.msk.bf16.gmra.mrb[4].mxu0 %vm1354_vm11, %v1296_v4  ;;  %v1069_v43 = vsel %vm1057_vm3, %v2850_v62, %v717_v2  ;;  %v699_v62 = vrot.slane %v697_v40, 1 }
  0xc7   : > { %965 = vrot.lane.b32.xlu1 %v3022_v29, %s2711_s8 }
  0xc8   : > { %v796_v5 = vpop.permute.xlu0 %795  ;;  %v700_v61 = vor.u32 %v699_v62, %v695_v48 }
  0xc9   : > { %v798_v7 = vpop.permute.xlu1 %797  ;;  %v1100_v1 = vsel %vm1090_vm4, %v1067_v34, %v796_v5  ;;  %v3172_v34 = vld [vmem:[%s2766_s24 + $0xcc] sm:$0xff]  }
  0xca   : > { %1010 = vrot.lane.b32.xlu0 %v669_v37, %s2712_s13  ;;  %v1102_v45 = vsel %vm1090_vm4, %v1069_v43, %v798_v7 }
  0xcb   : > { %1012 = vrot.lane.b32.xlu1 %v681_v6, %s2712_s13 }
  0xcc   : > { %v833_v10 = vpop.permute.xlu0 %832 }
  0xcd   : > { %v835_v14 = vpop.permute.xlu1 %834 }
  0xce   : > { %1045 = vrot.lane.b32.xlu0 %v777_v46, %s2713_s16  ;;  %v1135_v49 = vsel %vm1123_vm5, %v1102_v45, %v835_v14  ;;  %v3134_v14 = vld [vmem:[%s2766_s24 + $0xc0] sm:$0xff]  }
  0xcf   : > { %730 = vrot.lane.b32.xlu1 %v669_v37, %s2709_s28  ;;  %v1133_v37 = vsel %vm1123_vm5, %v1100_v1, %v833_v10  ;;  %v860_v23 = vshrl.u32 %v3134_v14, 16 }
  0xd0   : > { %v880_v17 = vpop.permute.xlu0 %879 }
  0xd1   : > { %v882_v20 = vpop.permute.xlu1 %881  ;;  %v1166_v50 = vsel %vm1156_vm6, %v1133_v37, %v880_v17  ;;  %v3141_v17 = vsel %vm738_vm0, %v784_v8, %v785_v9  ;;  %v903_v37 = vrot.slane %v3134_v14, 1  ;;  %v1022_v8 = vrot.slane %v3172_v34, 1 }
  0xd2   : > { %1047 = vrot.lane.b32.xlu0 %v780_v15, %s2713_s16  ;;  %v1168_v54 = vsel %vm1156_vm6, %v1135_v49, %v882_v20  ;;  %v862_v20 = vshll.u32 %v3134_v14, 16  ;;  %v979_v49 = vshrl.u32 %v3172_v34, 16 }
  0xd3   : > { %732 = vrot.lane.b32.xlu1 %v681_v6, %s2709_s28 }
  0xd4   : > { %v915_v21 = vpop.permute.xlu0 %914  ;;  %v864_v24 = vrot.slane %v862_v20, 1 }
  0xd5   : > { %v917_v26 = vpop.permute.xlu1 %916  ;;  %v1199_v44 = vsel %vm1189_vm7, %v1166_v50, %v915_v21  ;;  %v3297_v50 = vld [vmem:[%s2766_s24 + $0xd4] ss:$0 sps:$4 sm:$0x11]  }
  0xd6   : > { %811 = vrot.lane.b32.xlu0 %v777_v46, %s2708_s27  ;;  %v1201_v57 = vsel %vm1189_vm7, %v1168_v54, %v917_v26  ;;  %v867_v26 = vshll.u32 %v3146_v19, 16  ;;  %v865_v3 = vor.u32 %v864_v24, %v860_v23  ;;  %v986_v54 = vshll.u32 %v3297_v50, 16 }
  0xd7   : > { %813 = vrot.lane.b32.xlu1 %v780_v15, %s2708_s27  ;;  %v1023_v9 = vrot.slane %v3297_v50, 1 }
  0xd8   : > { %v952_v27 = vpop.permute.xlu0 %951 }
  0xd9   : > { %v954_v33 = vpop.permute.xlu1 %953  ;;  %v1232_v46 = vsel %vm1222_vm8, %v1199_v44, %v952_v27 }
  0xda   : > { %848 = vrot.lane.b32.xlu0 %v3022_v29, %s2706_s25  ;;  %v1234_v58 = vsel %vm1222_vm8, %v1201_v57, %v954_v33  ;;  %v869_v33 = vrot.slane %v867_v26, 1 }
  0xdb   : > { %850 = vrot.lane.b32.xlu1 %v3067_v13, %s2706_s25 }
  0xdc   : > { %v999_v38 = vpop.permute.xlu0 %998  ;;  %v870_v40 = vsel %vm513_vm1, %v865_v3, %v869_v33 }
  0xdd   : > { %v1001_v42 = vpop.permute.xlu1 %1000  ;;  %v1265_v52 = vsel %vm1255_vm9, %v1232_v46, %v999_v38  ;;  %v904_v38 = vrot.slane %v3146_v19, 1 }
  0xde   : > { %895 = vrot.lane.b32.xlu0 %v681_v6, %s2710_s29  ;;  %v1267_v59 = vsel %vm1255_vm9, %v1234_v58, %v1001_v42  ;;  %v3123_v6 = vsel %vm513_vm1, %v700_v61, %v704_v63  ;;  %v981_v42 = vshll.u32 %v3172_v34, 16 }
  0xdf   : > { %897 = vrot.lane.b32.xlu1 %v693_v39, %s2710_s29 }
  0xe0   : > { %v1034_v30 = vpop.permute.xlu0 %1033  ;;  %v983_v53 = vrot.slane %v981_v42, 1 }
  0xe1   : > { %v719_v55 = vpop.permute.xlu1 %718  ;;  %v1298_v56 = vsel %vm1288_vm10, %v1265_v52, %v1034_v30 }
  0xe2   : > { %930 = vrot.lane.b32.xlu0 %v780_v15, %s2707_s26  ;;  %2602 = vmatprep.mubr.msk.bf16.mxu0 %vm1354_vm11, %v1298_v56  ;;  %v1071_v35 = vsel %vm1057_vm3, %v2875_v16, %v719_v55  ;;  %v2714_v16 = vmov 4048220490   ;;  %v984_v63 = vor.u32 %v983_v53, %v979_v49 }
  0xe3   : > { %932 = vrot.lane.b32.xlu1 %v783_v47, %s2707_s26  ;;  %330 = vst.msk [vmem:[%s3169_s22] sm:$0xf] %vm329_vm12, %v2714_v16  ;;  %331 = vst.msk [vmem:[%s3169_s22 + $0x4] sm:$0xf] %vm329_vm12, %v2714_v16 }
  0xe4   : > { %v1036_v60 = vpop.permute.xlu0 %1035  ;;  %337 = vst.msk [vmem:[%s3169_s22 + $0x18] sm:$0xf] %vm329_vm12, %v2714_v16  ;;  %382 = vst.msk [vmem:[%s3169_s22 + $0xcc] sm:$0xf] %vm329_vm12, %v2714_v16 }
  0xe5   : > { %v3114_v2 = vpop.permute.xlu1 %720  ;;  %v1300_v4 = vsel %vm1288_vm10, %v1267_v59, %v1036_v60  ;;  %383 = vst.msk [vmem:[%s3169_s22 + $0xd0] sm:$0xf] %vm329_vm12, %v2714_v16  ;;  %334 = vst.msk [vmem:[%s3169_s22 + $0xc] sm:$0xf] %vm329_vm12, %v2714_v16 }
  0xe6   : > { %967 = vrot.lane.b32.xlu0 %v3067_v13, %s2711_s8  ;;  %2603 = vmatmul.mubr.msk.bf16.gmra.mrb[8].mxu0 %vm1354_vm11, %v1300_v4  ;;  %335 = vst.msk [vmem:[%s3169_s22 + $0x10] sm:$0xf] %vm329_vm12, %v2714_v16  ;;  %338 = vst.msk [vmem:[%s3169_s22 + $0x1c] sm:$0xf] %vm329_vm12, %v2714_v16  ;;  %v1073_v45 = vsel %vm1057_vm3, %v2888_v25, %v3114_v2  ;;  %v905_v25 = vsel %vm738_vm0, %v903_v37, %v904_v38  ;;  %v988_v2 = vrot.slane %v986_v54, 1 }
  0xe7   : > { %969 = vrot.lane.b32.xlu1 %v3080_v32, %s2711_s8  ;;  %340 = vst.msk [vmem:[%s3169_s22 + $0x24] sm:$0xf] %vm329_vm12, %v2714_v16  ;;  %341 = vst.msk [vmem:[%s3169_s22 + $0x28] sm:$0xf] %vm329_vm12, %v2714_v16 }
  0xe8   : > { %v800_v5 = vpop.permute.xlu0 %799  ;;  %343 = vst.msk [vmem:[%s3169_s22 + $0x30] sm:$0xf] %vm329_vm12, %v2714_v16  ;;  %344 = vst.msk [vmem:[%s3169_s22 + $0x34] sm:$0xf] %vm329_vm12, %v2714_v16 }
  0xe9   : > { %v3125_v7 = vpop.permute.xlu1 %801  ;;  %v1104_v36 = vsel %vm1090_vm4, %v1071_v35, %v800_v5  ;;  %346 = vst.msk [vmem:[%s3169_s22 + $0x3c] sm:$0xf] %vm329_vm12, %v2714_v16  ;;  %347 = vst.msk [vmem:[%s3169_s22 + $0x40] sm:$0xf] %vm329_vm12, %v2714_v16 }
  0xea   : > { %1014 = vrot.lane.b32.xlu0 %v693_v39, %s2712_s13  ;;  %349 = vst.msk [vmem:[%s3169_s22 + $0x48] sm:$0xf] %vm329_vm12, %v2714_v16  ;;  %350 = vst.msk [vmem:[%s3169_s22 + $0x4c] sm:$0xf] %vm329_vm12, %v2714_v16 }
  0xeb   : > { %1016 = vrot.lane.b32.xlu1 %v3123_v6, %s2712_s13  ;;  %352 = vst.msk [vmem:[%s3169_s22 + $0x54] sm:$0xf] %vm329_vm12, %v2714_v16  ;;  %353 = vst.msk [vmem:[%s3169_s22 + $0x58] sm:$0xf] %vm329_vm12, %v2714_v16 }
  0xec   : > { %v3131_v10 = vpop.permute.xlu0 %836  ;;  %355 = vst.msk [vmem:[%s3169_s22 + $0x60] sm:$0xf] %vm329_vm12, %v2714_v16  ;;  %356 = vst.msk [vmem:[%s3169_s22 + $0x64] sm:$0xf] %vm329_vm12, %v2714_v16 }
  0xed   : > { %v3136_v15 = vpop.permute.xlu1 %838  ;;  %358 = vst.msk [vmem:[%s3169_s22 + $0x6c] sm:$0xf] %vm329_vm12, %v2714_v16  ;;  %359 = vst.msk [vmem:[%s3169_s22 + $0x70] sm:$0xf] %vm329_vm12, %v2714_v16 }
  0xee   : > { %1049 = vrot.lane.b32.xlu0 %v783_v47, %s2713_s16  ;;  %361 = vst.msk [vmem:[%s3169_s22 + $0x78] sm:$0xf] %vm329_vm12, %v2714_v16  ;;  %362 = vst.msk [vmem:[%s3169_s22 + $0x7c] sm:$0xf] %vm329_vm12, %v2714_v16 }
  0xef   : > { %734 = vrot.lane.b32.xlu1 %v693_v39, %s2709_s28  ;;  %364 = vst.msk [vmem:[%s3169_s22 + $0x84] sm:$0xf] %vm329_vm12, %v2714_v16  ;;  %365 = vst.msk [vmem:[%s3169_s22 + $0x88] sm:$0xf] %vm329_vm12, %v2714_v16  ;;  %v1137_v39 = vsel %vm1123_vm5, %v1104_v36, %v3131_v10 }
  0xf0   : > { %v3143_v18 = vpop.permute.xlu0 %883  ;;  %367 = vst.msk [vmem:[%s3169_s22 + $0x90] sm:$0xf] %vm329_vm12, %v2714_v16  ;;  %368 = vst.msk [vmem:[%s3169_s22 + $0x94] sm:$0xf] %vm329_vm12, %v2714_v16 }
  0xf1   : > { %v3149_v21 = vpop.permute.xlu1 %885  ;;  %370 = vst.msk [vmem:[%s3169_s22 + $0x9c] sm:$0xf] %vm329_vm12, %v2714_v16  ;;  %371 = vst.msk [vmem:[%s3169_s22 + $0xa0] sm:$0xf] %vm329_vm12, %v2714_v16  ;;  %v1170_v43 = vsel %vm1156_vm6, %v1137_v39, %v3143_v18 }
  0xf2   : > { %1051 = vrot.lane.b32.xlu0 %v3141_v17, %s2713_s16  ;;  %373 = vst.msk [vmem:[%s3169_s22 + $0xa8] sm:$0xf] %vm329_vm12, %v2714_v16  ;;  %374 = vst.msk [vmem:[%s3169_s22 + $0xac] sm:$0xf] %vm329_vm12, %v2714_v16 }
  0xf3   : > { %736 = vrot.lane.b32.xlu1 %v3123_v6, %s2709_s28  ;;  %376 = vst.msk [vmem:[%s3169_s22 + $0xb4] sm:$0xf] %vm329_vm12, %v2714_v16  ;;  %377 = vst.msk [vmem:[%s3169_s22 + $0xb8] sm:$0xf] %vm329_vm12, %v2714_v16 }
  0xf4   : > { %v3155_v22 = vpop.permute.xlu0 %918  ;;  %379 = vst.msk [vmem:[%s3169_s22 + $0xc0] sm:$0xf] %vm329_vm12, %v2714_v16  ;;  %380 = vst.msk [vmem:[%s3169_s22 + $0xc4] sm:$0xf] %vm329_vm12, %v2714_v16 }
  0xf5   : > { %v3159_v27 = vpop.permute.xlu1 %920  ;;  %v1203_v46 = vsel %vm1189_vm7, %v1170_v43, %v3155_v22  ;;  %333 = vst.msk [vmem:[%s3169_s22 + $0x8] sm:$0x1] %vm332_vm13, %v2714_v16  ;;  %339 = vst.msk [vmem:[%s3169_s22 + $0x20] sm:$0x1] %vm332_vm13, %v2714_v16 }
  0xf6   : > { %815 = vrot.lane.b32.xlu0 %v783_v47, %s2708_s27  ;;  %v1106_v47 = vsel %vm1090_vm4, %v1073_v45, %v3125_v7  ;;  %384 = vst.msk [vmem:[%s3169_s22 + $0xd4] sm:$0x1] %vm332_vm13, %v2714_v16  ;;  %336 = vst.msk [vmem:[%s3169_s22 + $0x14] sm:$0x1] %vm332_vm13, %v2714_v16  ;;  %v989_v7 = vsel %vm513_vm1, %v984_v63, %v988_v2 }
  0xf7   : > { %817 = vrot.lane.b32.xlu1 %v3141_v17, %s2708_s27  ;;  %342 = vst.msk [vmem:[%s3169_s22 + $0x2c] sm:$0x1] %vm332_vm13, %v2714_v16  ;;  %345 = vst.msk [vmem:[%s3169_s22 + $0x38] sm:$0x1] %vm332_vm13, %v2714_v16  ;;  %v1139_v52 = vsel %vm1123_vm5, %v1106_v47, %v3136_v15 }
  0xf8   : > { %v956_v28 = vpop.permute.xlu0 %955  ;;  %348 = vst.msk [vmem:[%s3169_s22 + $0x44] sm:$0x1] %vm332_vm13, %v2714_v16  ;;  %351 = vst.msk [vmem:[%s3169_s22 + $0x50] sm:$0x1] %vm332_vm13, %v2714_v16  ;;  %v1172_v55 = vsel %vm1156_vm6, %v1139_v52, %v3149_v21 }
  0xf9   : > { %v3174_v1 = vpop.permute.xlu1 %957  ;;  %v1236_v48 = vsel %vm1222_vm8, %v1203_v46, %v956_v28  ;;  %354 = vst.msk [vmem:[%s3169_s22 + $0x5c] sm:$0x1] %vm332_vm13, %v2714_v16  ;;  %357 = vst.msk [vmem:[%s3169_s22 + $0x68] sm:$0x1] %vm332_vm13, %v2714_v16  ;;  %v1205_v58 = vsel %vm1189_vm7, %v1172_v55, %v3159_v27 }
  0xfa   : > { %852 = vrot.lane.b32.xlu0 %v3080_v32, %s2706_s25  ;;  %360 = vst.msk [vmem:[%s3169_s22 + $0x74] sm:$0x1] %vm332_vm13, %v2714_v16  ;;  %363 = vst.msk [vmem:[%s3169_s22 + $0x80] sm:$0x1] %vm332_vm13, %v2714_v16  ;;  %v1238_v59 = vsel %vm1222_vm8, %v1205_v58, %v3174_v1 }
  0xfb   : > { %854 = vrot.lane.b32.xlu1 %v3134_v14, %s2706_s25  ;;  %366 = vst.msk [vmem:[%s3169_s22 + $0x8c] sm:$0x1] %vm332_vm13, %v2714_v16  ;;  %369 = vst.msk [vmem:[%s3169_s22 + $0x98] sm:$0x1] %vm332_vm13, %v2714_v16 }
  0xfc   : > { %v1003_v0 = vpop.permute.xlu0 %1002  ;;  %372 = vst.msk [vmem:[%s3169_s22 + $0xa4] sm:$0x1] %vm332_vm13, %v2714_v16  ;;  %375 = vst.msk [vmem:[%s3169_s22 + $0xb0] sm:$0x1] %vm332_vm13, %v2714_v16 }
  0xfd   : > { %v1005_v44 = vpop.permute.xlu1 %1004  ;;  %378 = vst.msk [vmem:[%s3169_s22 + $0xbc] sm:$0x1] %vm332_vm13, %v2714_v16  ;;  %381 = vst.msk [vmem:[%s3169_s22 + $0xc8] sm:$0x1] %vm332_vm13, %v2714_v16  ;;  %v1269_v30 = vsel %vm1255_vm9, %v1236_v48, %v1003_v0 }
  0xfe   : > { %899 = vrot.lane.b32.xlu0 %v3123_v6, %s2710_s29  ;;  %v1271_v60 = vsel %vm1255_vm9, %v1238_v59, %v1005_v44  ;;  %vm3490_vm1 = vmand %vm329_vm12, %vm2145_vm14 }
  0xff   : > { %901 = vrot.lane.b32.xlu1 %v870_v40, %s2710_s29 }
 0x100   : > { %v1038_v62 = vpop.permute.xlu0 %1037 }
 0x101   : > { %v723_v56 = vpop.permute.xlu1 %722  ;;  %v1302_v57 = vsel %vm1288_vm10, %v1269_v30, %v1038_v62 }
 0x102   : > { %934 = vrot.lane.b32.xlu0 %v3141_v17, %s2707_s26  ;;  %2606 = vmatprep.mubr.msk.bf16.mxu0 %vm1354_vm11, %v1302_v57  ;;  %v1075_v24 = vsel %vm1057_vm3, %v2913_v41, %v723_v56 }
 0x103   : > { %936 = vrot.lane.b32.xlu1 %v905_v25, %s2707_s26  ;;  %s2358_s26 = sshll.u32 %s3813_s1, 1 }
 0x104   : > { %v1040_v61 = vpop.permute.xlu0 %1039  ;;  %s262_s29 = scalar_lea.vmem %s3805_s6, %s2358_s26 }
 0x105   : > { %v725_v4 = vpop.permute.xlu1 %724  ;;  %v1304_v5 = vsel %vm1288_vm10, %v1271_v60, %v1040_v61 }
 0x106   : > { %971 = vrot.lane.b32.xlu0 %v3134_v14, %s2711_s8  ;;  %2607 = vmatmul.mubr.msk.bf16.gmra.mrb[12].mxu0 %vm1354_vm11, %v1304_v5  ;;  %v1024_v14 = vsel %vm738_vm0, %v1022_v8, %v1023_v9  ;;  %vm1821_vm0 = vsmask.f32 4368 }
 0x107   : > { %973 = vrot.lane.b32.xlu1 %v3172_v34, %s2711_s8  ;;  %v1077_v34 = vsel %vm1057_vm3, %v2926_v51, %v725_v4  ;;  %vm3502_vm2 = vmor %vm1820_vm15, %vm1821_vm0 }
 0x108   : > { %v804_v6 = vpop.permute.xlu0 %803 }
 0x109   : > { %v806_v10 = vpop.permute.xlu1 %805  ;;  %v1108_v26 = vsel %vm1090_vm4, %v1075_v24, %v804_v6 }
 0x10a   : > { %1018 = vrot.lane.b32.xlu0 %v870_v40, %s2712_s13  ;;  %v1110_v35 = vsel %vm1090_vm4, %v1077_v34, %v806_v10 }
 0x10b   : > { %1020 = vrot.lane.b32.xlu1 %v989_v7, %s2712_s13 }
 0x10c   : > { %v841_v15 = vpop.permute.xlu0 %840 }
 0x10d   : > { %v843_v17 = vpop.permute.xlu1 %842  ;;  %v1141_v27 = vsel %vm1123_vm5, %v1108_v26, %v841_v15 }
 0x10e   : > { %1053 = vrot.lane.b32.xlu0 %v905_v25, %s2713_s16  ;;  %v1143_v37 = vsel %vm1123_vm5, %v1110_v35, %v843_v17 }
 0x10f   : > { %1055 = vrot.lane.b32.xlu1 %v1024_v14, %s2713_s16 }
 0x110   : > { %v888_v18 = vpop.permute.xlu0 %887 }
 0x111   : > { %v890_v19 = vpop.permute.xlu1 %889  ;;  %v1174_v3 = vsel %vm1156_vm6, %v1141_v27, %v888_v18 }
 0x112   : > { %v1176_v16 = vsel %vm1156_vm6, %v1143_v37, %v890_v19 }
 0x114   : > { %v923_v20 = vpop.permute.xlu0 %922 }
 0x115   : > { %v925_v21 = vpop.permute.xlu1 %924  ;;  %v1207_v1 = vsel %vm1189_vm7, %v1174_v3, %v923_v20 }
 0x116   : > { %v1209_v40 = vsel %vm1189_vm7, %v1176_v16, %v925_v21 }
 0x118   : > { %v960_v22 = vpop.permute.xlu0 %959 }
 0x119   : > { %v962_v23 = vpop.permute.xlu1 %961  ;;  %v1240_v36 = vsel %vm1222_vm8, %v1207_v1, %v960_v22 }
 0x11a   : > { %v1242_v51 = vsel %vm1222_vm8, %v1209_v40, %v962_v23 }
 0x11c   : > { %v1007_v28 = vpop.permute.xlu0 %1006 }
 0x11d   : > { %v1009_v33 = vpop.permute.xlu1 %1008  ;;  %v1273_v41 = vsel %vm1255_vm9, %v1240_v36, %v1007_v28 }
 0x11e   : > { %v1275_v50 = vsel %vm1255_vm9, %v1242_v51, %v1009_v33 }
 0x120   : > { %v1042_v38 = vpop.permute.xlu0 %1041 }
 0x121   : > { %v727_v39 = vpop.permute.xlu1 %726  ;;  %v1306_v0 = vsel %vm1288_vm10, %v1273_v41, %v1042_v38 }
 0x122   : > { %2610 = vmatprep.mubr.msk.bf16.mxu1 %vm1354_vm11, %v1306_v0  ;;  %v1079_v54 = vsel %vm1057_vm3, %v2951_v11, %v727_v39 }
 0x124   : > { %v1044_v42 = vpop.permute.xlu0 %1043 }
 0x125   : > { %v729_v43 = vpop.permute.xlu1 %728  ;;  %v1308_v44 = vsel %vm1288_vm10, %v1275_v50, %v1044_v42 }
 0x126   : > { %2611 = vmatmul.mubr.msk.bf16.vlgmr.msra.gmra.mrb[0].mxu1 %vm1354_vm11, %v1308_v44  ;;  %v1081_v60 = vsel %vm1057_vm3, %v2969_v31, %v729_v43 }
 0x128   : > { %v808_v45 = vpop.permute.xlu0 %807 }
 0x129   : > { %v810_v46 = vpop.permute.xlu1 %809  ;;  %v1112_v55 = vsel %vm1090_vm4, %v1079_v54, %v808_v45 }
 0x12a   : > { %v1114_v63 = vsel %vm1090_vm4, %v1081_v60, %v810_v46 }
 0x12c   : > { %v845_v47 = vpop.permute.xlu0 %844 }
 0x12d   : > { %v847_v48 = vpop.permute.xlu1 %846  ;;  %v1145_v56 = vsel %vm1123_vm5, %v1112_v55, %v845_v47 }
 0x12e   : > { %v1147_v4 = vsel %vm1123_vm5, %v1114_v63, %v847_v48 }
 0x130   : > { %v892_v25 = vpop.permute.xlu0 %891 }
 0x131   : > { %v894_v49 = vpop.permute.xlu1 %893  ;;  %v1178_v58 = vsel %vm1156_vm6, %v1145_v56, %v892_v25  ;;  %v3466_v56 = vld [vmem:[%s3803_s4] ss:$0 sm:$0xff] }
 0x132   : > { %v1180_v6 = vsel %vm1156_vm6, %v1147_v4, %v894_v49 }
 0x134   : > { %v927_v52 = vpop.permute.xlu0 %926 }
 0x135   : > { %v929_v30 = vpop.permute.xlu1 %928  ;;  %v1211_v61 = vsel %vm1189_vm7, %v1178_v58, %v927_v52 }
 0x136   : > { %v1213_v9 = vsel %vm1189_vm7, %v1180_v6, %v929_v30 }
 0x138   : > { %v964_v62 = vpop.permute.xlu0 %963 }
 0x139   : > { %v966_v53 = vpop.permute.xlu1 %965  ;;  %v1244_v2 = vsel %vm1222_vm8, %v1211_v61, %v964_v62 }
 0x13a   : > { %v1246_v31 = vsel %vm1222_vm8, %v1213_v9, %v966_v53 }
 0x13c   : > { %v1011_v57 = vpop.permute.xlu0 %1010 }
 0x13d   : > { %v1013_v59 = vpop.permute.xlu1 %1012  ;;  %v1277_v11 = vsel %vm1255_vm9, %v1244_v2, %v1011_v57 }
 0x13e   : > { %v1279_v10 = vsel %vm1255_vm9, %v1246_v31, %v1013_v59 }
 0x140   : > { %v1046_v5 = vpop.permute.xlu0 %1045 }
 0x141   : > { %v731_v7 = vpop.permute.xlu1 %730  ;;  %v1310_v8 = vsel %vm1288_vm10, %v1277_v11, %v1046_v5 }
 0x142   : > { %2614 = vmatprep.mubr.msk.bf16.mxu1 %vm1354_vm11, %v1310_v8  ;;  %v1083_v3 = vsel %vm1057_vm3, %v3009_v12, %v731_v7 }
 0x144   : > { %v1048_v15 = vpop.permute.xlu0 %1047 }
 0x145   : > { %v733_v14 = vpop.permute.xlu1 %732  ;;  %v1312_v17 = vsel %vm1288_vm10, %v1279_v10, %v1048_v15 }
 0x146   : > { %2615 = vmatmul.mubr.msk.bf16.gmra.mrb[4].mxu1 %vm1354_vm11, %v1312_v17  ;;  %v1085_v37 = vsel %vm1057_vm3, %v3022_v29, %v733_v14 }
 0x148   : > { %v812_v18 = vpop.permute.xlu0 %811 }
 0x149   : > { %v814_v19 = vpop.permute.xlu1 %813  ;;  %v1116_v33 = vsel %vm1090_vm4, %v1083_v3, %v812_v18 }
 0x14a   : > { %v1118_v38 = vsel %vm1090_vm4, %v1085_v37, %v814_v19 }
 0x14c   : > { %v849_v20 = vpop.permute.xlu0 %848 }
 0x14d   : > { %v851_v21 = vpop.permute.xlu1 %850  ;;  %v1149_v34 = vsel %vm1123_vm5, %v1116_v33, %v849_v20 }
 0x14e   : > { %v1151_v39 = vsel %vm1123_vm5, %v1118_v38, %v851_v21  ;;  %v2454_v38 = vld [vmem:[%s3169_s22 + $0x18] sm:$0xf] }
 0x150   : > { %v896_v22 = vpop.permute.xlu0 %895 }
 0x151   : > { %v898_v23 = vpop.permute.xlu1 %897  ;;  %v1182_v35 = vsel %vm1156_vm6, %v1149_v34, %v896_v22 }
 0x152   : > { %v1184_v40 = vsel %vm1156_vm6, %v1151_v39, %v898_v23 }
 0x154   : > { %v931_v24 = vpop.permute.xlu0 %930 }
 0x155   : > { %v933_v26 = vpop.permute.xlu1 %932  ;;  %v1215_v41 = vsel %vm1189_vm7, %v1182_v35, %v931_v24 }
 0x156   : > { %v1217_v42 = vsel %vm1189_vm7, %v1184_v40, %v933_v26 }
 0x158   : > { %v968_v27 = vpop.permute.xlu0 %967 }
 0x159   : > { %v970_v28 = vpop.permute.xlu1 %969  ;;  %v1248_v16 = vsel %vm1222_vm8, %v1215_v41, %v968_v27 }
 0x15a   : > { %v1250_v29 = vsel %vm1222_vm8, %v1217_v42, %v970_v28 }
 0x15c   : > { %v1015_v1 = vpop.permute.xlu0 %1014 }
 0x15d   : > { %v1017_v36 = vpop.permute.xlu1 %1016  ;;  %v1281_v12 = vsel %vm1255_vm9, %v1248_v16, %v1015_v1 }
 0x15e   : > { %v1283_v43 = vsel %vm1255_vm9, %v1250_v29, %v1017_v36 }
 0x160   : > { %v1050_v0 = vpop.permute.xlu0 %1049 }
 0x161   : > { %v735_v51 = vpop.permute.xlu1 %734  ;;  %v1314_v50 = vsel %vm1288_vm10, %v1281_v12, %v1050_v0 }
 0x162   : > { %2618 = vmatprep.mubr.msk.bf16.mxu1 %vm1354_vm11, %v1314_v50  ;;  %v1087_v54 = vsel %vm1057_vm3, %v3067_v13, %v735_v51  ;;  %v2449_v50 = vld [vmem:[%s3169_s22 + $0xc] sm:$0xf] }
 0x164   : > { %v1052_v44 = vpop.permute.xlu0 %1051 }
 0x165   : > { %v737_v45 = vpop.permute.xlu1 %736  ;;  %v1316_v46 = vsel %vm1288_vm10, %v1283_v43, %v1052_v44 }
 0x166   : > { %2619 = vmatmul.mubr.msk.bf16.gmra.mrb[8].mxu1 %vm1354_vm11, %v1316_v46  ;;  %v1089_v55 = vsel %vm1057_vm3, %v3080_v32, %v737_v45  ;;  %vm3511_vm3 = vmand %vm332_vm13, %vm1820_vm15 }
 0x168   : > { %v816_v47 = vpop.permute.xlu0 %815 }
 0x169   : > { %v818_v48 = vpop.permute.xlu1 %817  ;;  %v1120_v58 = vsel %vm1090_vm4, %v1087_v54, %v816_v47 }
 0x16a   : > { %v1122_v57 = vsel %vm1090_vm4, %v1089_v55, %v818_v48  ;;  %v2457_v55 = vld [vmem:[%s3169_s22 + $0x20] sm:$0x1]  ;;  %vm2261_vm4 = vcmask 1040384  }
 0x16c   : > { %v853_v25 = vpop.permute.xlu0 %852 }
 0x16d   : > { %v855_v49 = vpop.permute.xlu1 %854  ;;  %v1153_v61 = vsel %vm1123_vm5, %v1120_v58, %v853_v25 }
 0x16e   : > { %v1155_v60 = vsel %vm1123_vm5, %v1122_v57, %v855_v49  ;;  %vm2263_vm5 = vcmask 254976  }
 0x170   : > { %v900_v52 = vpop.permute.xlu0 %899 }
 0x171   : > { %v902_v30 = vpop.permute.xlu1 %901  ;;  %v1186_v32 = vsel %vm1156_vm6, %v1153_v61, %v900_v52 }
 0x172   : > { %v1188_v13 = vsel %vm1156_vm6, %v1155_v60, %v902_v30 }
 0x174   : > { %v935_v62 = vpop.permute.xlu0 %934 }
 0x175   : > { %v937_v53 = vpop.permute.xlu1 %936  ;;  %v1219_v6 = vsel %vm1189_vm7, %v1186_v32, %v935_v62 }
 0x176   : > { %v1221_v5 = vsel %vm1189_vm7, %v1188_v13, %v937_v53 }
 0x178   : > { %v972_v59 = vpop.permute.xlu0 %971 }
 0x179   : > { %v974_v63 = vpop.permute.xlu1 %973  ;;  %v2596_v2 = vpop.f32.mrb[0].mxu0  ;;  %v1252_v9 = vsel %vm1222_vm8, %v1219_v6, %v972_v59 }
 0x17a   : > { %v1434_v4 = vadd.f32 %v2596_v2, %v3466_v56  ;;  %v1425_v11 = vpop.f32.mrb[1].mxu0  ;;  %v1254_v17 = vsel %vm1222_vm8, %v1221_v5, %v974_v63 }
 0x17b   : > { %v1426_v7 = vadd.f32 %v3466_v56, %v1425_v11  ;;  %v2597_v8 = vpop.f32.mrb[2].mxu0 }
 0x17c   : > { %v1624_v31 = vmul.f32 %v1434_v4, %v1434_v4  ;;  %v2533_v10 = vpack.c.bf16 %v1434_v4, %v1434_v4  ;;  %v1437_v15 = vadd.f32 %v2597_v8, %v3466_v56  ;;  %v1428_v14 = vpop.f32.mrb[3].mxu0  ;;  %v1555_v22 = vsel %vm1156_vm6, %v1434_v4, 0.0  ;;  %v1019_v27 = vpop.permute.xlu0 %1018  ;;  %v2452_v8 = vld [vmem:[%s3169_s22 + $0x14] sm:$0x1] }
 0x17d   : > { %v1622_v18 = vmul.f32 %v1426_v7, %v1426_v7  ;;  %v2531_v19 = vpack.c.bf16 %v1426_v7, %v1426_v7  ;;  %v1021_v20 = vpop.permute.xlu1 %1020  ;;  %v1429_v21 = vadd.f32 %v3466_v56, %v1428_v14  ;;  %v1552_v26 = vsel %vm1156_vm6, %v1426_v7, 0.0 }
 0x17e   : > { %v1657_v23 = vsel %vm1156_vm6, %v1624_v31, 0.0  ;;  %v1841_v24 = vshrl.u32 %v2533_v10, 16  ;;  %v1844_v28 = vshll.u32 %v2533_v10, 16  ;;  %v1557_v34 = vsel %vm1156_vm6, %v1437_v15, 0.0 }
 0x17f   : > { %v1654_v3 = vsel %vm1156_vm6, %v1622_v18, 0.0  ;;  %v1824_v33 = vshrl.u32 %v2531_v19, 16  ;;  %v1827_v35 = vshll.u32 %v2531_v19, 16  ;;  %v2534_v36 = vpack.c.bf16 %v1437_v15, %v1437_v15 }
 0x180   : > { %v1843_v1 = vrot.slane %v1841_v24, 7  ;;  %v1553_v37 = vsel %vm1156_vm6, %v1429_v21, 0.0  ;;  %v1625_v39 = vmul.f32 %v1437_v15, %v1437_v15  ;;  %v1623_v0 = vmul.f32 %v1429_v21, %v1429_v21  ;;  %v1054_v62 = vpop.permute.xlu0 %1053 }
 0x181   : > { %v1826_v16 = vrot.slane %v1824_v33, 7  ;;  %v1554_v12 = vadd.f32 %v1553_v37, %v1552_v26  ;;  %v1849_v42 = vshrl.u32 %v2534_v36, 16  ;;  %v1287_v29 = vsel %vm1255_vm9, %v1254_v17, %v1021_v20  ;;  %v1056_v43 = vpop.permute.xlu1 %1055 }
 0x182   : > { %v1846_v40 = vor.u32 %v1844_v28, %v1843_v1  ;;  %v1847_v51 = vrot.slane %v1843_v1, 4  ;;  %v1852_v45 = vshll.u32 %v2534_v36, 16  ;;  %v1655_v47 = vsel %vm1156_vm6, %v1623_v0, 0.0 }
 0x183   : > { %v1829_v44 = vor.u32 %v1827_v35, %v1826_v16  ;;  %v1556_v46 = vadd.f32 %v1555_v22, %v1554_v12  ;;  %v1851_v49 = vrot.slane %v1849_v42, 7  ;;  %v1656_v52 = vadd.f32 %v1655_v47, %v1654_v3 }
 0x184   : > { %v2157_v48 = vsel %vm3490_vm1, %v1846_v40, %v2454_v38  ;;  %v2532_v30 = vpack.c.bf16 %v1429_v21, %v1429_v21  ;;  %v1285_v57 = vsel %vm1255_vm9, %v1252_v9, %v1019_v27  ;;  %v1320_v58 = vsel %vm1288_vm10, %v1287_v29, %v1056_v43  ;;  %v2464_v40 = vld [vmem:[%s3169_s22 + $0x30] sm:$0xf] }
 0x185   : > { %2455 = vst [vmem:[%s3169_s22 + $0x18] sm:$0xf] %v2157_v48  ;;  %v2148_v53 = vsel %vm3490_vm1, %v1829_v44, %v2449_v50  ;;  %v1558_v59 = vadd.f32 %v1557_v34, %v1556_v46  ;;  %v1854_v60 = vor.u32 %v1852_v45, %v1851_v49  ;;  %v1856_v61 = vrot.slane %v1851_v49, 4  ;;  %v2459_v45 = vld [vmem:[%s3169_s22 + $0x24] sm:$0xf] }
 0x186   : > { %2450 = vst [vmem:[%s3169_s22 + $0xc] sm:$0xf] %v2148_v53  ;;  %v1658_v63 = vadd.f32 %v1657_v23, %v1656_v52  ;;  %v1832_v2 = vshrl.u32 %v2532_v30, 16  ;;  %v1659_v13 = vsel %vm1156_vm6, %v1625_v39, 0.0  ;;  %v1835_v32 = vshll.u32 %v2532_v30, 16 }
 0x187   : > { %v1318_v4 = vsel %vm1288_vm10, %v1285_v57, %v1054_v62  ;;  %v1855_v11 = vsel %vm3502_vm2, %v1847_v51, %v1854_v60  ;;  %v2161_v5 = vsel %vm3511_vm3, %v1856_v61, %v2457_v55  ;;  %v1830_v9 = vrot.slane %v1826_v16, 4  ;;  %v2467_v60 = vld [vmem:[%s3169_s22 + $0x38] sm:$0x1] }
 0x188   : > { %v1834_v6 = vrot.slane %v1832_v2, 7  ;;  %2622 = vmatprep.mubr.msk.bf16.mxu1 %vm1354_vm11, %v1318_v4  ;;  %v1660_v7 = vadd.f32 %v1659_v13, %v1658_v63  ;;  %2456 = vst.msk [vmem:[%s3169_s22 + $0x1c] sm:$0xf] %vm329_vm12, %v1855_v11  ;;  %2458 = vst [vmem:[%s3169_s22 + $0x20] sm:$0x1] %v2161_v5 }
 0x189   : > { %2623 = vmatmul.mubr.msk.bf16.gmra.mrb[12].mxu1 %vm1354_vm11, %v1320_v58 }
 0x18a   : > { %v1837_v31 = vor.u32 %v1835_v32, %v1834_v6  ;;  %v1839_v10 = vrot.slane %v1834_v6, 4 }
 0x18c   : > { %v1838_v15 = vsel %vm3502_vm2, %v1830_v9, %v1837_v31  ;;  %v2154_v14 = vsel %vm3511_vm3, %v1839_v10, %v2452_v8 }
 0x18d   : > { %2451 = vst.msk [vmem:[%s3169_s22 + $0x10] sm:$0xf] %vm329_vm12, %v1838_v15  ;;  %2453 = vst [vmem:[%s3169_s22 + $0x14] sm:$0x1] %v2154_v14 }
 0x199   : > { %v2600_v17 = vpop.f32.mrb[4].mxu0 }
 0x19a   : > { %v1450_v18 = vadd.f32 %v2600_v17, %v3466_v56  ;;  %v1441_v19 = vpop.f32.mrb[5].mxu0 }
 0x19b   : > { %v1442_v20 = vadd.f32 %v3466_v56, %v1441_v19  ;;  %v2601_v21 = vpop.f32.mrb[6].mxu0 }
 0x19c   : > { %v2537_v22 = vpack.c.bf16 %v1450_v18, %v1450_v18  ;;  %v1453_v23 = vadd.f32 %v2601_v21, %v3466_v56  ;;  %v1444_v24 = vpop.f32.mrb[7].mxu0  ;;  %v1628_v33 = vmul.f32 %v1450_v18, %v1450_v18  ;;  %v1563_v35 = vsel %vm1156_vm6, %v1450_v18, 0.0 }
 0x19d   : > { %v1559_v26 = vsel %vm1156_vm6, %v1442_v20, 0.0  ;;  %v1626_v27 = vmul.f32 %v1442_v20, %v1442_v20  ;;  %v2535_v28 = vpack.c.bf16 %v1442_v20, %v1442_v20  ;;  %v1445_v3 = vadd.f32 %v3466_v56, %v1444_v24 }
 0x19e   : > { %v1875_v34 = vshrl.u32 %v2537_v22, 16  ;;  %v1560_v1 = vadd.f32 %v1559_v26, %v1558_v59  ;;  %v1878_v36 = vshll.u32 %v2537_v22, 16  ;;  %v2538_v0 = vpack.c.bf16 %v1453_v23, %v1453_v23 }
 0x19f   : > { %v1661_v37 = vsel %vm1156_vm6, %v1626_v27, 0.0  ;;  %v1858_v38 = vshrl.u32 %v2535_v28, 16  ;;  %v1861_v12 = vshll.u32 %v2535_v28, 16  ;;  %v1561_v50 = vsel %vm1156_vm6, %v1445_v3, 0.0 }
 0x1a0   : > { %v1877_v16 = vrot.slane %v1875_v34, 7  ;;  %v1662_v39 = vadd.f32 %v1661_v37, %v1660_v7  ;;  %v1627_v42 = vmul.f32 %v1445_v3, %v1445_v3  ;;  %v2536_v29 = vpack.c.bf16 %v1445_v3, %v1445_v3  ;;  %v2462_v7 = vld [vmem:[%s3169_s22 + $0x2c] sm:$0x1] }
 0x1a1   : > { %v1860_v51 = vrot.slane %v1858_v38, 7  ;;  %v1665_v43 = vsel %vm1156_vm6, %v1628_v33, 0.0  ;;  %v1565_v46 = vsel %vm1156_vm6, %v1453_v23, 0.0  ;;  %v1883_v47 = vshrl.u32 %v2538_v0, 16 }
 0x1a2   : > { %v1880_v44 = vor.u32 %v1878_v36, %v1877_v16  ;;  %v1629_v49 = vmul.f32 %v1453_v23, %v1453_v23  ;;  %v1886_v52 = vshll.u32 %v2538_v0, 16  ;;  %v1562_v30 = vadd.f32 %v1561_v50, %v1560_v1  ;;  %v2474_v50 = vld [vmem:[%s3169_s22 + $0x48] sm:$0xf] }
 0x1a3   : > { %v1863_v48 = vor.u32 %v1861_v12, %v1860_v51  ;;  %v1885_v53 = vrot.slane %v1883_v47, 7  ;;  %v1663_v55 = vsel %vm1156_vm6, %v1627_v42, 0.0  ;;  %v1866_v57 = vshrl.u32 %v2536_v29, 16  ;;  %v2469_v47 = vld [vmem:[%s3169_s22 + $0x3c] sm:$0xf] }
 0x1a4   : > { %v2171_v62 = vsel %vm3490_vm1, %v1880_v44, %v2464_v40  ;;  %v1881_v58 = vrot.slane %v1877_v16, 4  ;;  %v1564_v61 = vadd.f32 %v1563_v35, %v1562_v30  ;;  %v1664_v63 = vadd.f32 %v1663_v55, %v1662_v39 }
 0x1a5   : > { %2465 = vst [vmem:[%s3169_s22 + $0x30] sm:$0xf] %v2171_v62  ;;  %v2164_v59 = vsel %vm3490_vm1, %v1863_v48, %v2459_v45  ;;  %v1888_v2 = vor.u32 %v1886_v52, %v1885_v53  ;;  %v1890_v13 = vrot.slane %v1885_v53, 4  ;;  %v1868_v32 = vrot.slane %v1866_v57, 7 }
 0x1a6   : > { %2460 = vst [vmem:[%s3169_s22 + $0x24] sm:$0xf] %v2164_v59  ;;  %v1869_v4 = vshll.u32 %v2536_v29, 16  ;;  %v1864_v11 = vrot.slane %v1860_v51, 4  ;;  %v1667_v5 = vsel %vm1156_vm6, %v1629_v49, 0.0  ;;  %v1666_v6 = vadd.f32 %v1665_v43, %v1664_v63 }
 0x1a7   : > { %v1566_v8 = vadd.f32 %v1565_v46, %v1564_v61  ;;  %v1889_v9 = vsel %vm3502_vm2, %v1881_v58, %v1888_v2  ;;  %v2175_v31 = vsel %vm3511_vm3, %v1890_v13, %v2467_v60  ;;  %v1873_v15 = vrot.slane %v1868_v32, 4  ;;  %v2477_v63 = vld [vmem:[%s3169_s22 + $0x50] sm:$0x1] }
 0x1a8   : > { %v1871_v10 = vor.u32 %v1869_v4, %v1868_v32  ;;  %2466 = vst.msk [vmem:[%s3169_s22 + $0x34] sm:$0xf] %vm329_vm12, %v1889_v9  ;;  %2468 = vst [vmem:[%s3169_s22 + $0x38] sm:$0x1] %v2175_v31  ;;  %v1668_v14 = vadd.f32 %v1667_v5, %v1666_v6  ;;  %v2472_v9 = vld [vmem:[%s3169_s22 + $0x44] sm:$0x1] }
 0x1a9   : > { %v2168_v18 = vsel %vm3511_vm3, %v1873_v15, %v2462_v7 }
 0x1aa   : > { %v1872_v17 = vsel %vm3502_vm2, %v1864_v11, %v1871_v10  ;;  %2463 = vst [vmem:[%s3169_s22 + $0x2c] sm:$0x1] %v2168_v18 }
 0x1ab   : > { %2461 = vst.msk [vmem:[%s3169_s22 + $0x28] sm:$0xf] %vm329_vm12, %v1872_v17 }
 0x1b9   : > { %v2604_v19 = vpop.f32.mrb[8].mxu0 }
 0x1ba   : > { %v1466_v20 = vadd.f32 %v2604_v19, %v3466_v56  ;;  %v1457_v21 = vpop.f32.mrb[9].mxu0 }
 0x1bb   : > { %v1458_v22 = vadd.f32 %v3466_v56, %v1457_v21  ;;  %v2605_v23 = vpop.f32.mrb[10].mxu0 }
 0x1bc   : > { %v2541_v24 = vpack.c.bf16 %v1466_v20, %v1466_v20  ;;  %v1469_v26 = vadd.f32 %v2605_v23, %v3466_v56  ;;  %v1460_v27 = vpop.f32.mrb[11].mxu0  ;;  %v1632_v1 = vmul.f32 %v1466_v20, %v1466_v20  ;;  %v1571_v37 = vsel %vm1156_vm6, %v1466_v20, 0.0 }
 0x1bd   : > { %v1567_v28 = vsel %vm1156_vm6, %v1458_v22, 0.0  ;;  %v1630_v3 = vmul.f32 %v1458_v22, %v1458_v22  ;;  %v2539_v33 = vpack.c.bf16 %v1458_v22, %v1458_v22  ;;  %v1461_v34 = vadd.f32 %v3466_v56, %v1460_v27 }
 0x1be   : > { %v1909_v35 = vshrl.u32 %v2541_v24, 16  ;;  %v1568_v36 = vadd.f32 %v1567_v28, %v1566_v8  ;;  %v1912_v38 = vshll.u32 %v2541_v24, 16  ;;  %v2542_v51 = vpack.c.bf16 %v1469_v26, %v1469_v26 }
 0x1bf   : > { %v1669_v16 = vsel %vm1156_vm6, %v1630_v3, 0.0  ;;  %v1892_v39 = vshrl.u32 %v2539_v33, 16  ;;  %v1895_v40 = vshll.u32 %v2539_v33, 16  ;;  %v1569_v29 = vsel %vm1156_vm6, %v1461_v34, 0.0 }
 0x1c0   : > { %v1911_v12 = vrot.slane %v1909_v35, 7  ;;  %v1670_v0 = vadd.f32 %v1669_v16, %v1668_v14  ;;  %v1631_v43 = vmul.f32 %v1461_v34, %v1461_v34  ;;  %v2540_v44 = vpack.c.bf16 %v1461_v34, %v1461_v34 }
 0x1c1   : > { %v1894_v42 = vrot.slane %v1892_v39, 7  ;;  %v1673_v45 = vsel %vm1156_vm6, %v1632_v1, 0.0  ;;  %v1573_v48 = vsel %vm1156_vm6, %v1469_v26, 0.0  ;;  %v1917_v49 = vshrl.u32 %v2542_v51, 16 }
 0x1c2   : > { %v1914_v46 = vor.u32 %v1912_v38, %v1911_v12  ;;  %v1633_v30 = vmul.f32 %v1469_v26, %v1469_v26  ;;  %v1920_v62 = vshll.u32 %v2542_v51, 16  ;;  %v1570_v53 = vadd.f32 %v1569_v29, %v1568_v36  ;;  %v2484_v29 = vld [vmem:[%s3169_s22 + $0x60] sm:$0xf] }
 0x1c3   : > { %v1897_v52 = vor.u32 %v1895_v40, %v1894_v42  ;;  %v1919_v57 = vrot.slane %v1917_v49, 7  ;;  %v1671_v58 = vsel %vm1156_vm6, %v1631_v43, 0.0  ;;  %v1900_v59 = vshrl.u32 %v2540_v44, 16  ;;  %v2479_v49 = vld [vmem:[%s3169_s22 + $0x54] sm:$0xf] }
 0x1c4   : > { %v2185_v55 = vsel %vm3490_vm1, %v1914_v46, %v2474_v50  ;;  %v1915_v60 = vrot.slane %v1911_v12, 4  ;;  %v1572_v2 = vadd.f32 %v1571_v37, %v1570_v53  ;;  %v1672_v13 = vadd.f32 %v1671_v58, %v1670_v0 }
 0x1c5   : > { %2475 = vst [vmem:[%s3169_s22 + $0x48] sm:$0xf] %v2185_v55  ;;  %v2178_v61 = vsel %vm3490_vm1, %v1897_v52, %v2469_v47  ;;  %v1922_v32 = vor.u32 %v1920_v62, %v1919_v57  ;;  %v1924_v4 = vrot.slane %v1919_v57, 4  ;;  %v1902_v11 = vrot.slane %v1900_v59, 7 }
 0x1c6   : > { %2470 = vst [vmem:[%s3169_s22 + $0x3c] sm:$0xf] %v2178_v61  ;;  %v1903_v5 = vshll.u32 %v2540_v44, 16  ;;  %v1898_v6 = vrot.slane %v1894_v42, 4  ;;  %v1675_v7 = vsel %vm1156_vm6, %v1633_v30, 0.0  ;;  %v1674_v8 = vadd.f32 %v1673_v45, %v1672_v13 }
 0x1c7   : > { %v1574_v31 = vadd.f32 %v1573_v48, %v1572_v2  ;;  %v1923_v10 = vsel %vm3502_vm2, %v1915_v60, %v1922_v32  ;;  %v2189_v15 = vsel %vm3511_vm3, %v1924_v4, %v2477_v63  ;;  %v1907_v17 = vrot.slane %v1902_v11, 4  ;;  %v2487_v13 = vld [vmem:[%s3169_s22 + $0x68] sm:$0x1] }
 0x1c8   : > { %v1905_v14 = vor.u32 %v1903_v5, %v1902_v11  ;;  %2476 = vst.msk [vmem:[%s3169_s22 + $0x4c] sm:$0xf] %vm329_vm12, %v1923_v10  ;;  %2478 = vst [vmem:[%s3169_s22 + $0x50] sm:$0x1] %v2189_v15  ;;  %v1676_v18 = vadd.f32 %v1675_v7, %v1674_v8  ;;  %v2482_v10 = vld [vmem:[%s3169_s22 + $0x5c] sm:$0x1] }
 0x1c9   : > { %v2182_v20 = vsel %vm3511_vm3, %v1907_v17, %v2472_v9 }
 0x1ca   : > { %v1906_v19 = vsel %vm3502_vm2, %v1898_v6, %v1905_v14  ;;  %2473 = vst [vmem:[%s3169_s22 + $0x44] sm:$0x1] %v2182_v20 }
 0x1cb   : > { %2471 = vst.msk [vmem:[%s3169_s22 + $0x40] sm:$0xf] %vm329_vm12, %v1906_v19 }
 0x1d9   : > { %v2608_v21 = vpop.f32.mrb[12].mxu0 }
 0x1da   : > { %v1482_v22 = vadd.f32 %v2608_v21, %v3466_v56  ;;  %v1473_v23 = vpop.f32.mrb[13].mxu0 }
 0x1db   : > { %v1474_v24 = vadd.f32 %v3466_v56, %v1473_v23  ;;  %v2609_v26 = vpop.f32.mrb[14].mxu0 }
 0x1dc   : > { %v2545_v27 = vpack.c.bf16 %v1482_v22, %v1482_v22  ;;  %v1485_v28 = vadd.f32 %v2609_v26, %v3466_v56  ;;  %v1476_v3 = vpop.f32.mrb[15].mxu0  ;;  %v1636_v36 = vmul.f32 %v1482_v22, %v1482_v22  ;;  %v1579_v16 = vsel %vm1156_vm6, %v1482_v22, 0.0 }
 0x1dd   : > { %v1575_v33 = vsel %vm1156_vm6, %v1474_v24, 0.0  ;;  %v1634_v34 = vmul.f32 %v1474_v24, %v1474_v24  ;;  %v2543_v1 = vpack.c.bf16 %v1474_v24, %v1474_v24  ;;  %v1477_v35 = vadd.f32 %v3466_v56, %v1476_v3 }
 0x1de   : > { %v1943_v37 = vshrl.u32 %v2545_v27, 16  ;;  %v1576_v38 = vadd.f32 %v1575_v33, %v1574_v31  ;;  %v1946_v39 = vshll.u32 %v2545_v27, 16  ;;  %v2546_v42 = vpack.c.bf16 %v1485_v28, %v1485_v28 }
 0x1df   : > { %v1677_v12 = vsel %vm1156_vm6, %v1634_v34, 0.0  ;;  %v1926_v0 = vshrl.u32 %v2543_v1, 16  ;;  %v1929_v50 = vshll.u32 %v2543_v1, 16  ;;  %v1577_v44 = vsel %vm1156_vm6, %v1477_v35, 0.0 }
 0x1e0   : > { %v1945_v40 = vrot.slane %v1943_v37, 7  ;;  %v1678_v51 = vadd.f32 %v1677_v12, %v1676_v18  ;;  %v1635_v45 = vmul.f32 %v1477_v35, %v1477_v35  ;;  %v2544_v46 = vpack.c.bf16 %v1477_v35, %v1477_v35 }
 0x1e1   : > { %v1928_v43 = vrot.slane %v1926_v0, 7  ;;  %v1681_v47 = vsel %vm1156_vm6, %v1636_v36, 0.0  ;;  %v1581_v52 = vsel %vm1156_vm6, %v1485_v28, 0.0  ;;  %v1951_v30 = vshrl.u32 %v2546_v42, 16 }
 0x1e2   : > { %v1948_v48 = vor.u32 %v1946_v39, %v1945_v40  ;;  %v1637_v53 = vmul.f32 %v1485_v28, %v1485_v28  ;;  %v1954_v55 = vshll.u32 %v2546_v42, 16  ;;  %v1578_v57 = vadd.f32 %v1577_v44, %v1576_v38  ;;  %v2494_v44 = vld [vmem:[%s3169_s22 + $0x78] sm:$0xf] }
 0x1e3   : > { %v1931_v62 = vor.u32 %v1929_v50, %v1928_v43  ;;  %v1953_v59 = vrot.slane %v1951_v30, 7  ;;  %v1679_v60 = vsel %vm1156_vm6, %v1635_v45, 0.0  ;;  %v1934_v61 = vshrl.u32 %v2544_v46, 16  ;;  %v2489_v30 = vld [vmem:[%s3169_s22 + $0x6c] sm:$0xf] }
 0x1e4   : > { %v2199_v58 = vsel %vm3490_vm1, %v1948_v48, %v2484_v29  ;;  %v1949_v63 = vrot.slane %v1945_v40, 4  ;;  %v1580_v32 = vadd.f32 %v1579_v16, %v1578_v57  ;;  %v1680_v4 = vadd.f32 %v1679_v60, %v1678_v51 }
 0x1e5   : > { %2485 = vst [vmem:[%s3169_s22 + $0x60] sm:$0xf] %v2199_v58  ;;  %v2192_v2 = vsel %vm3490_vm1, %v1931_v62, %v2479_v49  ;;  %v1956_v11 = vor.u32 %v1954_v55, %v1953_v59  ;;  %v1958_v5 = vrot.slane %v1953_v59, 4  ;;  %v1936_v6 = vrot.slane %v1934_v61, 7 }
 0x1e6   : > { %2480 = vst [vmem:[%s3169_s22 + $0x54] sm:$0xf] %v2192_v2  ;;  %v1937_v7 = vshll.u32 %v2544_v46, 16  ;;  %v1932_v8 = vrot.slane %v1928_v43, 4  ;;  %v1683_v9 = vsel %vm1156_vm6, %v1637_v53, 0.0  ;;  %v1682_v31 = vadd.f32 %v1681_v47, %v1680_v4 }
 0x1e7   : > { %v1582_v15 = vadd.f32 %v1581_v52, %v1580_v32  ;;  %v1957_v14 = vsel %vm3502_vm2, %v1949_v63, %v1956_v11  ;;  %v2203_v17 = vsel %vm3511_vm3, %v1958_v5, %v2487_v13  ;;  %v1941_v19 = vrot.slane %v1936_v6, 4  ;;  %v2497_v4 = vld [vmem:[%s3169_s22 + $0x80] sm:$0x1] }
 0x1e8   : > { %v1939_v18 = vor.u32 %v1937_v7, %v1936_v6  ;;  %2486 = vst.msk [vmem:[%s3169_s22 + $0x64] sm:$0xf] %vm329_vm12, %v1957_v14  ;;  %2488 = vst [vmem:[%s3169_s22 + $0x68] sm:$0x1] %v2203_v17  ;;  %v1684_v20 = vadd.f32 %v1683_v9, %v1682_v31  ;;  %v2492_v14 = vld [vmem:[%s3169_s22 + $0x74] sm:$0x1] }
 0x1e9   : > { %v2196_v22 = vsel %vm3511_vm3, %v1941_v19, %v2482_v10 }
 0x1ea   : > { %v1940_v21 = vsel %vm3502_vm2, %v1932_v8, %v1939_v18  ;;  %2483 = vst [vmem:[%s3169_s22 + $0x5c] sm:$0x1] %v2196_v22 }
 0x1eb   : > { %2481 = vst.msk [vmem:[%s3169_s22 + $0x58] sm:$0xf] %vm329_vm12, %v1940_v21 }
 0x1f9   : > { %v2612_v23 = vpop.f32.mrb[0].mxu1 }
 0x1fa   : > { %v1498_v24 = vadd.f32 %v2612_v23, %v3466_v56  ;;  %v1489_v26 = vpop.f32.mrb[1].mxu1 }
 0x1fb   : > { %v1490_v27 = vadd.f32 %v3466_v56, %v1489_v26  ;;  %v2613_v28 = vpop.f32.mrb[2].mxu1 }
 0x1fc   : > { %v2549_v3 = vpack.c.bf16 %v1498_v24, %v1498_v24  ;;  %v1501_v33 = vadd.f32 %v2613_v28, %v3466_v56  ;;  %v1492_v34 = vpop.f32.mrb[3].mxu1  ;;  %v1640_v38 = vmul.f32 %v1498_v24, %v1498_v24  ;;  %v1587_v12 = vsel %vm1156_vm6, %v1498_v24, 0.0 }
 0x1fd   : > { %v1583_v1 = vsel %vm1156_vm6, %v1490_v27, 0.0  ;;  %v1638_v35 = vmul.f32 %v1490_v27, %v1490_v27  ;;  %v2547_v36 = vpack.c.bf16 %v1490_v27, %v1490_v27  ;;  %v1493_v37 = vadd.f32 %v3466_v56, %v1492_v34 }
 0x1fe   : > { %v1977_v16 = vshrl.u32 %v2549_v3, 16  ;;  %v1584_v39 = vadd.f32 %v1583_v1, %v1582_v15  ;;  %v1980_v0 = vshll.u32 %v2549_v3, 16  ;;  %v2550_v43 = vpack.c.bf16 %v1501_v33, %v1501_v33 }
 0x1ff   : > { %v1685_v40 = vsel %vm1156_vm6, %v1638_v35, 0.0  ;;  %v1960_v51 = vshrl.u32 %v2547_v36, 16  ;;  %v1963_v29 = vshll.u32 %v2547_v36, 16  ;;  %v1585_v46 = vsel %vm1156_vm6, %v1493_v37, 0.0 }
 0x200   : > { %v1979_v50 = vrot.slane %v1977_v16, 7  ;;  %v1686_v42 = vadd.f32 %v1685_v40, %v1684_v20  ;;  %v1639_v47 = vmul.f32 %v1493_v37, %v1493_v37  ;;  %v2548_v48 = vpack.c.bf16 %v1493_v37, %v1493_v37 }
 0x201   : > { %v1962_v45 = vrot.slane %v1960_v51, 7  ;;  %v1689_v49 = vsel %vm1156_vm6, %v1640_v38, 0.0  ;;  %v1589_v62 = vsel %vm1156_vm6, %v1501_v33, 0.0  ;;  %v1985_v53 = vshrl.u32 %v2550_v43, 16 }
 0x202   : > { %v1982_v52 = vor.u32 %v1980_v0, %v1979_v50  ;;  %v1641_v57 = vmul.f32 %v1501_v33, %v1501_v33  ;;  %v1988_v58 = vshll.u32 %v2550_v43, 16  ;;  %v1586_v59 = vadd.f32 %v1585_v46, %v1584_v39  ;;  %v2504_v46 = vld [vmem:[%s3169_s22 + $0x90] sm:$0xf] }
 0x203   : > { %v1965_v55 = vor.u32 %v1963_v29, %v1962_v45  ;;  %v1987_v61 = vrot.slane %v1985_v53, 7  ;;  %v1687_v63 = vsel %vm1156_vm6, %v1639_v47, 0.0  ;;  %v1968_v2 = vshrl.u32 %v2548_v48, 16  ;;  %v2499_v53 = vld [vmem:[%s3169_s22 + $0x84] sm:$0xf] }
 0x204   : > { %v2213_v60 = vsel %vm3490_vm1, %v1982_v52, %v2494_v44  ;;  %v1983_v13 = vrot.slane %v1979_v50, 4  ;;  %v1588_v11 = vadd.f32 %v1587_v12, %v1586_v59  ;;  %v1688_v5 = vadd.f32 %v1687_v63, %v1686_v42 }
 0x205   : > { %2495 = vst [vmem:[%s3169_s22 + $0x78] sm:$0xf] %v2213_v60  ;;  %v2206_v32 = vsel %vm3490_vm1, %v1965_v55, %v2489_v30  ;;  %v1990_v6 = vor.u32 %v1988_v58, %v1987_v61  ;;  %v1992_v7 = vrot.slane %v1987_v61, 4  ;;  %v1970_v8 = vrot.slane %v1968_v2, 7 }
 0x206   : > { %2490 = vst [vmem:[%s3169_s22 + $0x6c] sm:$0xf] %v2206_v32  ;;  %v1971_v9 = vshll.u32 %v2548_v48, 16  ;;  %v1966_v31 = vrot.slane %v1962_v45, 4  ;;  %v1691_v10 = vsel %vm1156_vm6, %v1641_v57, 0.0  ;;  %v1690_v15 = vadd.f32 %v1689_v49, %v1688_v5 }
 0x207   : > { %v1590_v17 = vadd.f32 %v1589_v62, %v1588_v11  ;;  %v1991_v18 = vsel %vm3502_vm2, %v1983_v13, %v1990_v6  ;;  %v2217_v19 = vsel %vm3511_vm3, %v1992_v7, %v2497_v4  ;;  %v1975_v21 = vrot.slane %v1970_v8, 4  ;;  %v2507_v5 = vld [vmem:[%s3169_s22 + $0x98] sm:$0x1] }
 0x208   : > { %v1973_v20 = vor.u32 %v1971_v9, %v1970_v8  ;;  %2496 = vst.msk [vmem:[%s3169_s22 + $0x7c] sm:$0xf] %vm329_vm12, %v1991_v18  ;;  %2498 = vst [vmem:[%s3169_s22 + $0x80] sm:$0x1] %v2217_v19  ;;  %v1692_v22 = vadd.f32 %v1691_v10, %v1690_v15  ;;  %v2502_v18 = vld [vmem:[%s3169_s22 + $0x8c] sm:$0x1] }
 0x209   : > { %v2210_v24 = vsel %vm3511_vm3, %v1975_v21, %v2492_v14 }
 0x20a   : > { %v1974_v23 = vsel %vm3502_vm2, %v1966_v31, %v1973_v20  ;;  %2493 = vst [vmem:[%s3169_s22 + $0x74] sm:$0x1] %v2210_v24 }
 0x20b   : > { %2491 = vst.msk [vmem:[%s3169_s22 + $0x70] sm:$0xf] %vm329_vm12, %v1974_v23 }
 0x219   : > { %v2616_v26 = vpop.f32.mrb[4].mxu1 }
 0x21a   : > { %v1514_v27 = vadd.f32 %v2616_v26, %v3466_v56  ;;  %v1505_v28 = vpop.f32.mrb[5].mxu1 }
 0x21b   : > { %v1506_v3 = vadd.f32 %v3466_v56, %v1505_v28  ;;  %v2617_v33 = vpop.f32.mrb[6].mxu1 }
 0x21c   : > { %v2553_v34 = vpack.c.bf16 %v1514_v27, %v1514_v27  ;;  %v1517_v1 = vadd.f32 %v2617_v33, %v3466_v56  ;;  %v1508_v35 = vpop.f32.mrb[7].mxu1  ;;  %v1644_v39 = vmul.f32 %v1514_v27, %v1514_v27  ;;  %v1595_v40 = vsel %vm1156_vm6, %v1514_v27, 0.0 }
 0x21d   : > { %v1591_v36 = vsel %vm1156_vm6, %v1506_v3, 0.0  ;;  %v1642_v37 = vmul.f32 %v1506_v3, %v1506_v3  ;;  %v2551_v38 = vpack.c.bf16 %v1506_v3, %v1506_v3  ;;  %v1509_v16 = vadd.f32 %v3466_v56, %v1508_v35 }
 0x21e   : > { %v2011_v12 = vshrl.u32 %v2553_v34, 16  ;;  %v1592_v0 = vadd.f32 %v1591_v36, %v1590_v17  ;;  %v2014_v51 = vshll.u32 %v2553_v34, 16  ;;  %v2554_v45 = vpack.c.bf16 %v1517_v1, %v1517_v1 }
 0x21f   : > { %v1693_v50 = vsel %vm1156_vm6, %v1642_v37, 0.0  ;;  %v1994_v42 = vshrl.u32 %v2551_v38, 16  ;;  %v1997_v44 = vshll.u32 %v2551_v38, 16  ;;  %v1593_v48 = vsel %vm1156_vm6, %v1509_v16, 0.0 }
 0x220   : > { %v2013_v29 = vrot.slane %v2011_v12, 7  ;;  %v1694_v43 = vadd.f32 %v1693_v50, %v1692_v22  ;;  %v1643_v49 = vmul.f32 %v1509_v16, %v1509_v16  ;;  %v2552_v52 = vpack.c.bf16 %v1509_v16, %v1509_v16 }
 0x221   : > { %v1996_v47 = vrot.slane %v1994_v42, 7  ;;  %v1697_v30 = vsel %vm1156_vm6, %v1644_v39, 0.0  ;;  %v1597_v55 = vsel %vm1156_vm6, %v1517_v1, 0.0  ;;  %v2019_v57 = vshrl.u32 %v2554_v45, 16 }
 0x222   : > { %v2016_v62 = vor.u32 %v2014_v51, %v2013_v29  ;;  %v1645_v59 = vmul.f32 %v1517_v1, %v1517_v1  ;;  %v2022_v60 = vshll.u32 %v2554_v45, 16  ;;  %v1594_v61 = vadd.f32 %v1593_v48, %v1592_v0  ;;  %v2514_v48 = vld [vmem:[%s3169_s22 + $0xa8] sm:$0xf] }
 0x223   : > { %v1999_v58 = vor.u32 %v1997_v44, %v1996_v47  ;;  %v2021_v2 = vrot.slane %v2019_v57, 7  ;;  %v1695_v13 = vsel %vm1156_vm6, %v1643_v49, 0.0  ;;  %v2002_v32 = vshrl.u32 %v2552_v52, 16  ;;  %v2509_v57 = vld [vmem:[%s3169_s22 + $0x9c] sm:$0xf] }
 0x224   : > { %v2227_v63 = vsel %vm3490_vm1, %v2016_v62, %v2504_v46  ;;  %v2017_v4 = vrot.slane %v2013_v29, 4  ;;  %v1596_v6 = vadd.f32 %v1595_v40, %v1594_v61  ;;  %v1696_v7 = vadd.f32 %v1695_v13, %v1694_v43 }
 0x225   : > { %2505 = vst [vmem:[%s3169_s22 + $0x90] sm:$0xf] %v2227_v63  ;;  %v2220_v11 = vsel %vm3490_vm1, %v1999_v58, %v2499_v53  ;;  %v2024_v8 = vor.u32 %v2022_v60, %v2021_v2  ;;  %v2026_v9 = vrot.slane %v2021_v2, 4  ;;  %v2004_v31 = vrot.slane %v2002_v32, 7 }
 0x226   : > { %2500 = vst [vmem:[%s3169_s22 + $0x84] sm:$0xf] %v2220_v11  ;;  %v2005_v10 = vshll.u32 %v2552_v52, 16  ;;  %v2000_v15 = vrot.slane %v1996_v47, 4  ;;  %v1699_v14 = vsel %vm1156_vm6, %v1645_v59, 0.0  ;;  %v1698_v17 = vadd.f32 %v1697_v30, %v1696_v7 }
 0x227   : > { %v1598_v19 = vadd.f32 %v1597_v55, %v1596_v6  ;;  %v2025_v20 = vsel %vm3502_vm2, %v2017_v4, %v2024_v8  ;;  %v2231_v21 = vsel %vm3511_vm3, %v2026_v9, %v2507_v5  ;;  %v2009_v23 = vrot.slane %v2004_v31, 4  ;;  %v2517_v7 = vld [vmem:[%s3169_s22 + $0xb0] sm:$0x1] }
 0x228   : > { %v2007_v22 = vor.u32 %v2005_v10, %v2004_v31  ;;  %2506 = vst.msk [vmem:[%s3169_s22 + $0x94] sm:$0xf] %vm329_vm12, %v2025_v20  ;;  %2508 = vst [vmem:[%s3169_s22 + $0x98] sm:$0x1] %v2231_v21  ;;  %v1700_v24 = vadd.f32 %v1699_v14, %v1698_v17  ;;  %v2512_v20 = vld [vmem:[%s3169_s22 + $0xa4] sm:$0x1] }
 0x229   : > { %v2224_v27 = vsel %vm3511_vm3, %v2009_v23, %v2502_v18 }
 0x22a   : > { %v2008_v26 = vsel %vm3502_vm2, %v2000_v15, %v2007_v22  ;;  %2503 = vst [vmem:[%s3169_s22 + $0x8c] sm:$0x1] %v2224_v27 }
 0x22b   : > { %2501 = vst.msk [vmem:[%s3169_s22 + $0x88] sm:$0xf] %vm329_vm12, %v2008_v26 }
 0x239   : > { %v2620_v28 = vpop.f32.mrb[8].mxu1 }
 0x23a   : > { %v1530_v3 = vadd.f32 %v2620_v28, %v3466_v56  ;;  %v1521_v33 = vpop.f32.mrb[9].mxu1 }
 0x23b   : > { %v1522_v34 = vadd.f32 %v3466_v56, %v1521_v33  ;;  %v2621_v1 = vpop.f32.mrb[10].mxu1 }
 0x23c   : > { %v2557_v35 = vpack.c.bf16 %v1530_v3, %v1530_v3  ;;  %v1533_v36 = vadd.f32 %v2621_v1, %v3466_v56  ;;  %v1524_v37 = vpop.f32.mrb[11].mxu1  ;;  %v1648_v0 = vmul.f32 %v1530_v3, %v1530_v3  ;;  %v1603_v50 = vsel %vm1156_vm6, %v1530_v3, 0.0 }
 0x23d   : > { %v1599_v38 = vsel %vm1156_vm6, %v1522_v34, 0.0  ;;  %v1646_v16 = vmul.f32 %v1522_v34, %v1522_v34  ;;  %v2555_v39 = vpack.c.bf16 %v1522_v34, %v1522_v34  ;;  %v1525_v12 = vadd.f32 %v3466_v56, %v1524_v37 }
 0x23e   : > { %v2045_v40 = vshrl.u32 %v2557_v35, 16  ;;  %v1600_v51 = vadd.f32 %v1599_v38, %v1598_v19  ;;  %v2048_v42 = vshll.u32 %v2557_v35, 16  ;;  %v2558_v47 = vpack.c.bf16 %v1533_v36, %v1533_v36 }
 0x23f   : > { %v1701_v29 = vsel %vm1156_vm6, %v1646_v16, 0.0  ;;  %v2028_v43 = vshrl.u32 %v2555_v39, 16  ;;  %v2031_v46 = vshll.u32 %v2555_v39, 16  ;;  %v1601_v52 = vsel %vm1156_vm6, %v1525_v12, 0.0 }
 0x240   : > { %v2047_v44 = vrot.slane %v2045_v40, 7  ;;  %v1702_v45 = vadd.f32 %v1701_v29, %v1700_v24  ;;  %v1647_v30 = vmul.f32 %v1525_v12, %v1525_v12  ;;  %v2556_v62 = vpack.c.bf16 %v1525_v12, %v1525_v12  ;;  %v2697_v40 = vld [vmem:[%s3803_s4] ss:$0 sm:$0xff] }
 0x241   : > { %v2030_v49 = vrot.slane %v2028_v43, 7  ;;  %v1705_v53 = vsel %vm1156_vm6, %v1648_v0, 0.0  ;;  %v1605_v58 = vsel %vm1156_vm6, %v1533_v36, 0.0  ;;  %v2053_v59 = vshrl.u32 %v2558_v47, 16 }
 0x242   : > { %v2050_v55 = vor.u32 %v2048_v42, %v2047_v44  ;;  %v1649_v61 = vmul.f32 %v1533_v36, %v1533_v36  ;;  %v2056_v63 = vshll.u32 %v2558_v47, 16  ;;  %v1602_v2 = vadd.f32 %v1601_v52, %v1600_v51  ;;  %v2524_v52 = vld [vmem:[%s3169_s22 + $0xc0] sm:$0xf] }
 0x243   : > { %v2033_v60 = vor.u32 %v2031_v46, %v2030_v49  ;;  %v2055_v32 = vrot.slane %v2053_v59, 7  ;;  %v1703_v4 = vsel %vm1156_vm6, %v1647_v30, 0.0  ;;  %v2036_v11 = vshrl.u32 %v2556_v62, 16  ;;  %v2519_v59 = vld [vmem:[%s3169_s22 + $0xb4] sm:$0xf] }
 0x244   : > { %v2241_v13 = vsel %vm3490_vm1, %v2050_v55, %v2514_v48  ;;  %v2051_v5 = vrot.slane %v2047_v44, 4  ;;  %v1604_v8 = vadd.f32 %v1603_v50, %v1602_v2  ;;  %v1704_v9 = vadd.f32 %v1703_v4, %v1702_v45 }
 0x245   : > { %2515 = vst [vmem:[%s3169_s22 + $0xa8] sm:$0xf] %v2241_v13  ;;  %v2234_v6 = vsel %vm3490_vm1, %v2033_v60, %v2509_v57  ;;  %v2058_v31 = vor.u32 %v2056_v63, %v2055_v32  ;;  %v2060_v10 = vrot.slane %v2055_v32, 4  ;;  %v2038_v15 = vrot.slane %v2036_v11, 7 }
 0x246   : > { %2510 = vst [vmem:[%s3169_s22 + $0x9c] sm:$0xf] %v2234_v6  ;;  %v2039_v14 = vshll.u32 %v2556_v62, 16  ;;  %v2034_v17 = vrot.slane %v2030_v49, 4  ;;  %v1707_v18 = vsel %vm1156_vm6, %v1649_v61, 0.0  ;;  %v1706_v19 = vadd.f32 %v1705_v53, %v1704_v9 }
 0x247   : > { %v1606_v21 = vadd.f32 %v1605_v58, %v1604_v8  ;;  %v2059_v22 = vsel %vm3502_vm2, %v2051_v5, %v2058_v31  ;;  %v2245_v23 = vsel %vm3511_vm3, %v2060_v10, %v2517_v7  ;;  %v2043_v26 = vrot.slane %v2038_v15, 4  ;;  %v2527_v9 = vld [vmem:[%s3169_s22 + $0xc8] sm:$0x1] }
 0x248   : > { %v2041_v24 = vor.u32 %v2039_v14, %v2038_v15  ;;  %2516 = vst.msk [vmem:[%s3169_s22 + $0xac] sm:$0xf] %vm329_vm12, %v2059_v22  ;;  %2518 = vst [vmem:[%s3169_s22 + $0xb0] sm:$0x1] %v2245_v23  ;;  %v1708_v27 = vadd.f32 %v1707_v18, %v1706_v19  ;;  %v2522_v23 = vld [vmem:[%s3169_s22 + $0xbc] sm:$0x1] }
 0x249   : > { %v2238_v3 = vsel %vm3511_vm3, %v2043_v26, %v2512_v20 }
 0x24a   : > { %v2042_v28 = vsel %vm3502_vm2, %v2034_v17, %v2041_v24  ;;  %2513 = vst [vmem:[%s3169_s22 + $0xa4] sm:$0x1] %v2238_v3 }
 0x24b   : > { %2511 = vst.msk [vmem:[%s3169_s22 + $0xa0] sm:$0xf] %vm329_vm12, %v2042_v28 }
 0x25c   : > { %v2624_v33 = vpop.f32.mrb[12].mxu1 }
 0x25d   : > { %v1546_v34 = vadd.f32 %v2624_v33, %v3466_v56  ;;  %v1537_v1 = vpop.f32.mrb[13].mxu1 }
 0x25e   : > { %v1538_v35 = vadd.f32 %v3466_v56, %v1537_v1  ;;  %v2625_v36 = vpop.f32.mrb[14].mxu1 }
 0x25f   : > { %v2561_v37 = vpack.c.bf16 %v1546_v34, %v1546_v34  ;;  %v1549_v38 = vadd.f32 %v2625_v36, %v3466_v56  ;;  %v1540_v16 = vpop.f32.mrb[15].mxu1  ;;  %v1652_v50 = vmul.f32 %v1546_v34, %v1546_v34  ;;  %v1611_v43 = vsel %vm1156_vm6, %v1546_v34, 0.0 }
 0x260   : > { %v1607_v39 = vsel %vm1156_vm6, %v1538_v35, 0.0  ;;  %v1650_v12 = vmul.f32 %v1538_v35, %v1538_v35  ;;  %v2559_v0 = vpack.c.bf16 %v1538_v35, %v1538_v35  ;;  %v1541_v51 = vadd.f32 %v2697_v40, %v1540_v16 }
 0x261   : > { %v2079_v42 = vshrl.u32 %v2561_v37, 16  ;;  %v1608_v29 = vadd.f32 %v1607_v39, %v1606_v21  ;;  %v2082_v44 = vshll.u32 %v2561_v37, 16  ;;  %v2562_v49 = vpack.c.bf16 %v1549_v38, %v1549_v38 }
 0x262   : > { %v1709_v56 = vsel %vm1156_vm6, %v1650_v12, 0.0  ;;  %v2062_v45 = vshrl.u32 %v2559_v0, 16  ;;  %v2065_v48 = vshll.u32 %v2559_v0, 16  ;;  %v1609_v62 = vsel %vm1156_vm6, %v1541_v51, 0.0 }
 0x263   : > { %v2081_v46 = vrot.slane %v2079_v42, 7  ;;  %v1710_v47 = vadd.f32 %v1709_v56, %v1708_v27  ;;  %v1651_v53 = vmul.f32 %v1541_v51, %v1541_v51  ;;  %v2560_v55 = vpack.c.bf16 %v1541_v51, %v1541_v51 }
 0x264   : > { %v2064_v30 = vrot.slane %v2062_v45, 7  ;;  %v1713_v57 = vsel %vm1156_vm6, %v1652_v50, 0.0  ;;  %v1613_v60 = vsel %vm1156_vm6, %v1549_v38, 0.0  ;;  %v2087_v61 = vshrl.u32 %v2562_v49, 16 }
 0x265   : > { %v2084_v58 = vor.u32 %v2082_v44, %v2081_v46  ;;  %v1653_v2 = vmul.f32 %v1549_v38, %v1549_v38  ;;  %v2090_v13 = vshll.u32 %v2562_v49, 16  ;;  %v1610_v32 = vadd.f32 %v1609_v62, %v1608_v29 }
 0x266   : > { %v2067_v63 = vor.u32 %v2065_v48, %v2064_v30  ;;  %v2089_v11 = vrot.slane %v2087_v61, 7  ;;  %v1711_v5 = vsel %vm1156_vm6, %v1651_v53, 0.0  ;;  %v2070_v6 = vshrl.u32 %v2560_v55, 16 }
 0x267   : > { %v2255_v4 = vsel %vm3490_vm1, %v2084_v58, %v2524_v52  ;;  %v2085_v7 = vrot.slane %v2081_v46, 4  ;;  %v1612_v31 = vadd.f32 %v1611_v43, %v1610_v32  ;;  %v1712_v10 = vadd.f32 %v1711_v5, %v1710_v47 }
 0x268   : > { %2525 = vst [vmem:[%s3169_s22 + $0xc0] sm:$0xf] %v2255_v4  ;;  %v2248_v8 = vsel %vm3490_vm1, %v2067_v63, %v2519_v59  ;;  %v2092_v15 = vor.u32 %v2090_v13, %v2089_v11  ;;  %v2094_v14 = vrot.slane %v2089_v11, 4  ;;  %v2072_v17 = vrot.slane %v2070_v6, 7 }
 0x269   : > { %2520 = vst [vmem:[%s3169_s22 + $0xb4] sm:$0xf] %v2248_v8  ;;  %v2073_v18 = vshll.u32 %v2560_v55, 16  ;;  %v2068_v19 = vrot.slane %v2064_v30, 4  ;;  %v1715_v20 = vsel %vm1156_vm6, %v1653_v2, 0.0  ;;  %v1614_v21 = vadd.f32 %v1613_v60, %v1612_v31 }
 0x26a   : > { %v1714_v22 = vadd.f32 %v1713_v57, %v1712_v10  ;;  %v2093_v41 = vsel %vm3502_vm2, %v2085_v7, %v2092_v15  ;;  %v2259_v24 = vsel %vm3511_vm3, %v2094_v14, %v2527_v9  ;;  %v2077_v27 = vrot.slane %v2072_v17, 4 }
 0x26b   : > { %v2075_v26 = vor.u32 %v2073_v18, %v2072_v17  ;;  %2526 = vst.msk [vmem:[%s3169_s22 + $0xc4] sm:$0xf] %vm329_vm12, %v2093_v41  ;;  %2528 = vst [vmem:[%s3169_s22 + $0xc8] sm:$0x1] %v2259_v24  ;;  %v1615_v28 = vrot.slane %v1614_v21, 4 }
 0x26c   : > { %v1716_v3 = vadd.f32 %v1715_v20, %v1714_v22  ;;  %v2252_v34 = vsel %vm3511_vm3, %v2077_v27, %v2522_v23 }
 0x26d   : > { %v2076_v33 = vsel %vm3502_vm2, %v2068_v19, %v2075_v26  ;;  %v1616_v1 = vadd.f32 %v1615_v28, %v1614_v21  ;;  %2523 = vst [vmem:[%s3169_s22 + $0xbc] sm:$0x1] %v2252_v34 }
 0x26e   : > { %v1717_v35 = vrot.slane %v1716_v3, 4  ;;  %2521 = vst.msk [vmem:[%s3169_s22 + $0xb8] sm:$0xf] %vm329_vm12, %v2076_v33 }
 0x26f   : > { %v1617_v36 = vrot.slane %v1616_v1, 2 }
 0x270   : > { %v1718_v37 = vadd.f32 %v1717_v35, %v1716_v3 }
 0x271   : > { %v1618_v38 = vadd.f32 %v1617_v36, %v1616_v1 }
 0x272   : > { %v1719_v16 = vrot.slane %v1718_v37, 2 }
 0x273   : > { %v1619_v39 = vrot.slane %v1618_v38, 1 }
 0x274   : > { %v1720_v12 = vadd.f32 %v1719_v16, %v1718_v37 }
 0x275   : > { %v1620_v25 = vadd.f32 %v1619_v39, %v1618_v38 }
 0x276   : > { %v1721_v0 = vrot.slane %v1720_v12, 1 }
 0x278   : > { %v1722_v54 = vadd.f32 %v1721_v0, %v1720_v12 }
 0x27a   : > { %v2262_v40 = vsel %vm2261_vm4, %v1620_v25, %v1722_v54 }
 0x27b   : > { %2264 = vst.msk [vmem:[%s262_s29] sm:$0x3] %vm2263_vm5, %v2262_v40 }
 0x27c PF: > { %s17_s21 = sadd.s32 1, %s2704_s21  }
 0x27d   : > { %p14_p4 = scmp.ge.s32.totalorder %s17_s21, 4  }
 0x27f   :  { %16 = sbr.rel (!%p14_p4) target bundleno = 1 (0x1), region = 83 }

// kernel: fcnn_forward.6
= control target key start
LH: loop header
LB: loop body
LE: loop exit
PB: predicated region body
PF: predicated region fallthrough
CT: control target
= control target key end

     0   :  { %s3202_s21 = smov 0   ;;  %s4726_s0 = inlined_call_operand.vmem [shape: bf16[2,18,18,32], index: 0, kind: input, shape index: {}]   ;;  %s4727_s1 = inlined_call_operand.vmem [shape: f32[1,1,32], index: 1, kind: input, shape index: {}]   ;;  %s4728_s2 = inlined_call_operand.vmem [shape: f32[1,1,32], index: 2, kind: input, shape index: {}]   ;;  %s4729_s3 = inlined_call_operand.vmem [shape: bf16[288,32], index: 3, kind: input, shape index: {}]   ;;  %s4730_s4 = inlined_call_operand.vmem [shape: f32[1,32], index: 4, kind: input, shape index: {}]   ;;  %s4731_s5 = inlined_call_operand.vmem [shape: bf16[2,18,18,32], index: 5, kind: output, shape index: {0}]   ;;  %s4732_s6 = inlined_call_operand.vmem [shape: f32[2,2,32], index: 6, kind: output, shape index: {1}]  }
   0x1 LB: > { %s2704_s22 = sadd.s32 4294967295, %s3161_s21   ;;  %p2708_p0 = scmp.ge.s32.totalorder %s3161_s21, 1  ;;  %s3161_s21 = sphi %s3202_s21, %s17_s21  }
   0x2   : > { %p215_p1 = scmp.lt.s32.totalorder %s3161_s21, 3 }
   0x4   : > { %p216_p2 = pnand %p2708_p0, %p215_p1 }
   0x6   : > { %219 = sbr.rel (%p216_p2) target bundleno = 625 (0x271), region = 40 }
   0xd   : > { %p249_p3 = scmp.lt.s32.totalorder %s2704_s22, 1  ;;  %v3134_v0 = vld [vmem:[%s4729_s3 + $0x40] sm:$0xff]   ;;  %v3136_v2 = vld [vmem:[%s4729_s3 + $0x48] sm:$0xff]   ;;  %v3138_v5 = vld [vmem:[%s4729_s3 + $0x50] sm:$0xff]   ;;  %vm935_vm0 = vcmask 1046528   ;;  %s3163_s19 = smov 64  }
   0xe   : > { %v3135_v1 = vld [vmem:[%s4729_s3] sm:$0xff]   ;;  %2939 = vmatprep.subr.bf16.mxu0 %v3134_v0  ;;  %3105 = vmatprep.subr.bf16.mxu1 %v3134_v0  ;;  %v3137_v4 = vld [vmem:[%s4729_s3 + $0x8] sm:$0xff]   ;;  %v3139_v57 = vld [vmem:[%s4729_s3 + $0x10] sm:$0xff]   ;;  %s3164_s29 = smov 96   ;;  %s3165_s30 = smov 32   ;;  %vm1178_vm2 = vcmask 261120  }
   0xf   : > { %s4767_s22 = smov (!%p249_p3, %s2704_s22), 1  ;;  %2940 = vmatpush3.bf16.msra.mxu0 %v3135_v1  ;;  %3113 = vmatpush3.bf16.msra.mxu1 %v3135_v1  ;;  %v3225_v3 = vld [vmem:[%s4727_s1] ss:$0 sm:$0xff]  ;;  %vm678_vm1 = vsmask.f32 7424  ;;  %vm1211_vm3 = vcmask 523264  }
  0x10   : > { %s3121_s27 = smul.u32 216, %s4767_s22  ;;  %2941 = vmatprep.subr.bf16.mxu0 %v3136_v2  ;;  %3106 = vmatprep.subr.bf16.mxu1 %v3136_v2  ;;  %v3248_v15 = vld [vmem:[%s4728_s2] ss:$0 sm:$0xff]  ;;  %v3140_v2 = vld [vmem:[%s4729_s3 + $0x58] sm:$0xff]   ;;  %vm1244_vm4 = vcmask 785408   ;;  %vm622_vm5 = vcmask 257024  }
  0x11   : > { %vm625_vm6 = vcmask 253952   ;;  %vm2498_vm7 = vsmask.f32 7938  ;;  %vm2173_vm8 = vsmask.f32 256  ;;  %s2711_s15 = sshll.u32 %s4767_s22, 1 }
  0x12   : > { %s3235_s12 = scalar_lea.vmem %s4726_s0, %s3121_s27  ;;  %vm2174_vm9 = vsmask.f32 4368  ;;  %vm4199_vm10 = vmand %vm622_vm5, %vm2498_vm7  ;;  %vm2614_vm13 = vcmask 1040384   ;;  %s262_s18 = scalar_lea.vmem %s4732_s6, %s2711_s15  ;;  %vm2616_vm14 = vcmask 254976  }
  0x13   : > { %v274_v6 = vld [vmem:[%s3235_s12 + $0x24] sm:$0xff]   ;;  %v2931_v7 = vld [vmem:[%s3235_s12 + $0x18] sm:$0xff]   ;;  %v268_v8 = vld [vmem:[%s3235_s12 + $0xc] sm:$0xff]   ;;  %2942 = vmatpush3.bf16.msra.mxu0 %v3137_v4  ;;  %3114 = vmatpush3.bf16.msra.mxu1 %v3137_v4 }
  0x14   : > { %v328_v9 = vunpack.c.l.bf16 %v274_v6  ;;  %v329_v10 = vunpack.c.h.bf16 %v274_v6  ;;  %v2901_v11 = vunpack.c.l.bf16 %v2931_v7  ;;  %v2902_v12 = vunpack.c.h.bf16 %v2931_v7  ;;  %v270_v13 = vld [vmem:[%s3235_s12 + $0x14] sm:$0x1]  ;;  %v273_v14 = vld [vmem:[%s3235_s12 + $0x20] sm:$0x1]  ;;  %2943 = vmatprep.subr.bf16.mxu0 %v3138_v5  ;;  %3107 = vmatprep.subr.bf16.mxu1 %v3138_v5  ;;  %v276_v36 = vld [vmem:[%s3235_s12 + $0x2c] sm:$0x1] }
  0x15   : > { %v322_v16 = vunpack.c.l.bf16 %v268_v8  ;;  %v323_v17 = vunpack.c.h.bf16 %v268_v8  ;;  %v324_v18 = vunpack.c.l.bf16 %v270_v13  ;;  %v327_v19 = vunpack.c.l.bf16 %v273_v14  ;;  %v2896_v37 = vld [vmem:[%s3235_s12] sm:$0xff]   ;;  %v267_v46 = vld [vmem:[%s3235_s12 + $0x8] sm:$0x1]  ;;  %v3141_v8 = vld [vmem:[%s4729_s3 + $0x18] sm:$0xff]  }
  0x16   : > { %v389_v20 = vmul.f32 %v3225_v3, %v328_v9  ;;  %v390_v21 = vmul.f32 %v3225_v3, %v329_v10  ;;  %v386_v22 = vmul.f32 %v2901_v11, %v3225_v3  ;;  %v387_v23 = vmul.f32 %v2902_v12, %v3225_v3  ;;  %v304_v51 = vld [vmem:[%s3235_s12 + $0x9c] sm:$0xff]   ;;  %v306_v56 = vld [vmem:[%s3235_s12 + $0xa4] sm:$0x1]  ;;  %vm4211_vm11 = vmor %vm2173_vm8, %vm2174_vm9 }
  0x17   : > { %v383_v24 = vmul.f32 %v3225_v3, %v322_v16  ;;  %v384_v25 = vmul.f32 %v3225_v3, %v323_v17  ;;  %v385_v26 = vmul.f32 %v3225_v3, %v324_v18  ;;  %v388_v27 = vmul.f32 %v3225_v3, %v327_v19  ;;  %2944 = vmatpush3.bf16.msra.mxu0 %v3139_v57  ;;  %v3142_v13 = vld [vmem:[%s4729_s3 + $0x60] sm:$0xff]   ;;  %vm4220_vm12 = vmand %vm625_vm6, %vm2173_vm8 }
  0x18   : > { %v450_v28 = vadd.f32 %v3248_v15, %v389_v20  ;;  %v451_v29 = vadd.f32 %v3248_v15, %v390_v21  ;;  %v447_v30 = vadd.f32 %v3248_v15, %v386_v22  ;;  %v448_v31 = vadd.f32 %v3248_v15, %v387_v23  ;;  %3115 = vmatpush3.bf16.msra.mxu1 %v3139_v57  ;;  %v3143_v23 = vld [vmem:[%s4729_s3 + $0x20] sm:$0xff]  }
  0x19   : > { %v444_v32 = vadd.f32 %v3248_v15, %v383_v24  ;;  %v445_v33 = vadd.f32 %v3248_v15, %v384_v25  ;;  %v446_v34 = vadd.f32 %v3248_v15, %v385_v26  ;;  %v449_v35 = vadd.f32 %v3248_v15, %v388_v27  ;;  %2945 = vmatprep.subr.bf16.mxu0 %v3140_v2  ;;  %v3144_v24 = vld [vmem:[%s4729_s3 + $0x68] sm:$0xff]  }
  0x1a   : > { %v504_v38 = vmax.f32 %v450_v28, 0.0  ;;  %v505_v39 = vmax.f32 %v451_v29, 0.0  ;;  %v501_v40 = vmax.f32 %v447_v30, 0.0  ;;  %v502_v41 = vmax.f32 %v448_v31, 0.0  ;;  %3108 = vmatprep.subr.bf16.mxu1 %v3140_v2 }
  0x1b   : > { %v498_v42 = vmax.f32 %v444_v32, 0.0  ;;  %v499_v43 = vmax.f32 %v445_v33, 0.0  ;;  %v500_v44 = vmax.f32 %v446_v34, 0.0  ;;  %v503_v45 = vmax.f32 %v449_v35, 0.0  ;;  %2946 = vmatpush3.bf16.msra.mxu0 %v3141_v8 }
  0x1c   : > { %v3269_v47 = vpack.c.bf16 %v505_v39, %v504_v38  ;;  %v3271_v48 = vpack.c.bf16 %v502_v41, %v501_v40  ;;  %v330_v49 = vunpack.c.l.bf16 %v276_v36  ;;  %v2897_v50 = vunpack.c.l.bf16 %v2896_v37  ;;  %3116 = vmatpush3.bf16.msra.mxu1 %v3141_v8  ;;  %2947 = vmatprep.subr.bf16.mxu0 %v3142_v13 }
  0x1d   : > { %v3274_v52 = vpack.c.bf16 %v499_v43, %v498_v42  ;;  %v3276_v53 = vpack.c.bf16 %v500_v44, %v500_v44  ;;  %v3278_v54 = vpack.c.bf16 %v503_v45, %v503_v45  ;;  %v2898_v55 = vunpack.c.h.bf16 %v2896_v37  ;;  %3109 = vmatprep.subr.bf16.mxu1 %v3142_v13  ;;  %v3145_v37 = vld [vmem:[%s4729_s3 + $0x28] sm:$0xff]   ;;  %v303_v13 = vld [vmem:[%s3235_s12 + $0x98] sm:$0x1] }
  0x1e   : > { %1100 = vrot.lane.b32.xlu0 %v3269_v47, %s3163_s19  ;;  %1098 = vrot.lane.b32.xlu1 %v3271_v48, %s3163_s19  ;;  %v942_v58 = vrot.slane %v3271_v48, 1  ;;  %v391_v59 = vmul.f32 %v3225_v3, %v330_v49  ;;  %v945_v60 = vrot.slane %v3269_v47, 1  ;;  %v321_v61 = vunpack.c.l.bf16 %v267_v46  ;;  %v3146_v46 = vld [vmem:[%s4729_s3 + $0x70] sm:$0xff]  }
  0x1f   : > { %v939_v62 = vrot.slane %v3274_v52, 1  ;;  %v940_v63 = vrot.slane %v3276_v53, 1  ;;  %v943_v0 = vrot.slane %v3278_v54, 1  ;;  %v380_v1 = vmul.f32 %v2897_v50, %v3225_v3  ;;  %2948 = vmatpush3.bf16.msra.mxu0 %v3143_v23 }
  0x20   : > { %v452_v4 = vadd.f32 %v3248_v15, %v391_v59  ;;  %v381_v5 = vmul.f32 %v2898_v55, %v3225_v3  ;;  %v382_v6 = vmul.f32 %v3225_v3, %v321_v61  ;;  %v358_v7 = vunpack.c.l.bf16 %v304_v51  ;;  %3117 = vmatpush3.bf16.msra.mxu1 %v3143_v23  ;;  %2949 = vmatprep.subr.bf16.mxu0 %v3144_v24  ;;  %v2936_v55 = vld [vmem:[%s3235_s12 + $0x90] sm:$0xff]  }
  0x21   : > { %v3305_v9 = vsel %vm935_vm0, %v939_v62, %v940_v63  ;;  %v3308_v10 = vsel %vm935_vm0, %v942_v58, %v943_v0  ;;  %v441_v11 = vadd.f32 %v3248_v15, %v380_v1  ;;  %v359_v12 = vunpack.c.h.bf16 %v304_v51  ;;  %3110 = vmatprep.subr.bf16.mxu1 %v3144_v24  ;;  %v3147_v0 = vld [vmem:[%s4729_s3 + $0x30] sm:$0xff]  }
  0x22   : > { %1017 = vrot.lane.b32.xlu1 %v3274_v52, %s3164_s29  ;;  %1065 = vrot.lane.b32.xlu0 %v3305_v9, %s3165_s30  ;;  %v506_v14 = vmax.f32 %v452_v4, 0.0  ;;  %v442_v16 = vadd.f32 %v3248_v15, %v381_v5  ;;  %v443_v17 = vadd.f32 %v3248_v15, %v382_v6  ;;  %v360_v18 = vunpack.c.l.bf16 %v306_v56  ;;  %v3148_v6 = vld [vmem:[%s4729_s3 + $0x78] sm:$0xff]  }
  0x23   : > { %v495_v19 = vmax.f32 %v441_v11, 0.0  ;;  %v419_v20 = vmul.f32 %v3225_v3, %v358_v7  ;;  %v420_v21 = vmul.f32 %v3225_v3, %v359_v12  ;;  %v704_v22 = vshrl.u32 %v3271_v48, 16  ;;  %2950 = vmatpush3.bf16.msra.mxu0 %v3145_v37 }
  0x24   : > { %v3329_v25 = vpack.c.bf16 %v506_v14, %v506_v14  ;;  %v496_v26 = vmax.f32 %v442_v16, 0.0  ;;  %v497_v27 = vmax.f32 %v443_v17, 0.0  ;;  %v421_v28 = vmul.f32 %v3225_v3, %v360_v18  ;;  %2951 = vmatprep.subr.bf16.mxu0 %v3146_v46  ;;  %3118 = vmatpush3.bf16.msra.mxu1 %v3145_v37  ;;  %v2937_v18 = vld [vmem:[%s3235_s12 + $0xa8] sm:$0xff]   ;;  %v309_v37 = vld [vmem:[%s3235_s12 + $0xb0] sm:$0x1] }
  0x25   : > { %v480_v29 = vadd.f32 %v3248_v15, %v419_v20  ;;  %v481_v30 = vadd.f32 %v3248_v15, %v420_v21  ;;  %v706_v31 = vshll.u32 %v3271_v48, 16  ;;  %v711_v32 = vshll.u32 %v3278_v54, 16  ;;  %3111 = vmatprep.subr.bf16.mxu1 %v3146_v46 }
  0x26   : > { %1019 = vrot.lane.b32.xlu1 %v3271_v48, %s3164_s29  ;;  %1067 = vrot.lane.b32.xlu0 %v3308_v10, %s3165_s30  ;;  %v946_v33 = vrot.slane %v3329_v25, 1  ;;  %v3341_v34 = vpack.c.bf16 %v496_v26, %v495_v19  ;;  %v550_v35 = vpack.c.bf16 %v497_v27, %v497_v27  ;;  %v482_v36 = vadd.f32 %v3248_v15, %v421_v28  ;;  %v2932_v19 = vld [vmem:[%s3235_s12 + $0x30] sm:$0xff]  }
  0x27   : > { %v534_v38 = vmax.f32 %v480_v29, 0.0  ;;  %v535_v39 = vmax.f32 %v481_v30, 0.0  ;;  %v708_v40 = vrot.slane %v706_v31, 1  ;;  %v713_v41 = vrot.slane %v711_v32, 1  ;;  %2952 = vmatpush3.bf16.msra.mxu0 %v3147_v0 }
  0x28   : > { %v3348_v42 = vsel %vm935_vm0, %v945_v60, %v946_v33  ;;  %v936_v43 = vrot.slane %v3341_v34, 1  ;;  %v937_v44 = vrot.slane %v550_v35, 1  ;;  %v680_v45 = vshrl.u32 %v3341_v34, 16  ;;  %2953 = vmatprep.subr.bf16.mxu0 %v3148_v6  ;;  %3119 = vmatpush3.bf16.msra.mxu1 %v3147_v0 }
  0x29   : > { %v682_v49 = vshll.u32 %v3341_v34, 16  ;;  %v687_v50 = vshll.u32 %v550_v35, 16  ;;  %v536_v51 = vmax.f32 %v482_v36, 0.0  ;;  %v3356_v54 = vpack.c.bf16 %v535_v39, %v534_v38  ;;  %3112 = vmatprep.subr.bf16.mxu1 %v3148_v6 }
  0x2a   : > { %1069 = vrot.lane.b32.xlu0 %v3348_v42, %s3165_s30  ;;  %v938_v56 = vsel %vm935_vm0, %v936_v43, %v937_v44  ;;  %v709_v57 = vor.u32 %v708_v40, %v704_v22  ;;  %v692_v58 = vshrl.u32 %v3274_v52, 16  ;;  %v694_v59 = vshll.u32 %v3274_v52, 16  ;;  %v279_v43 = vld [vmem:[%s3235_s12 + $0x38] sm:$0x1] }
  0x2b   : > { %984 = vrot.lane.b32.xlu1 %v938_v56, %s3163_s19  ;;  %v684_v60 = vrot.slane %v682_v49, 1  ;;  %v689_v61 = vrot.slane %v687_v50, 1  ;;  %v3365_v62 = vpack.c.bf16 %v536_v51, %v536_v51  ;;  %v975_v63 = vrot.slane %v3356_v54, 1 }
  0x2c   : > { %v3372_v1 = vsel %vm678_vm1, %v709_v57, %v713_v41  ;;  %v696_v2 = vrot.slane %v694_v59, 1  ;;  %v699_v4 = vshll.u32 %v3276_v53, 16  ;;  %v716_v5 = vshrl.u32 %v3269_v47, 16 }
  0x2d   : > { %v685_v7 = vor.u32 %v684_v60, %v680_v45  ;;  %v976_v8 = vrot.slane %v3365_v62, 1  ;;  %v718_v11 = vshll.u32 %v3269_v47, 16  ;;  %v723_v12 = vshll.u32 %v3329_v25, 16 }
  0x2e   : > { %v697_v14 = vor.u32 %v696_v2, %v692_v58  ;;  %v701_v53 = vrot.slane %v699_v4, 1  ;;  %v2921_v16 = vunpack.c.l.bf16 %v2936_v55  ;;  %v2922_v17 = vunpack.c.h.bf16 %v2936_v55 }
  0x2f   : > { %986 = vrot.lane.b32.xlu1 %v3305_v9, %s3163_s19  ;;  %v690_v20 = vsel %vm678_vm1, %v685_v7, %v689_v61  ;;  %v3389_v21 = vsel %vm935_vm0, %v975_v63, %v976_v8  ;;  %v720_v22 = vrot.slane %v718_v11, 1  ;;  %v725_v23 = vrot.slane %v723_v12, 1  ;;  %v3149_v9 = vld [vmem:[%s4729_s3 + $0x38] sm:$0xff]  }
  0x30   : > { %4742 = vst [vmem:[#allocation2_spill] sm:$0xff] %v3389_v21  ;;  %871 = vrot.lane.b32.xlu0 %v690_v20, %s3165_s30  ;;  %v3393_v24 = vsel %vm678_vm1, %v697_v14, %v701_v53  ;;  %v357_v25 = vunpack.c.l.bf16 %v303_v13  ;;  %v416_v26 = vmul.f32 %v2921_v16, %v3225_v3  ;;  %v417_v27 = vmul.f32 %v2922_v17, %v3225_v3 }
  0x31   : > { %v721_v28 = vor.u32 %v720_v22, %v716_v5  ;;  %v2925_v29 = vunpack.c.l.bf16 %v2937_v18  ;;  %v2926_v30 = vunpack.c.h.bf16 %v2937_v18  ;;  %v2905_v31 = vunpack.c.l.bf16 %v2932_v19  ;;  %2954 = vmatpush3.bf16.msra.mxu0 %v3149_v9  ;;  %3120 = vmatpush3.bf16.msra.mxu1 %v3149_v9 }
  0x32   : > { %v418_v32 = vmul.f32 %v3225_v3, %v357_v25  ;;  %v477_v33 = vadd.f32 %v3248_v15, %v416_v26  ;;  %v478_v35 = vadd.f32 %v3248_v15, %v417_v27  ;;  %v2906_v36 = vunpack.c.h.bf16 %v2932_v19  ;;  %v310_v27 = vld [vmem:[%s3235_s12 + $0xb4] sm:$0xff]  }
  0x33   : > { %1089 = vrot.lane.b32.xlu1 %v3389_v21, %s3165_s30  ;;  %v3407_v38 = vsel %vm678_vm1, %v721_v28, %v725_v23  ;;  %v422_v39 = vmul.f32 %v2925_v29, %v3225_v3  ;;  %v423_v40 = vmul.f32 %v2926_v30, %v3225_v3  ;;  %v392_v41 = vmul.f32 %v2905_v31, %v3225_v3 }
  0x34   : > { %1142 = vrot.lane.b32.xlu0 %v3372_v1, %s3164_s29  ;;  %v479_v44 = vadd.f32 %v3248_v15, %v418_v32  ;;  %v531_v45 = vmax.f32 %v477_v33, 0.0  ;;  %v532_v46 = vmax.f32 %v478_v35, 0.0  ;;  %v393_v49 = vmul.f32 %v2906_v36, %v3225_v3 }
  0x35   : > { %v483_v50 = vadd.f32 %v3248_v15, %v422_v39  ;;  %v484_v51 = vadd.f32 %v3248_v15, %v423_v40  ;;  %v453_v55 = vadd.f32 %v3248_v15, %v392_v41  ;;  %v363_v56 = vunpack.c.l.bf16 %v309_v37  ;;  %v280_v40 = vld [vmem:[%s3235_s12 + $0x3c] sm:$0xff]  }
  0x36   : > { %v533_v57 = vmax.f32 %v479_v44, 0.0  ;;  %v3420_v58 = vpack.c.bf16 %v532_v46, %v531_v45  ;;  %v454_v59 = vadd.f32 %v3248_v15, %v393_v49  ;;  %v333_v60 = vunpack.c.l.bf16 %v279_v43  ;;  %v312_v43 = vld [vmem:[%s3235_s12 + $0xbc] sm:$0x1]  ;;  %v282_v44 = vld [vmem:[%s3235_s12 + $0x44] sm:$0x1] }
  0x37   : > { %873 = vrot.lane.b32.xlu1 %v3393_v24, %s3165_s30  ;;  %v537_v61 = vmax.f32 %v483_v50, 0.0  ;;  %v538_v63 = vmax.f32 %v484_v51, 0.0  ;;  %v507_v0 = vmax.f32 %v453_v55, 0.0  ;;  %v424_v2 = vmul.f32 %v3225_v3, %v363_v56 }
  0x38   : > { %1144 = vrot.lane.b32.xlu0 %v3407_v38, %s3164_s29  ;;  %v574_v4 = vpack.c.bf16 %v533_v57, %v533_v57  ;;  %v824_v5 = vshrl.u32 %v3420_v58, 16  ;;  %v826_v6 = vshll.u32 %v3420_v58, 16  ;;  %v508_v7 = vmax.f32 %v454_v59, 0.0 }
  0x39   : > { %v3430_v8 = vpack.c.bf16 %v538_v63, %v537_v61  ;;  %v485_v11 = vadd.f32 %v3248_v15, %v424_v2  ;;  %v394_v12 = vmul.f32 %v3225_v3, %v333_v60  ;;  %v972_v33 = vrot.slane %v3420_v58, 1 }
  0x3a   : > { %v828_v13 = vrot.slane %v826_v6, 1  ;;  %v831_v14 = vshll.u32 %v574_v4, 16  ;;  %v3434_v53 = vpack.c.bf16 %v508_v7, %v507_v0  ;;  %v973_v35 = vrot.slane %v574_v4, 1 }
  0x3b   : > { %v539_v16 = vmax.f32 %v485_v11, 0.0  ;;  %v850_v17 = vshll.u32 %v3430_v8, 16  ;;  %v455_v18 = vadd.f32 %v3248_v15, %v394_v12  ;;  %v848_v28 = vshrl.u32 %v3430_v8, 16 }
  0x3c   : > { %v829_v19 = vor.u32 %v828_v13, %v824_v5  ;;  %v833_v20 = vrot.slane %v831_v14, 1  ;;  %875 = vrot.lane.b32.xlu0 %v3372_v1, %s3165_s30  ;;  %v728_v25 = vshrl.u32 %v3434_v53, 16  ;;  %v730_v26 = vshll.u32 %v3434_v53, 16 }
  0x3d   : > { %v3440_v22 = vpack.c.bf16 %v539_v16, %v539_v16  ;;  %v509_v23 = vmax.f32 %v455_v18, 0.0  ;;  %v852_v29 = vrot.slane %v850_v17, 1  ;;  %v364_v36 = vunpack.c.l.bf16 %v310_v27 }
  0x3e   : > { %v3446_v9 = vsel %vm678_vm1, %v829_v19, %v833_v20  ;;  %v732_v32 = vrot.slane %v730_v26, 1  ;;  %v365_v41 = vunpack.c.h.bf16 %v310_v27  ;;  %v3462_v51 = vsel %vm935_vm0, %v972_v33, %v973_v35 }
  0x3f   : > { %895 = vrot.lane.b32.xlu1 %v3446_v9, %s3165_s30  ;;  %v855_v30 = vshll.u32 %v3440_v22, 16  ;;  %v558_v31 = vpack.c.bf16 %v509_v23, %v509_v23  ;;  %v853_v45 = vor.u32 %v852_v29, %v848_v28  ;;  %v425_v50 = vmul.f32 %v3225_v3, %v364_v36 }
  0x40   : > { %1102 = vrot.lane.b32.xlu0 %v3434_v53, %s3163_s19  ;;  %v733_v37 = vor.u32 %v732_v32, %v728_v25  ;;  %v426_v55 = vmul.f32 %v3225_v3, %v365_v41  ;;  %v334_v56 = vunpack.c.l.bf16 %v280_v40  ;;  %v335_v57 = vunpack.c.h.bf16 %v280_v40  ;;  %v2933_v41 = vld [vmem:[%s3235_s12 + $0x48] sm:$0xff]  }
  0x41   : > { %v735_v39 = vshll.u32 %v558_v31, 16  ;;  %v857_v46 = vrot.slane %v855_v30, 1  ;;  %v366_v60 = vunpack.c.l.bf16 %v312_v43  ;;  %v336_v61 = vunpack.c.l.bf16 %v282_v44 }
  0x42   : > { %v395_v63 = vmul.f32 %v3225_v3, %v334_v56  ;;  %v396_v0 = vmul.f32 %v3225_v3, %v335_v57  ;;  %v838_v4 = vshll.u32 %v3356_v54, 16  ;;  %v486_v5 = vadd.f32 %v3248_v15, %v425_v50 }
  0x43   : > { %1122 = vrot.lane.b32.xlu1 %v3430_v8, %s3163_s19  ;;  %v737_v49 = vrot.slane %v735_v39, 1  ;;  %v3475_v2 = vsel %vm678_vm1, %v853_v45, %v857_v46  ;;  %v397_v6 = vmul.f32 %v3225_v3, %v336_v61  ;;  %v487_v7 = vadd.f32 %v3248_v15, %v426_v55  ;;  %v2938_v46 = vld [vmem:[%s3235_s12 + $0xc0] sm:$0xff]  }
  0x44   : > { %988 = vrot.lane.b32.xlu0 %v3308_v10, %s3163_s19  ;;  %v456_v11 = vadd.f32 %v3248_v15, %v395_v63  ;;  %v457_v12 = vadd.f32 %v3248_v15, %v396_v0  ;;  %v427_v13 = vmul.f32 %v3225_v3, %v366_v60  ;;  %v948_v14 = vrot.slane %v3434_v53, 1  ;;  %v285_v60 = vld [vmem:[%s3235_s12 + $0x50] sm:$0x1] }
  0x45   : > { %v3468_v59 = vsel %vm678_vm1, %v733_v37, %v737_v49  ;;  %v949_v16 = vrot.slane %v558_v31, 1  ;;  %v458_v17 = vadd.f32 %v3248_v15, %v397_v6  ;;  %v978_v20 = vrot.slane %v3430_v8, 1 }
  0x46   : > { %v510_v18 = vmax.f32 %v456_v11, 0.0  ;;  %v511_v19 = vmax.f32 %v457_v12, 0.0  ;;  %v979_v23 = vrot.slane %v3440_v22, 1  ;;  %v836_v25 = vshrl.u32 %v3356_v54, 16 }
  0x47   : > { %1008 = vrot.lane.b32.xlu1 %v3462_v51, %s3163_s19  ;;  %v843_v26 = vshll.u32 %v3365_v62, 16  ;;  %v840_v27 = vrot.slane %v838_v4, 1  ;;  %v540_v28 = vmax.f32 %v486_v5, 0.0  ;;  %v541_v29 = vmax.f32 %v487_v7, 0.0 }
  0x48   : > { %1146 = vrot.lane.b32.xlu0 %v3468_v59, %s3164_s29  ;;  %v488_v30 = vadd.f32 %v3248_v15, %v427_v13  ;;  %v3498_v31 = vsel %vm935_vm0, %v948_v14, %v949_v16  ;;  %v3500_v32 = vpack.c.bf16 %v511_v19, %v510_v18  ;;  %v512_v33 = vmax.f32 %v458_v17, 0.0  ;;  %v315_v13 = vld [vmem:[%s3235_s12 + $0xc8] sm:$0x1] }
  0x49   : > { %v3505_v62 = vsel %vm935_vm0, %v978_v20, %v979_v23  ;;  %v841_v22 = vor.u32 %v840_v27, %v836_v25  ;;  %v845_v35 = vrot.slane %v843_v26, 1  ;;  %v3509_v36 = vpack.c.bf16 %v541_v29, %v540_v28 }
  0x4a   : > { %4743 = vst [vmem:[#allocation3_spill] sm:$0xff] %v3505_v62  ;;  %v542_v37 = vmax.f32 %v488_v30, 0.0  ;;  %v560_v39 = vpack.c.bf16 %v512_v33, %v512_v33  ;;  %v742_v40 = vshll.u32 %v3500_v32, 16  ;;  %v2909_v49 = vunpack.c.l.bf16 %v2933_v41 }
  0x4b   : > { %1166 = vrot.lane.b32.xlu1 %v3475_v2, %s3164_s29  ;;  %v3516_v43 = vsel %vm678_vm1, %v841_v22, %v845_v35  ;;  %v862_v45 = vshll.u32 %v3509_v36, 16  ;;  %v740_v50 = vshrl.u32 %v3500_v32, 16  ;;  %v2910_v57 = vunpack.c.h.bf16 %v2933_v41 }
  0x4c   : > { %1021 = vrot.lane.b32.xlu0 %v3269_v47, %s3164_s29  ;;  %v580_v44 = vpack.c.bf16 %v542_v37, %v542_v37  ;;  %v744_v55 = vrot.slane %v742_v40, 1  ;;  %v747_v56 = vshll.u32 %v560_v39, 16  ;;  %v2929_v61 = vunpack.c.l.bf16 %v2938_v46 }
  0x4d   : > { %v2930_v63 = vunpack.c.h.bf16 %v2938_v46  ;;  %v860_v0 = vshrl.u32 %v3509_v36, 16  ;;  %v864_v4 = vrot.slane %v862_v45, 1  ;;  %v398_v6 = vmul.f32 %v2909_v49, %v3225_v3 }
  0x4e   : > { %v867_v5 = vshll.u32 %v580_v44, 16  ;;  %v745_v7 = vor.u32 %v744_v55, %v740_v50  ;;  %v749_v11 = vrot.slane %v747_v56, 1  ;;  %v399_v12 = vmul.f32 %v2910_v57, %v3225_v3 }
  0x4f   : > { %1041 = vrot.lane.b32.xlu1 %v3356_v54, %s3164_s29  ;;  %v339_v14 = vunpack.c.l.bf16 %v285_v60  ;;  %v428_v16 = vmul.f32 %v2929_v61, %v3225_v3  ;;  %v865_v17 = vor.u32 %v864_v4, %v860_v0  ;;  %v429_v19 = vmul.f32 %v2930_v63, %v3225_v3  ;;  %v286_v4 = vld [vmem:[%s3235_s12 + $0x54] sm:$0xff]  }
  0x50   : > { %1071 = vrot.lane.b32.xlu0 %v3498_v31, %s3165_s30  ;;  %v869_v18 = vrot.slane %v867_v5, 1  ;;  %v369_v20 = vunpack.c.l.bf16 %v315_v13  ;;  %v3539_v23 = vsel %vm678_vm1, %v745_v7, %v749_v11  ;;  %v459_v25 = vadd.f32 %v3248_v15, %v398_v6  ;;  %v316_v7 = vld [vmem:[%s3235_s12 + $0xcc] sm:$0xff]  }
  0x51   : > { %v460_v26 = vadd.f32 %v3248_v15, %v399_v12  ;;  %v400_v27 = vmul.f32 %v3225_v3, %v339_v14  ;;  %v489_v28 = vadd.f32 %v3248_v15, %v428_v16  ;;  %v951_v30 = vrot.slane %v3500_v32, 1 }
  0x52   : > { %v3548_v29 = vsel %vm678_vm1, %v865_v17, %v869_v18  ;;  %v490_v33 = vadd.f32 %v3248_v15, %v429_v19  ;;  %v430_v22 = vmul.f32 %v3225_v3, %v369_v20  ;;  %v952_v35 = vrot.slane %v560_v39, 1  ;;  %v288_v17 = vld [vmem:[%s3235_s12 + $0x5c] sm:$0x1] }
  0x53   : > { %1091 = vrot.lane.b32.xlu1 %v3505_v62, %s3165_s30  ;;  %v513_v37 = vmax.f32 %v459_v25, 0.0  ;;  %v514_v40 = vmax.f32 %v460_v26, 0.0  ;;  %v461_v41 = vadd.f32 %v3248_v15, %v400_v27  ;;  %v981_v45 = vrot.slane %v3509_v36, 1 }
  0x54   : > { %877 = vrot.lane.b32.xlu0 %v3407_v38, %s3165_s30  ;;  %v982_v46 = vrot.slane %v580_v44, 1  ;;  %v543_v49 = vmax.f32 %v489_v28, 0.0  ;;  %v544_v50 = vmax.f32 %v490_v33, 0.0  ;;  %v491_v55 = vadd.f32 %v3248_v15, %v430_v22  ;;  %v318_v22 = vld [vmem:[%s3235_s12 + $0xd4] sm:$0x1] }
  0x55   : > { %v3563_v39 = vsel %vm935_vm0, %v951_v30, %v952_v35  ;;  %v3565_v56 = vpack.c.bf16 %v514_v40, %v513_v37  ;;  %v515_v57 = vmax.f32 %v461_v41, 0.0  ;;  %v340_v11 = vunpack.c.l.bf16 %v286_v4 }
  0x56   : > { %4744 = vst [vmem:[#allocation4_spill] sm:$0xff] %v3563_v39  ;;  %v3570_v60 = vsel %vm935_vm0, %v981_v45, %v982_v46  ;;  %v3574_v44 = vpack.c.bf16 %v544_v50, %v543_v49  ;;  %v545_v61 = vmax.f32 %v491_v55, 0.0  ;;  %v341_v16 = vunpack.c.h.bf16 %v286_v4 }
  0x57   : > { %897 = vrot.lane.b32.xlu1 %v3516_v43, %s3165_s30  ;;  %4745 = vst [vmem:[#allocation5_spill] sm:$0xff] %v3570_v60  ;;  %v562_v63 = vpack.c.bf16 %v515_v57, %v515_v57  ;;  %v754_v0 = vshll.u32 %v3565_v56, 16  ;;  %v752_v12 = vshrl.u32 %v3565_v56, 16  ;;  %v370_v18 = vunpack.c.l.bf16 %v316_v7 }
  0x58   : > { %1104 = vrot.lane.b32.xlu0 %v3500_v32, %s3163_s19  ;;  %v582_v5 = vpack.c.bf16 %v545_v61, %v545_v61  ;;  %v1052_v6 = vshll.u32 %v3574_v44, 16  ;;  %v371_v19 = vunpack.c.h.bf16 %v316_v7  ;;  %v1050_v20 = vshrl.u32 %v3574_v44, 16 }
  0x59   : > { %v756_v13 = vrot.slane %v754_v0, 1  ;;  %v759_v14 = vshll.u32 %v562_v63, 16  ;;  %v401_v27 = vmul.f32 %v3225_v3, %v340_v11  ;;  %v402_v33 = vmul.f32 %v3225_v3, %v341_v16  ;;  %v2934_v16 = vld [vmem:[%s3235_s12 + $0x60] sm:$0xff]  }
  0x5a   : > { %v1054_v25 = vrot.slane %v1052_v6, 1  ;;  %v1057_v26 = vshll.u32 %v582_v5, 16  ;;  %v342_v35 = vunpack.c.l.bf16 %v288_v17  ;;  %v431_v37 = vmul.f32 %v3225_v3, %v370_v18 }
  0x5b   : > { %1124 = vrot.lane.b32.xlu1 %v3509_v36, %s3163_s19  ;;  %v757_v28 = vor.u32 %v756_v13, %v752_v12  ;;  %v761_v30 = vrot.slane %v759_v14, 1  ;;  %v432_v40 = vmul.f32 %v3225_v3, %v371_v19  ;;  %v372_v46 = vunpack.c.l.bf16 %v318_v22 }
  0x5c   : > { %990 = vrot.lane.b32.xlu0 %v3348_v42, %s3163_s19  ;;  %v1055_v41 = vor.u32 %v1054_v25, %v1050_v20  ;;  %v1059_v45 = vrot.slane %v1057_v26, 1  ;;  %v462_v50 = vadd.f32 %v3248_v15, %v401_v27  ;;  %v463_v55 = vadd.f32 %v3248_v15, %v402_v33  ;;  %v291_v33 = vld [vmem:[%s3235_s12 + $0x68] sm:$0x1] }
  0x5d   : > { %v3601_v49 = vsel %vm678_vm1, %v757_v28, %v761_v30  ;;  %v403_v57 = vmul.f32 %v3225_v3, %v342_v35  ;;  %v492_v61 = vadd.f32 %v3248_v15, %v431_v37  ;;  %v493_v0 = vadd.f32 %v3248_v15, %v432_v40 }
  0x5e   : > { %v3611_v4 = vsel %vm678_vm1, %v1055_v41, %v1059_v45  ;;  %v954_v6 = vrot.slane %v3565_v56, 1  ;;  %v433_v7 = vmul.f32 %v3225_v3, %v372_v46  ;;  %v955_v11 = vrot.slane %v562_v63, 1 }
  0x5f   : > { %1010 = vrot.lane.b32.xlu1 %v3389_v21, %s3163_s19  ;;  %v516_v12 = vmax.f32 %v462_v50, 0.0  ;;  %v517_v13 = vmax.f32 %v463_v55, 0.0  ;;  %v464_v14 = vadd.f32 %v3248_v15, %v403_v57  ;;  %v1062_v17 = vrot.slane %v3574_v44, 1  ;;  %v300_v21 = vld [vmem:[%s3235_s12 + $0x8c] sm:$0x1] }
  0x60   : > { %1148 = vrot.lane.b32.xlu0 %v3539_v23, %s3164_s29  ;;  %v1063_v18 = vrot.slane %v582_v5, 1  ;;  %v546_v19 = vmax.f32 %v492_v61, 0.0  ;;  %v547_v20 = vmax.f32 %v493_v0, 0.0  ;;  %v494_v25 = vadd.f32 %v3248_v15, %v433_v7 }
  0x61   : > { %v2913_v63 = vunpack.c.l.bf16 %v2934_v16  ;;  %v2914_v26 = vunpack.c.h.bf16 %v2934_v16  ;;  %v3626_v27 = vsel %vm935_vm0, %v954_v6, %v955_v11  ;;  %v3628_v28 = vpack.c.bf16 %v517_v13, %v516_v12  ;;  %v292_v6 = vld [vmem:[%s3235_s12 + $0x6c] sm:$0xff]  }
  0x62   : > { %4746 = vst [vmem:[#allocation6_spill] sm:$0xff] %v3626_v27  ;;  %v518_v30 = vmax.f32 %v464_v14, 0.0  ;;  %v3634_v5 = vsel %vm935_vm0, %v1062_v17, %v1063_v18  ;;  %v3636_v22 = vpack.c.bf16 %v547_v20, %v546_v19  ;;  %v548_v35 = vmax.f32 %v494_v25, 0.0 }
  0x63   : > { %1168 = vrot.lane.b32.xlu1 %v3548_v29, %s3164_s29  ;;  %4747 = vst [vmem:[#allocation7_spill] sm:$0xff] %v3628_v28  ;;  %4748 = vst [vmem:[#allocation8_spill] sm:$0xff] %v3634_v5  ;;  %v404_v37 = vmul.f32 %v2913_v63, %v3225_v3  ;;  %v405_v40 = vmul.f32 %v2914_v26, %v3225_v3  ;;  %v345_v41 = vunpack.c.l.bf16 %v291_v33  ;;  %v766_v46 = vshll.u32 %v3628_v28, 16  ;;  %v294_v33 = vld [vmem:[%s3235_s12 + $0x74] sm:$0x1] }
  0x64   : > { %1023 = vrot.lane.b32.xlu0 %v3434_v53, %s3164_s29  ;;  %4749 = vst [vmem:[#allocation9_spill] sm:$0xff] %v3636_v22  ;;  %v3642_v45 = vpack.c.bf16 %v518_v30, %v518_v30  ;;  %v1133_v50 = vshll.u32 %v3636_v22, 16  ;;  %v3650_v55 = vpack.c.bf16 %v548_v35, %v548_v35  ;;  %v764_v7 = vshrl.u32 %v3628_v28, 16  ;;  %v3668_v30 = vld [vmem:[%s4729_s3 + $0x80] sm:$0xff]  }
  0x65   : > { %v465_v57 = vadd.f32 %v3248_v15, %v404_v37  ;;  %v466_v61 = vadd.f32 %v3248_v15, %v405_v40  ;;  %v406_v0 = vmul.f32 %v3225_v3, %v345_v41  ;;  %v768_v11 = vrot.slane %v766_v46, 1  ;;  %3069 = vmatprep.subr.bf16.mxu1 %v3668_v30 }
  0x66   : > { %4750 = vst [vmem:[#allocation10_spill] sm:$0xff] %v3650_v55  ;;  %v771_v12 = vshll.u32 %v3642_v45, 16  ;;  %v1131_v13 = vshrl.u32 %v3636_v22, 16  ;;  %v1135_v14 = vrot.slane %v1133_v50, 1  ;;  %v346_v16 = vunpack.c.l.bf16 %v292_v6 }
  0x67   : > { %1043 = vrot.lane.b32.xlu1 %v3430_v8, %s3164_s29  ;;  %v347_v17 = vunpack.c.h.bf16 %v292_v6  ;;  %v1138_v18 = vshll.u32 %v3650_v55, 16  ;;  %v519_v19 = vmax.f32 %v465_v57, 0.0  ;;  %v520_v20 = vmax.f32 %v466_v61, 0.0 }
  0x68   : > { %1073 = vrot.lane.b32.xlu0 %v3563_v39, %s3165_s30  ;;  %v467_v25 = vadd.f32 %v3248_v15, %v406_v0  ;;  %v769_v63 = vor.u32 %v768_v11, %v764_v7  ;;  %v773_v26 = vrot.slane %v771_v12, 1  ;;  %v1136_v35 = vor.u32 %v1135_v14, %v1131_v13 }
  0x69   : > { %v407_v37 = vmul.f32 %v3225_v3, %v346_v16  ;;  %v1140_v40 = vrot.slane %v1138_v18, 1  ;;  %v3677_v41 = vpack.c.bf16 %v520_v20, %v519_v19  ;;  %v408_v50 = vmul.f32 %v3225_v3, %v347_v17  ;;  %v3700_v17 = vld [vmem:[%s4727_s1] ss:$0 sm:$0xff]  ;;  %v2935_v19 = vld [vmem:[%s3235_s12 + $0x78] sm:$0xff]  }
  0x6a   : > { %v521_v46 = vmax.f32 %v467_v25, 0.0  ;;  %v3681_v57 = vsel %vm678_vm1, %v769_v63, %v773_v26  ;;  %v348_v61 = vunpack.c.l.bf16 %v294_v33  ;;  %v957_v14 = vrot.slane %v3628_v28, 1 }
  0x6b   : > { %1093 = vrot.lane.b32.xlu1 %v3570_v60, %s3165_s30  ;;  %v468_v0 = vadd.f32 %v3248_v15, %v407_v37  ;;  %v1141_v6 = vsel %vm678_vm1, %v1136_v35, %v1140_v40  ;;  %v778_v12 = vshll.u32 %v3677_v41, 16  ;;  %v469_v13 = vadd.f32 %v3248_v15, %v408_v50  ;;  %v3716_v37 = vld [vmem:[%s4728_s2] ss:$0 sm:$0xff] }
  0x6c   : > { %879 = vrot.lane.b32.xlu0 %v3468_v59, %s3165_s30  ;;  %v566_v3 = vpack.c.bf16 %v521_v46, %v521_v46  ;;  %v958_v16 = vrot.slane %v3642_v45, 1  ;;  %v409_v18 = vmul.f32 %v3700_v17, %v348_v61  ;;  %v776_v45 = vshrl.u32 %v3677_v41, 16  ;;  %v297_v61 = vld [vmem:[%s3235_s12 + $0x80] sm:$0x1] }
  0x6d   : > { %v522_v20 = vmax.f32 %v468_v0, 0.0  ;;  %v780_v63 = vrot.slane %v778_v12, 1  ;;  %v523_v33 = vmax.f32 %v469_v13, 0.0  ;;  %v2917_v46 = vunpack.c.l.bf16 %v2935_v19 }
  0x6e   : > { %v783_v26 = vshll.u32 %v566_v3, 16  ;;  %v3711_v35 = vsel %vm935_vm0, %v957_v14, %v958_v16  ;;  %v470_v40 = vadd.f32 %v3716_v37, %v409_v18  ;;  %v2918_v50 = vunpack.c.h.bf16 %v2935_v19 }
  0x6f   : > { %899 = vrot.lane.b32.xlu1 %v3475_v2, %s3165_s30  ;;  %v781_v12 = vor.u32 %v780_v63, %v776_v45  ;;  %v3726_v14 = vpack.c.bf16 %v523_v33, %v522_v20  ;;  %v410_v18 = vmul.f32 %v3700_v17, %v2917_v46  ;;  %v351_v55 = vunpack.c.l.bf16 %v297_v61 }
  0x70   : > { %1106 = vrot.lane.b32.xlu0 %v3565_v56, %s3163_s19  ;;  %v785_v13 = vrot.slane %v783_v26, 1  ;;  %v524_v16 = vmax.f32 %v470_v40, 0.0  ;;  %v411_v19 = vmul.f32 %v3700_v17, %v2918_v50  ;;  %v960_v20 = vrot.slane %v3677_v41, 1  ;;  %v298_v26 = vld [vmem:[%s3235_s12 + $0x84] sm:$0xff]  }
  0x71   : > { %v961_v45 = vrot.slane %v566_v3, 1  ;;  %v790_v63 = vshll.u32 %v3726_v14, 16  ;;  %v471_v46 = vadd.f32 %v3716_v37, %v410_v18  ;;  %v412_v61 = vmul.f32 %v3700_v17, %v351_v55 }
  0x72   : > { %v568_v40 = vpack.c.bf16 %v524_v16, %v524_v16  ;;  %v472_v50 = vadd.f32 %v3716_v37, %v411_v19  ;;  %v353_v18 = vunpack.c.h.bf16 %v298_v26 }
  0x73   : > { %1126 = vrot.lane.b32.xlu1 %v3574_v44, %s3163_s19  ;;  %v3750_v3 = vsel %vm935_vm0, %v960_v20, %v961_v45  ;;  %v792_v16 = vrot.slane %v790_v63, 1  ;;  %v525_v19 = vmax.f32 %v471_v46, 0.0  ;;  %v473_v55 = vadd.f32 %v3716_v37, %v412_v61 }
  0x74   : > { %992 = vrot.lane.b32.xlu0 %v3498_v31, %s3163_s19  ;;  %v354_v46 = vunpack.c.l.bf16 %v300_v21 }
  0x77   : > { %1012 = vrot.lane.b32.xlu1 %v3505_v62, %s3163_s19  ;;  %v526_v62 = vmax.f32 %v472_v50, 0.0 }
  0x78   : > { %1150 = vrot.lane.b32.xlu0 %v3601_v49, %s3164_s29 }
  0x79   : > { %v3768_v61 = vpack.c.bf16 %v526_v62, %v525_v19 }
  0x7b   : > { %1170 = vrot.lane.b32.xlu1 %v3611_v4, %s3164_s29 }
  0x7c   : > { %1025 = vrot.lane.b32.xlu0 %v3500_v32, %s3164_s29 }
  0x7f   : > { %1045 = vrot.lane.b32.xlu1 %v3509_v36, %s3164_s29 }
  0x80   : > { %1075 = vrot.lane.b32.xlu0 %v3626_v27, %s3165_s30 }
  0x83   : > { %1095 = vrot.lane.b32.xlu1 %v3634_v5, %s3165_s30 }
  0x84   : > { %881 = vrot.lane.b32.xlu0 %v3539_v23, %s3165_s30 }
  0x87   : > { %901 = vrot.lane.b32.xlu1 %v3548_v29, %s3165_s30 }
  0x88   : > { %1108 = vrot.lane.b32.xlu0 %v3628_v28, %s3163_s19 }
  0x8b   : > { %1128 = vrot.lane.b32.xlu1 %v3636_v22, %s3163_s19  ;;  %v3737_v22 = vsel %vm678_vm1, %v781_v12, %v785_v13  ;;  %v352_v12 = vunpack.c.l.bf16 %v298_v26  ;;  %v788_v13 = vshrl.u32 %v3726_v14, 16  ;;  %v414_v26 = vmul.f32 %v3700_v17, %v353_v18 }
  0x8c   : > { %994 = vrot.lane.b32.xlu0 %v3563_v39, %s3163_s19  ;;  %v802_v18 = vshll.u32 %v3768_v61, 16 }
  0x8d   : > { %v413_v45 = vmul.f32 %v3700_v17, %v352_v12  ;;  %v793_v63 = vor.u32 %v792_v16, %v788_v13  ;;  %v963_v13 = vrot.slane %v3726_v14, 1 }
  0x8f   : > { %1014 = vrot.lane.b32.xlu1 %v3570_v60, %s3163_s19  ;;  %v795_v60 = vshll.u32 %v568_v40, 16 }
  0x90   : > { %1152 = vrot.lane.b32.xlu0 %v3681_v57, %s3164_s29  ;;  %v3689_v7 = vpop.permute.xlu0 %1100  ;;  %v3691_v11 = vpop.permute.xlu1 %1098 }
  0x93   : > { %1172 = vrot.lane.b32.xlu1 %v1141_v6, %s3164_s29 }
  0x94   : > { %1027 = vrot.lane.b32.xlu0 %v3565_v56, %s3164_s29  ;;  %v3707_v15 = vpop.permute.xlu1 %1017  ;;  %v1066_v25 = vpop.permute.xlu0 %1065 }
  0x97   : > { %1047 = vrot.lane.b32.xlu1 %v3574_v44, %s3164_s29 }
  0x98   : > { %1077 = vrot.lane.b32.xlu0 %v3711_v35, %s3165_s30  ;;  %v3724_v0 = vpop.permute.xlu1 %1019  ;;  %v1068_v6 = vpop.permute.xlu0 %1067 }
  0x99   : > { %v1298_v12 = vsel %vm1178_vm2, %v3372_v1, %v1068_v6  ;;  %v415_v1 = vmul.f32 %v3700_v17, %v354_v46 }
  0x9b   : > { %883 = vrot.lane.b32.xlu1 %v3601_v49, %s3165_s30 }
  0x9c   : > { %1110 = vrot.lane.b32.xlu0 %v3677_v41, %s3163_s19  ;;  %v3734_v44 = vpop.permute.xlu0 %1069 }
  0x9d   : > { %v985_v33 = vpop.permute.xlu1 %984 }
  0x9f   : > { %996 = vrot.lane.b32.xlu1 %v3626_v27, %s3163_s19  ;;  %v1295_v27 = vsel %vm1178_vm2, %v3393_v24, %v1066_v25  ;;  %v797_v25 = vrot.slane %v795_v60, 1  ;;  %v964_v60 = vrot.slane %v568_v40, 1 }
  0xa0   : > { %1154 = vrot.lane.b32.xlu0 %v3737_v22, %s3164_s29 }
  0xa1   : > { %v987_v5 = vpop.permute.xlu1 %986  ;;  %v3786_v6 = vsel %vm678_vm1, %v793_v63, %v797_v25  ;;  %v804_v63 = vrot.slane %v802_v18, 1 }
  0xa2   : > { %v872_v39 = vpop.permute.xlu0 %871 }
  0xa3   : > { %1029 = vrot.lane.b32.xlu1 %v3628_v28, %s3164_s29  ;;  %v1180_v20 = vsel %vm1178_vm2, %v3341_v34, %v872_v39  ;;  %v527_v28 = vmax.f32 %v473_v55, 0.0  ;;  %v1342_v39 = vsel %vm1211_vm3, %v1295_v27, %v3691_v11  ;;  %v475_v27 = vadd.f32 %v3716_v37, %v414_v26 }
  0xa4   : > { %1079 = vrot.lane.b32.xlu0 %v3750_v3, %s3165_s30  ;;  %v1213_v24 = vsel %vm1211_vm3, %v1180_v20, %v985_v33  ;;  %v474_v33 = vadd.f32 %v3716_v37, %v413_v45 }
  0xa5   : > { %v3765_v50 = vpop.permute.xlu1 %1089  ;;  %v1246_v62 = vsel %vm1244_vm4, %v1213_v24, %v3707_v15  ;;  %v570_v16 = vpack.c.bf16 %v527_v28, %v527_v28  ;;  %v1344_v15 = vsel %vm1211_vm3, %v1298_v12, %v3689_v7  ;;  %v3799_v28 = vsel %vm935_vm0, %v963_v13, %v964_v60 }
  0xa6   : > { %v1143_v34 = vpop.permute.xlu0 %1142  ;;  %v528_v40 = vmax.f32 %v474_v33, 0.0  ;;  %v529_v20 = vmax.f32 %v475_v27, 0.0  ;;  %v800_v7 = vshrl.u32 %v3768_v61, 16 }
  0xa7   : > { %885 = vrot.lane.b32.xlu1 %v3681_v57, %s3165_s30  ;;  %v1374_v21 = vsel %vm1244_vm4, %v1342_v39, %v1143_v34  ;;  %v807_v26 = vshll.u32 %v570_v16, 16  ;;  %v967_v13 = vrot.slane %v570_v16, 1 }
  0xa8   : > { %1112 = vrot.lane.b32.xlu0 %v3726_v14, %s3163_s19  ;;  %1615 = vmatprep.mubr.bf16.mxu0 %v1374_v21  ;;  %v805_v34 = vor.u32 %v804_v63, %v800_v7  ;;  %v3810_v39 = vpack.c.bf16 %v529_v20, %v528_v40  ;;  %v966_v21 = vrot.slane %v3768_v61, 1  ;;  %v1331_v20 = vsel %vm1178_vm2, %v3516_v43, %v3765_v50 }
  0xa9   : > { %1616 = vmatmul.mubr.bf16.vlgmr.msra.gmra.mrb[0].mxu0 %v1246_v62  ;;  %v874_v11 = vpop.permute.xlu1 %873 }
  0xaa   : > { %v1182_v19 = vsel %vm1178_vm2, %v3274_v52, %v874_v11  ;;  %v1145_v55 = vpop.permute.xlu0 %1144  ;;  %v476_v52 = vadd.f32 %v3716_v37, %v415_v1  ;;  %v809_v37 = vrot.slane %v807_v26, 1  ;;  %v814_v60 = vshll.u32 %v3810_v39, 16 }
  0xab   : > { %998 = vrot.lane.b32.xlu1 %v3711_v35, %s3163_s19  ;;  %v1377_v17 = vsel %vm1244_vm4, %v1344_v15, %v1145_v55  ;;  %v1215_v45 = vsel %vm1211_vm3, %v1182_v19, %v987_v5  ;;  %v3826_v1 = vsel %vm935_vm0, %v966_v21, %v967_v13  ;;  %v1301_v11 = vsel %vm1178_vm2, %v3407_v38, %v3734_v44  ;;  %v3151_v21 = vld [vmem:[%s4729_s3 + $0x88] sm:$0xff]  }
  0xac   : > { %1156 = vrot.lane.b32.xlu0 %v3786_v6, %s3164_s29  ;;  %1623 = vmatprep.mubr.bf16.mxu0 %v1377_v17  ;;  %v1249_v24 = vsel %vm1244_vm4, %v1215_v45, %v3724_v0  ;;  %v530_v5 = vmax.f32 %v476_v52, 0.0  ;;  %v3818_v0 = vsel %vm678_vm1, %v805_v34, %v809_v37  ;;  %v812_v18 = vshrl.u32 %v3810_v39, 16 }
  0xad   : > { %v816_v19 = vrot.slane %v814_v60, 1 }
  0xae   : > { %v876_v46 = vpop.permute.xlu0 %875  ;;  %v572_v62 = vpack.c.bf16 %v530_v5, %v530_v5  ;;  %v969_v5 = vrot.slane %v3810_v39, 1 }
  0xaf   : > { %1031 = vrot.lane.b32.xlu1 %v3677_v41, %s3164_s29  ;;  %v1184_v38 = vsel %vm1178_vm2, %v3271_v48, %v876_v46  ;;  %v817_v45 = vor.u32 %v816_v19, %v812_v18 }
  0xb0   : > { %1081 = vrot.lane.b32.xlu0 %v3799_v28, %s3165_s30  ;;  %v819_v55 = vshll.u32 %v572_v62, 16 }
  0xb1   : > { %v896_v25 = vpop.permute.xlu1 %895  ;;  %1624 = vmatmul.mubr.bf16.gmra.mrb[4].mxu0 %v1249_v24 }
  0xb2   : > { %v1103_v12 = vpop.permute.xlu0 %1102  ;;  %v821_v7 = vrot.slane %v819_v55, 1  ;;  %v1204_v34 = vsel %vm1178_vm2, %v3420_v58, %v896_v25 }
  0xb3   : > { %887 = vrot.lane.b32.xlu1 %v3737_v22, %s3165_s30  ;;  %v1346_v15 = vsel %vm1211_vm3, %v1301_v11, %v1103_v12  ;;  %v970_v12 = vrot.slane %v572_v62, 1 }
  0xb4   : > { %1114 = vrot.lane.b32.xlu0 %v3768_v61, %s3163_s19  ;;  %v3855_v37 = vsel %vm678_vm1, %v817_v45, %v821_v7 }
  0xb5   : > { %v1123_v33 = vpop.permute.xlu1 %1122  ;;  %v3868_v60 = vsel %vm935_vm0, %v969_v5, %v970_v12 }
  0xb6   : > { %v989_v27 = vpop.permute.xlu0 %988  ;;  %v1366_v44 = vsel %vm1211_vm3, %v1331_v20, %v1123_v33 }
  0xb7   : > { %1000 = vrot.lane.b32.xlu1 %v3750_v3, %s3163_s19  ;;  %v1217_v63 = vsel %vm1211_vm3, %v1184_v38, %v989_v27 }
  0xb8   : > { %1158 = vrot.lane.b32.xlu0 %v3818_v0, %s3164_s29 }
  0xb9   : > { %v1009_v16 = vpop.permute.xlu1 %1008 }
  0xba   : > { %v1147_v17 = vpop.permute.xlu0 %1146  ;;  %v1237_v48 = vsel %vm1211_vm3, %v1204_v34, %v1009_v16 }
  0xbb   : > { %1033 = vrot.lane.b32.xlu1 %v3726_v14, %s3164_s29  ;;  %v1380_v40 = vsel %vm1244_vm4, %v1346_v15, %v1147_v17 }
  0xbc   : > { %1083 = vrot.lane.b32.xlu0 %v3826_v1, %s3165_s30  ;;  %1631 = vmatprep.mubr.bf16.mxu0 %v1380_v40 }
  0xbd   : > { %v1167_v52 = vpop.permute.xlu1 %1166 }
  0xbe   : > { %v1410_v26 = vsel %vm1244_vm4, %v1366_v44, %v1167_v52  ;;  %v1022_v24 = vpop.permute.xlu0 %1021 }
  0xbf   : > { %889 = vrot.lane.b32.xlu1 %v3786_v6, %s3165_s30  ;;  %1711 = vmatprep.mubr.bf16.mxu1 %v1410_v26  ;;  %v1252_v50 = vsel %vm1244_vm4, %v1217_v63, %v1022_v24 }
  0xc0   : > { %1116 = vrot.lane.b32.xlu0 %v3810_v39, %s3163_s19  ;;  %1632 = vmatmul.mubr.bf16.gmra.mrb[8].mxu0 %v1252_v50 }
  0xc1   : > { %v1042_v46 = vpop.permute.xlu1 %1041 }
  0xc2   : > { %v1282_v13 = vsel %vm1244_vm4, %v1237_v48, %v1042_v46  ;;  %v1072_v25 = vpop.permute.xlu0 %1071 }
  0xc3   : > { %1002 = vrot.lane.b32.xlu1 %v3799_v28, %s3163_s19  ;;  %1712 = vmatmul.mubr.bf16.vlgmr.msra.gmra.mrb[0].mxu1 %v1282_v13  ;;  %v1304_v18 = vsel %vm1178_vm2, %v3468_v59, %v1072_v25 }
  0xc4   : > { %1160 = vrot.lane.b32.xlu0 %v3855_v37, %s3164_s29  ;;  %3070 = vmatpush3.bf16.msra.mxu1 %v3668_v30 }
  0xc5   : > { %v1092_v33 = vpop.permute.xlu1 %1091  ;;  %3071 = vmatprep.subr.bf16.mxu1 %v3151_v21 }
  0xc6   : > { %v878_v62 = vpop.permute.xlu0 %877  ;;  %v1334_v40 = vsel %vm1178_vm2, %v3475_v2, %v1092_v33 }
  0xc7   : > { %1035 = vrot.lane.b32.xlu1 %v3768_v61, %s3164_s29  ;;  %v1186_v20 = vsel %vm1178_vm2, %v3269_v47, %v878_v62 }
  0xc8   : > { %1085 = vrot.lane.b32.xlu0 %v3868_v60, %s3165_s30  ;;  %3072 = vmatpush3.bf16.msra.mxu1 %v3151_v21 }
  0xc9   : > { %v898_v27 = vpop.permute.xlu1 %897 }
  0xca   : > { %v1105_v11 = vpop.permute.xlu0 %1104  ;;  %v1206_v7 = vsel %vm1178_vm2, %v3356_v54, %v898_v27 }
  0xcb   : > { %891 = vrot.lane.b32.xlu1 %v3818_v0, %s3165_s30  ;;  %v1348_v55 = vsel %vm1211_vm3, %v1304_v18, %v1105_v11 }
  0xcc   : > { %1118 = vrot.lane.b32.xlu0 %v3420_v58, %s3163_s19 }
  0xcd   : > { %v1125_v30 = vpop.permute.xlu1 %1124 }
  0xce   : > { %v991_v16 = vpop.permute.xlu0 %990  ;;  %v1368_v59 = vsel %vm1211_vm3, %v1334_v40, %v1125_v30 }
  0xcf   : > { %1004 = vrot.lane.b32.xlu1 %v3826_v1, %s3163_s19  ;;  %v1219_v44 = vsel %vm1211_vm3, %v1186_v20, %v991_v16 }
  0xd0   : > { %1162 = vrot.lane.b32.xlu0 %v3446_v9, %s3164_s29 }
  0xd1   : > { %v1011_v19 = vpop.permute.xlu1 %1010 }
  0xd2   : > { %v1149_v15 = vpop.permute.xlu0 %1148  ;;  %v1239_v47 = vsel %vm1211_vm3, %v1206_v7, %v1011_v19 }
  0xd3   : > { %1037 = vrot.lane.b32.xlu1 %v3810_v39, %s3164_s29  ;;  %v1383_v17 = vsel %vm1244_vm4, %v1348_v55, %v1149_v15 }
  0xd4   : > { %1087 = vrot.lane.b32.xlu0 %v3462_v51, %s3165_s30  ;;  %1639 = vmatprep.mubr.bf16.mxu0 %v1383_v17 }
  0xd5   : > { %v1169_v38 = vpop.permute.xlu1 %1168 }
  0xd6   : > { %v1413_v52 = vsel %vm1244_vm4, %v1368_v59, %v1169_v38  ;;  %v1024_v45 = vpop.permute.xlu0 %1023 }
  0xd7   : > { %893 = vrot.lane.b32.xlu1 %v3855_v37, %s3165_s30  ;;  %1719 = vmatprep.mubr.bf16.mxu1 %v1413_v52  ;;  %v1255_v2 = vsel %vm1244_vm4, %v1219_v44, %v1024_v45  ;;  %s4031_s30 = scalar_lea.vmem %s4731_s5, %s3121_s27 }
  0xd8   : > { %1120 = vrot.lane.b32.xlu0 %v3356_v54, %s3163_s19  ;;  %1640 = vmatmul.mubr.bf16.gmra.mrb[12].mxu0 %v1255_v2 }
  0xd9   : > { %v1044_v63 = vpop.permute.xlu1 %1043 }
  0xda   : > { %v1285_v26 = vsel %vm1244_vm4, %v1239_v47, %v1044_v63  ;;  %v1074_v24 = vpop.permute.xlu0 %1073 }
  0xdb   : > { %1006 = vrot.lane.b32.xlu1 %v3868_v60, %s3163_s19  ;;  %1720 = vmatmul.mubr.bf16.gmra.mrb[4].mxu1 %v1285_v26  ;;  %v1307_v12 = vsel %vm1178_vm2, %v3539_v23, %v1074_v24 }
  0xdc   : > { %1164 = vrot.lane.b32.xlu0 %v3516_v43, %s3164_s29 }
  0xdd   : > { %v1094_v50 = vpop.permute.xlu1 %1093 }
  0xde   : > { %v880_v34 = vpop.permute.xlu0 %879  ;;  %v1337_v43 = vsel %vm1178_vm2, %v3548_v29, %v1094_v50 }
  0xdf   : > { %1039 = vrot.lane.b32.xlu1 %v3420_v58, %s3164_s29  ;;  %v1188_v58 = vsel %vm1178_vm2, %v3434_v53, %v880_v34 }
  0xe1   : > { %v900_v54 = vpop.permute.xlu1 %899 }
  0xe2   : > { %v1107_v48 = vpop.permute.xlu0 %1106  ;;  %v1208_v18 = vsel %vm1178_vm2, %v3430_v8, %v900_v54 }
  0xe3   : > { %v1350_v13 = vsel %vm1211_vm3, %v1307_v12, %v1107_v48 }
  0xe5   : > { %v1127_v46 = vpop.permute.xlu1 %1126 }
  0xe6   : > { %v993_v5 = vpop.permute.xlu0 %992  ;;  %v1370_v62 = vsel %vm1211_vm3, %v1337_v43, %v1127_v46 }
  0xe7   : > { %v1221_v11 = vsel %vm1211_vm3, %v1188_v58, %v993_v5 }
  0xe9   : > { %v1013_v21 = vpop.permute.xlu1 %1012 }
  0xea   : > { %v1151_v25 = vpop.permute.xlu0 %1150  ;;  %v1241_v29 = vsel %vm1211_vm3, %v1208_v18, %v1013_v21 }
  0xeb   : > { %v1386_v33 = vsel %vm1244_vm4, %v1350_v13, %v1151_v25 }
  0xec   : > { %1647 = vmatprep.mubr.bf16.mxu0 %v1386_v33 }
  0xed   : > { %v1171_v27 = vpop.permute.xlu1 %1170 }
  0xee   : > { %v1416_v23 = vsel %vm1244_vm4, %v1370_v62, %v1171_v27  ;;  %v1026_v30 = vpop.permute.xlu0 %1025 }
  0xef   : > { %1727 = vmatprep.mubr.bf16.mxu1 %v1416_v23  ;;  %v1258_v16 = vsel %vm1244_vm4, %v1221_v11, %v1026_v30  ;;  %v4751_v23 = vld [vmem:[#allocation4_spill] sm:$0xff] }
  0xf0   : > { %1648 = vmatmul.mubr.bf16.gmra.mrb[16].mxu0 %v1258_v16 }
  0xf1   : > { %v1046_v19 = vpop.permute.xlu1 %1045 }
  0xf2   : > { %v1288_v53 = vsel %vm1244_vm4, %v1241_v29, %v1046_v19  ;;  %v1076_v55 = vpop.permute.xlu0 %1075  ;;  %v4753_v29 = vld [vmem:[#allocation7_spill] sm:$0xff] }
  0xf3   : > { %1728 = vmatmul.mubr.bf16.gmra.mrb[8].mxu1 %v1288_v53  ;;  %v1310_v44 = vsel %vm1178_vm2, %v3601_v49, %v1076_v55 }
  0xf5   : > { %v1096_v15 = vpop.permute.xlu1 %1095 }
  0xf6   : > { %v882_v17 = vpop.permute.xlu0 %881  ;;  %v1340_v7 = vsel %vm1178_vm2, %v3611_v4, %v1096_v15 }
  0xf7   : > { %v1190_v47 = vsel %vm1178_vm2, %v3500_v32, %v882_v17 }
  0xf9   : > { %v902_v40 = vpop.permute.xlu1 %901 }
  0xfa   : > { %v1109_v20 = vpop.permute.xlu0 %1108  ;;  %v1210_v54 = vsel %vm1178_vm2, %v3509_v36, %v902_v40 }
  0xfb   : > { %v1352_v8 = vsel %vm1211_vm3, %v1310_v44, %v1109_v20 }
  0xfd   : > { %v1129_v59 = vpop.permute.xlu1 %1128 }
  0xfe   : > { %v995_v38 = vpop.permute.xlu0 %994  ;;  %v1372_v63 = vsel %vm1211_vm3, %v1340_v7, %v1129_v59 }
  0xff   : > { %v1223_v24 = vsel %vm1211_vm3, %v1190_v47, %v995_v38 }
 0x101   : > { %v1015_v52 = vpop.permute.xlu1 %1014 }
 0x102   : > { %v1153_v45 = vpop.permute.xlu0 %1152  ;;  %v1243_v4 = vsel %vm1211_vm3, %v1210_v54, %v1015_v52 }
 0x103   : > { %v1389_v2 = vsel %vm1244_vm4, %v1352_v8, %v1153_v45 }
 0x104   : > { %1655 = vmatprep.mubr.bf16.mxu0 %v1389_v2 }
 0x105   : > { %v1173_v26 = vpop.permute.xlu1 %1172 }
 0x106   : > { %v1419_v49 = vsel %vm1244_vm4, %v1372_v63, %v1173_v26  ;;  %v1028_v50 = vpop.permute.xlu0 %1027 }
 0x107   : > { %1735 = vmatprep.mubr.bf16.mxu1 %v1419_v49  ;;  %v1261_v34 = vsel %vm1244_vm4, %v1223_v24, %v1028_v50 }
 0x108   : > { %1656 = vmatmul.mubr.bf16.gmra.mrb[20].mxu0 %v1261_v34 }
 0x109   : > { %v1048_v48 = vpop.permute.xlu1 %1047 }
 0x10a   : > { %v1291_v32 = vsel %vm1244_vm4, %v1243_v4, %v1048_v48  ;;  %v1078_v46 = vpop.permute.xlu0 %1077 }
 0x10b   : > { %1736 = vmatmul.mubr.bf16.gmra.mrb[12].mxu1 %v1291_v32  ;;  %v1313_v21 = vsel %vm1178_vm2, %v3681_v57, %v1078_v46  ;;  %v4756_v46 = vld [vmem:[#allocation5_spill] sm:$0xff] }
 0x10c   : > { %3073 = vmatprep.mubr.msk.bf16.mxu1 %vm1178_vm2, %v3308_v10 }
 0x10d   : > { %v884_v5 = vpop.permute.xlu1 %883 }
 0x10e   : > { %v1111_v12 = vpop.permute.xlu0 %1110  ;;  %v1192_v43 = vsel %vm1178_vm2, %v3565_v56, %v884_v5 }
 0x10f   : > { %v1354_v25 = vsel %vm1211_vm3, %v1313_v21, %v1111_v12  ;;  %v4757_v21 = vld [vmem:[#allocation8_spill] sm:$0xff] }
 0x111   : > { %v997_v13 = vpop.permute.xlu1 %996 }
 0x112   : > { %v1155_v36 = vpop.permute.xlu0 %1154  ;;  %v1225_v10 = vsel %vm1211_vm3, %v1192_v43, %v997_v13  ;;  %v4758_v13 = vld [vmem:[#allocation9_spill] sm:$0xff] }
 0x113   : > { %3074 = vmatmul.mubr.msk.bf16.vlgmr.msra.gmra.mrb[16].mxu1 %vm1178_vm2, %v3348_v42  ;;  %v1392_v33 = vsel %vm1244_vm4, %v1354_v25, %v1155_v36  ;;  %v4752_v42 = vld [vmem:[#allocation6_spill] sm:$0xff]  ;;  %v1175_v25 = vrot.slane %v4758_v13, 1 }
 0x114   : > { %1663 = vmatprep.mubr.bf16.mxu0 %v1392_v33  ;;  %3077 = vmatprep.mubr.msk.bf16.mxu1 %vm1178_vm2, %v3498_v31  ;;  %v4759_v36 = vld [vmem:[#allocation10_spill] sm:$0xff] }
 0x115   : > { %v1030_v58 = vpop.permute.xlu1 %1029 }
 0x116   : > { %v1264_v57 = vsel %vm1244_vm4, %v1225_v10, %v1030_v58  ;;  %v1080_v62 = vpop.permute.xlu0 %1079 }
 0x117   : > { %1664 = vmatmul.mubr.bf16.gmra.mrb[24].mxu0 %v1264_v57  ;;  %v1316_v56 = vsel %vm1178_vm2, %v3737_v22, %v1080_v62 }
 0x119   : > { %v886_v27 = vpop.permute.xlu1 %885 }
 0x11a   : > { %v1113_v11 = vpop.permute.xlu0 %1112  ;;  %v1194_v19 = vsel %vm1178_vm2, %v4753_v29, %v886_v27 }
 0x11b   : > { %3078 = vmatmul.mubr.msk.bf16.gmra.mrb[20].mxu1 %vm1178_vm2, %v4751_v23  ;;  %v1356_v31 = vsel %vm1211_vm3, %v1316_v56, %v1113_v11 }
 0x11c   : > { %3081 = vmatprep.mubr.msk.bf16.mxu1 %vm1178_vm2, %v4752_v42 }
 0x11d   : > { %v999_v30 = vpop.permute.xlu1 %998 }
 0x11e   : > { %v1157_v16 = vpop.permute.xlu0 %1156  ;;  %v1227_v53 = vsel %vm1211_vm3, %v1194_v19, %v999_v30 }
 0x11f   : > { %v1395_v18 = vsel %vm1244_vm4, %v1356_v31, %v1157_v16 }
 0x120   : > { %1671 = vmatprep.mubr.bf16.mxu0 %v1395_v18 }
 0x121   : > { %v1032_v55 = vpop.permute.xlu1 %1031 }
 0x122   : > { %v1267_v15 = vsel %vm1244_vm4, %v1227_v53, %v1032_v55  ;;  %v1082_v17 = vpop.permute.xlu0 %1081 }
 0x123   : > { %3082 = vmatmul.mubr.msk.bf16.gmra.mrb[24].mxu1 %vm1178_vm2, %v3711_v35  ;;  %1672 = vmatmul.mubr.bf16.gmra.mrb[28].mxu0 %v1267_v15  ;;  %v1319_v20 = vsel %vm1178_vm2, %v3786_v6, %v1082_v17 }
 0x124   : > { %3085 = vmatprep.mubr.msk.bf16.mxu1 %vm1178_vm2, %v3750_v3 }
 0x125   : > { %v888_v22 = vpop.permute.xlu1 %887 }
 0x126   : > { %v1115_v40 = vpop.permute.xlu0 %1114  ;;  %v1196_v35 = vsel %vm1178_vm2, %v3677_v41, %v888_v22 }
 0x127   : > { %v1358_v38 = vsel %vm1211_vm3, %v1319_v20, %v1115_v40 }
 0x129   : > { %v1001_v59 = vpop.permute.xlu1 %1000 }
 0x12a   : > { %v1159_v44 = vpop.permute.xlu0 %1158  ;;  %v1229_v3 = vsel %vm1211_vm3, %v1196_v35, %v1001_v59 }
 0x12b   : > { %3086 = vmatmul.mubr.msk.bf16.gmra.mrb[28].mxu1 %vm1178_vm2, %v3799_v28  ;;  %v1398_v52 = vsel %vm1244_vm4, %v1358_v38, %v1159_v44 }
 0x12c   : > { %1679 = vmatprep.mubr.bf16.mxu0 %v1398_v52  ;;  %3089 = vmatprep.mubr.msk.bf16.mxu1 %vm1178_vm2, %v3826_v1 }
 0x12d   : > { %v1034_v8 = vpop.permute.xlu1 %1033 }
 0x12e   : > { %v1270_v6 = vsel %vm1244_vm4, %v1229_v3, %v1034_v8  ;;  %v1084_v45 = vpop.permute.xlu0 %1083 }
 0x12f   : > { %1680 = vmatmul.mubr.bf16.gmra.mrb[32].mxu0 %v1270_v6  ;;  %v1322_v41 = vsel %vm1178_vm2, %v3818_v0, %v1084_v45  ;;  %v4755_v0 = vld [vmem:[#allocation3_spill] sm:$0xff] }
 0x131   : > { %v890_v2 = vpop.permute.xlu1 %889 }
 0x132   : > { %v1117_v7 = vpop.permute.xlu0 %1116  ;;  %v1198_v26 = vsel %vm1178_vm2, %v3726_v14, %v890_v2 }
 0x133   : > { %3090 = vmatmul.mubr.msk.bf16.gmra.mrb[32].mxu1 %vm1178_vm2, %v3868_v60  ;;  %v1360_v1 = vsel %vm1211_vm3, %v1322_v41, %v1117_v7 }
 0x134   : > { %3093 = vmatprep.mubr.msk.bf16.mxu1 %vm1178_vm2, %v3462_v51  ;;  %v4754_v51 = vld [vmem:[#allocation2_spill] sm:$0xff] }
 0x135   : > { %v1003_v28 = vpop.permute.xlu1 %1002 }
 0x136   : > { %v1161_v47 = vpop.permute.xlu0 %1160  ;;  %v1231_v24 = vsel %vm1211_vm3, %v1198_v26, %v1003_v28 }
 0x137   : > { %v1401_v63 = vsel %vm1244_vm4, %v1360_v1, %v1161_v47 }
 0x138   : > { %1687 = vmatprep.mubr.bf16.mxu0 %v1401_v63 }
 0x139   : > { %v1036_v49 = vpop.permute.xlu1 %1035 }
 0x13a   : > { %v1273_v60 = vsel %vm1244_vm4, %v1231_v24, %v1036_v49  ;;  %v1086_v50 = vpop.permute.xlu0 %1085 }
 0x13b   : > { %3094 = vmatmul.mubr.msk.bf16.gmra.mrb[36].mxu1 %vm1178_vm2, %v4754_v51  ;;  %1688 = vmatmul.mubr.bf16.gmra.mrb[36].mxu0 %v1273_v60  ;;  %v1325_v4 = vsel %vm1178_vm2, %v3855_v37, %v1086_v50  ;;  %v1176_v37 = vrot.slane %v4759_v36, 1 }
 0x13c   : > { %3097 = vmatprep.mubr.msk.bf16.mxu1 %vm1178_vm2, %v4755_v0 }
 0x13d   : > { %v892_v34 = vpop.permute.xlu1 %891  ;;  %v1177_v57 = vsel %vm935_vm0, %v1175_v25, %v1176_v37 }
 0x13e   : > { %v1119_v54 = vpop.permute.xlu0 %1118  ;;  %v1200_v12 = vsel %vm1178_vm2, %v3768_v61, %v892_v34 }
 0x13f   : > { %v1362_v48 = vsel %vm1211_vm3, %v1325_v4, %v1119_v54 }
 0x141   : > { %v1005_v14 = vpop.permute.xlu1 %1004 }
 0x142   : > { %v1163_v32 = vpop.permute.xlu0 %1162  ;;  %v1233_v33 = vsel %vm1211_vm3, %v1200_v12, %v1005_v14 }
 0x143   : > { %3098 = vmatmul.mubr.msk.bf16.gmra.mrb[40].mxu1 %vm1178_vm2, %v4756_v46  ;;  %v1404_v5 = vsel %vm1244_vm4, %v1362_v48, %v1163_v32 }
 0x144   : > { %1695 = vmatprep.mubr.bf16.mxu0 %v1404_v5  ;;  %3101 = vmatprep.mubr.msk.bf16.mxu1 %vm1178_vm2, %v4757_v21 }
 0x145   : > { %v1038_v43 = vpop.permute.xlu1 %1037 }
 0x146   : > { %v1276_v10 = vsel %vm1244_vm4, %v1233_v33, %v1038_v43  ;;  %v1088_v58 = vpop.permute.xlu0 %1087 }
 0x147   : > { %1696 = vmatmul.mubr.bf16.gmra.mrb[40].mxu0 %v1276_v10  ;;  %v1328_v27 = vsel %vm1178_vm2, %v3446_v9, %v1088_v58  ;;  %v3166_v9 = vmov 4048220490  }
 0x148   : > { %630 = vst.msk [vmem:[%s4031_s30 + $0x18] sm:$0xf] %vm622_vm5, %v3166_v9  ;;  %623 = vst.msk [vmem:[%s4031_s30] sm:$0xf] %vm622_vm5, %v3166_v9 }
 0x149   : > { %v894_v62 = vpop.permute.xlu1 %893  ;;  %624 = vst.msk [vmem:[%s4031_s30 + $0x4] sm:$0xf] %vm622_vm5, %v3166_v9  ;;  %627 = vst.msk [vmem:[%s4031_s30 + $0xc] sm:$0xf] %vm622_vm5, %v3166_v9 }
 0x14a   : > { %v1121_v61 = vpop.permute.xlu0 %1120  ;;  %v1202_v30 = vsel %vm1178_vm2, %v3810_v39, %v894_v62  ;;  %628 = vst.msk [vmem:[%s4031_s30 + $0x10] sm:$0xf] %vm622_vm5, %v3166_v9  ;;  %631 = vst.msk [vmem:[%s4031_s30 + $0x1c] sm:$0xf] %vm622_vm5, %v3166_v9 }
 0x14b   : > { %3102 = vmatmul.mubr.msk.bf16.gmra.mrb[44].mxu1 %vm1178_vm2, %v1177_v57  ;;  %v1364_v23 = vsel %vm1211_vm3, %v1328_v27, %v1121_v61  ;;  %633 = vst.msk [vmem:[%s4031_s30 + $0x24] sm:$0xf] %vm622_vm5, %v3166_v9  ;;  %634 = vst.msk [vmem:[%s4031_s30 + $0x28] sm:$0xf] %vm622_vm5, %v3166_v9 }
 0x14c   : > { %636 = vst.msk [vmem:[%s4031_s30 + $0x30] sm:$0xf] %vm622_vm5, %v3166_v9  ;;  %637 = vst.msk [vmem:[%s4031_s30 + $0x34] sm:$0xf] %vm622_vm5, %v3166_v9 }
 0x14d   : > { %v1007_v11 = vpop.permute.xlu1 %1006  ;;  %639 = vst.msk [vmem:[%s4031_s30 + $0x3c] sm:$0xf] %vm622_vm5, %v3166_v9  ;;  %640 = vst.msk [vmem:[%s4031_s30 + $0x40] sm:$0xf] %vm622_vm5, %v3166_v9 }
 0x14e   : > { %v1165_v42 = vpop.permute.xlu0 %1164  ;;  %v1235_v31 = vsel %vm1211_vm3, %v1202_v30, %v1007_v11  ;;  %642 = vst.msk [vmem:[%s4031_s30 + $0x48] sm:$0xf] %vm622_vm5, %v3166_v9  ;;  %643 = vst.msk [vmem:[%s4031_s30 + $0x4c] sm:$0xf] %vm622_vm5, %v3166_v9 }
 0x14f   : > { %v1407_v56 = vsel %vm1244_vm4, %v1364_v23, %v1165_v42  ;;  %645 = vst.msk [vmem:[%s4031_s30 + $0x54] sm:$0xf] %vm622_vm5, %v3166_v9  ;;  %646 = vst.msk [vmem:[%s4031_s30 + $0x58] sm:$0xf] %vm622_vm5, %v3166_v9 }
 0x150   : > { %1703 = vmatprep.mubr.bf16.mxu0 %v1407_v56  ;;  %648 = vst.msk [vmem:[%s4031_s30 + $0x60] sm:$0xf] %vm622_vm5, %v3166_v9  ;;  %649 = vst.msk [vmem:[%s4031_s30 + $0x64] sm:$0xf] %vm622_vm5, %v3166_v9 }
 0x151   : > { %v1040_v16 = vpop.permute.xlu1 %1039  ;;  %651 = vst.msk [vmem:[%s4031_s30 + $0x6c] sm:$0xf] %vm622_vm5, %v3166_v9  ;;  %652 = vst.msk [vmem:[%s4031_s30 + $0x70] sm:$0xf] %vm622_vm5, %v3166_v9 }
 0x152   : > { %v1279_v18 = vsel %vm1244_vm4, %v1235_v31, %v1040_v16  ;;  %654 = vst.msk [vmem:[%s4031_s30 + $0x78] sm:$0xf] %vm622_vm5, %v3166_v9  ;;  %655 = vst.msk [vmem:[%s4031_s30 + $0x7c] sm:$0xf] %vm622_vm5, %v3166_v9  ;;  %v4158_v31 = vld [vmem:[%s4730_s4] ss:$0 sm:$0xff] }
 0x153   : > { %1704 = vmatmul.mubr.bf16.gmra.mrb[44].mxu0 %v1279_v18  ;;  %657 = vst.msk [vmem:[%s4031_s30 + $0x84] sm:$0xf] %vm622_vm5, %v3166_v9  ;;  %658 = vst.msk [vmem:[%s4031_s30 + $0x88] sm:$0xf] %vm622_vm5, %v3166_v9 }
 0x154   : > { %660 = vst.msk [vmem:[%s4031_s30 + $0x90] sm:$0xf] %vm622_vm5, %v3166_v9  ;;  %661 = vst.msk [vmem:[%s4031_s30 + $0x94] sm:$0xf] %vm622_vm5, %v3166_v9 }
 0x155   : > { %663 = vst.msk [vmem:[%s4031_s30 + $0x9c] sm:$0xf] %vm622_vm5, %v3166_v9  ;;  %664 = vst.msk [vmem:[%s4031_s30 + $0xa0] sm:$0xf] %vm622_vm5, %v3166_v9 }
 0x156   : > { %666 = vst.msk [vmem:[%s4031_s30 + $0xa8] sm:$0xf] %vm622_vm5, %v3166_v9  ;;  %667 = vst.msk [vmem:[%s4031_s30 + $0xac] sm:$0xf] %vm622_vm5, %v3166_v9 }
 0x157   : > { %669 = vst.msk [vmem:[%s4031_s30 + $0xb4] sm:$0xf] %vm622_vm5, %v3166_v9  ;;  %670 = vst.msk [vmem:[%s4031_s30 + $0xb8] sm:$0xf] %vm622_vm5, %v3166_v9 }
 0x158   : > { %672 = vst.msk [vmem:[%s4031_s30 + $0xc0] sm:$0xf] %vm622_vm5, %v3166_v9  ;;  %673 = vst.msk [vmem:[%s4031_s30 + $0xc4] sm:$0xf] %vm622_vm5, %v3166_v9 }
 0x159   : > { %675 = vst.msk [vmem:[%s4031_s30 + $0xcc] sm:$0xf] %vm622_vm5, %v3166_v9  ;;  %676 = vst.msk [vmem:[%s4031_s30 + $0xd0] sm:$0xf] %vm622_vm5, %v3166_v9 }
 0x15a   : > { %632 = vst.msk [vmem:[%s4031_s30 + $0x20] sm:$0x1] %vm625_vm6, %v3166_v9  ;;  %626 = vst.msk [vmem:[%s4031_s30 + $0x8] sm:$0x1] %vm625_vm6, %v3166_v9 }
 0x15b   : > { %629 = vst.msk [vmem:[%s4031_s30 + $0x14] sm:$0x1] %vm625_vm6, %v3166_v9  ;;  %635 = vst.msk [vmem:[%s4031_s30 + $0x2c] sm:$0x1] %vm625_vm6, %v3166_v9 }
 0x15c   : > { %638 = vst.msk [vmem:[%s4031_s30 + $0x38] sm:$0x1] %vm625_vm6, %v3166_v9  ;;  %641 = vst.msk [vmem:[%s4031_s30 + $0x44] sm:$0x1] %vm625_vm6, %v3166_v9 }
 0x15d   : > { %644 = vst.msk [vmem:[%s4031_s30 + $0x50] sm:$0x1] %vm625_vm6, %v3166_v9  ;;  %647 = vst.msk [vmem:[%s4031_s30 + $0x5c] sm:$0x1] %vm625_vm6, %v3166_v9 }
 0x15e   : > { %650 = vst.msk [vmem:[%s4031_s30 + $0x68] sm:$0x1] %vm625_vm6, %v3166_v9  ;;  %653 = vst.msk [vmem:[%s4031_s30 + $0x74] sm:$0x1] %vm625_vm6, %v3166_v9 }
 0x15f   : > { %656 = vst.msk [vmem:[%s4031_s30 + $0x80] sm:$0x1] %vm625_vm6, %v3166_v9  ;;  %659 = vst.msk [vmem:[%s4031_s30 + $0x8c] sm:$0x1] %vm625_vm6, %v3166_v9 }
 0x160   : > { %662 = vst.msk [vmem:[%s4031_s30 + $0x98] sm:$0x1] %vm625_vm6, %v3166_v9  ;;  %665 = vst.msk [vmem:[%s4031_s30 + $0xa4] sm:$0x1] %vm625_vm6, %v3166_v9 }
 0x161   : > { %668 = vst.msk [vmem:[%s4031_s30 + $0xb0] sm:$0x1] %vm625_vm6, %v3166_v9  ;;  %671 = vst.msk [vmem:[%s4031_s30 + $0xbc] sm:$0x1] %vm625_vm6, %v3166_v9 }
 0x162   : > { %674 = vst.msk [vmem:[%s4031_s30 + $0xc8] sm:$0x1] %vm625_vm6, %v3166_v9  ;;  %677 = vst.msk [vmem:[%s4031_s30 + $0xd4] sm:$0x1] %vm625_vm6, %v3166_v9 }
 0x17c   : > { %v2955_v39 = vpop.f32.mrb[0].mxu0 }
 0x17d   : > { %v2956_v29 = vpop.f32.mrb[1].mxu0 }
 0x17e   : > { %v2957_v19 = vadd.f32 %v2956_v29, %v2955_v39  ;;  %v2958_v53 = vpop.f32.mrb[2].mxu0 }
 0x17f   : > { %v2959_v55 = vpop.f32.mrb[3].mxu0 }
 0x180   : > { %v2960_v15 = vadd.f32 %v2959_v55, %v2958_v53  ;;  %v1618_v18 = vadd.f32 %v2957_v19, %v4158_v31 }
 0x182   : > { %v1621_v9 = vadd.f32 %v2960_v15, %v4158_v31 }
 0x184   : > { %v2961_v17 = vpop.f32.mrb[4].mxu0 }
 0x185   : > { %v2962_v22 = vpop.f32.mrb[5].mxu0 }
 0x186   : > { %v2963_v40 = vadd.f32 %v2962_v22, %v2961_v17  ;;  %v2964_v20 = vpop.f32.mrb[6].mxu0 }
 0x187   : > { %v2965_v59 = vpop.f32.mrb[7].mxu0 }
 0x188   : > { %v2966_v38 = vadd.f32 %v2965_v59, %v2964_v20  ;;  %v1626_v16 = vadd.f32 %v2963_v40, %v4158_v31 }
 0x18a   : > { %v1629_v29 = vadd.f32 %v2966_v38, %v4158_v31 }
 0x193   : > { %v2967_v44 = vpop.f32.mrb[8].mxu0 }
 0x194   : > { %v2968_v52 = vpop.f32.mrb[9].mxu0 }
 0x195   : > { %v2969_v35 = vadd.f32 %v2968_v52, %v2967_v44  ;;  %v2970_v3 = vpop.f32.mrb[10].mxu0 }
 0x196   : > { %v3027_v8 = vpop.f32.mrb[0].mxu1  ;;  %v2971_v6 = vpop.f32.mrb[11].mxu0 }
 0x197   : > { %v3028_v45 = vpop.f32.mrb[1].mxu1  ;;  %v2972_v2 = vadd.f32 %v2971_v6, %v2970_v3  ;;  %v4165_v53 = vadd.f32 %v2969_v35, %v4158_v31 }
 0x198   : > { %v3029_v7 = vadd.f32 %v3028_v45, %v3027_v8  ;;  %v3030_v41 = vpop.f32.mrb[2].mxu1 }
 0x199   : > { %v3031_v28 = vpop.f32.mrb[3].mxu1  ;;  %v4168_v55 = vadd.f32 %v2972_v2, %v4158_v31 }
 0x19a   : > { %v4141_v1 = vadd.f32 %v3031_v28, %v3030_v41  ;;  %v4171_v17 = vadd.f32 %v3029_v7, %v4158_v31 }
 0x1ab   : > { %v2973_v47 = vpop.f32.mrb[12].mxu0 }
 0x1ac   : > { %v2974_v63 = vpop.f32.mrb[13].mxu0 }
 0x1ad   : > { %v2975_v26 = vadd.f32 %v2974_v63, %v2973_v47  ;;  %v2976_v24 = vpop.f32.mrb[14].mxu0 }
 0x1ae   : > { %v3033_v49 = vpop.f32.mrb[4].mxu1  ;;  %v2977_v60 = vpop.f32.mrb[15].mxu0 }
 0x1af   : > { %v3034_v50 = vpop.f32.mrb[5].mxu1  ;;  %v2978_v51 = vadd.f32 %v2977_v60, %v2976_v24  ;;  %v4174_v19 = vadd.f32 %v2975_v26, %v4158_v31 }
 0x1b0   : > { %v4143_v0 = vadd.f32 %v3034_v50, %v3033_v49  ;;  %v3036_v34 = vpop.f32.mrb[6].mxu1 }
 0x1b1   : > { %v3037_v54 = vpop.f32.mrb[7].mxu1  ;;  %v4177_v15 = vadd.f32 %v2978_v51, %v4158_v31 }
 0x1b2   : > { %v4145_v4 = vadd.f32 %v3037_v54, %v3036_v34 }
 0x1c3   : > { %v2979_v14 = vpop.f32.mrb[16].mxu0 }
 0x1c4   : > { %v2980_v48 = vpop.f32.mrb[17].mxu0 }
 0x1c5   : > { %v2981_v32 = vadd.f32 %v2980_v48, %v2979_v14  ;;  %v2982_v46 = vpop.f32.mrb[18].mxu0 }
 0x1c6   : > { %v3039_v5 = vpop.f32.mrb[8].mxu1  ;;  %v2983_v12 = vpop.f32.mrb[19].mxu0 }
 0x1c7   : > { %v3040_v21 = vpop.f32.mrb[9].mxu1  ;;  %v2984_v13 = vadd.f32 %v2983_v12, %v2982_v46  ;;  %v4180_v20 = vadd.f32 %v2981_v32, %v4158_v31 }
 0x1c8   : > { %v4147_v25 = vadd.f32 %v3040_v21, %v3039_v5  ;;  %v3042_v36 = vpop.f32.mrb[10].mxu1 }
 0x1c9   : > { %v3043_v37 = vpop.f32.mrb[11].mxu1  ;;  %v4189_v35 = vadd.f32 %v2984_v13, %v4158_v31 }
 0x1ca   : > { %v4149_v33 = vadd.f32 %v3043_v37, %v3042_v36  ;;  %v2786_v36 = vld [vmem:[%s4031_s30 + $0x18] sm:$0xf] }
 0x1db   : > { %v2985_v43 = vpop.f32.mrb[20].mxu0 }
 0x1dc   : > { %v2986_v10 = vpop.f32.mrb[21].mxu0 }
 0x1dd   : > { %v2987_v58 = vadd.f32 %v2986_v10, %v2985_v43  ;;  %v2988_v57 = vpop.f32.mrb[22].mxu0 }
 0x1de   : > { %v3045_v62 = vpop.f32.mrb[12].mxu1  ;;  %v2989_v61 = vpop.f32.mrb[23].mxu0 }
 0x1df   : > { %v3046_v27 = vpop.f32.mrb[13].mxu1  ;;  %v2990_v11 = vadd.f32 %v2989_v61, %v2988_v57  ;;  %v4183_v44 = vadd.f32 %v2987_v58, %v4158_v31 }
 0x1e0   : > { %v4151_v23 = vadd.f32 %v3046_v27, %v3045_v62  ;;  %v3048_v42 = vpop.f32.mrb[14].mxu1  ;;  %v2781_v27 = vld [vmem:[%s4031_s30 + $0xc] sm:$0xf] }
 0x1e1   : > { %v3049_v56 = vpop.f32.mrb[15].mxu1  ;;  %v4186_v52 = vadd.f32 %v2990_v11, %v4158_v31 }
 0x1e2   : > { %v4153_v30 = vadd.f32 %v3049_v56, %v3048_v42 }
 0x1e6   : > { %v3075_v39 = vpop.f32.mrb[16].mxu1 }
 0x1e7   : > { %v1787_v22 = vadd.f32 %v3075_v39, %v1626_v16  ;;  %v1778_v40 = vpop.f32.mrb[17].mxu1 }
 0x1e8   : > { %v1779_v59 = vadd.f32 %v1778_v40, %v1618_v18  ;;  %v3076_v38 = vpop.f32.mrb[18].mxu1 }
 0x1e9   : > { %v1908_v3 = vsel %vm1178_vm2, %v1787_v22, 0.0  ;;  %v1977_v8 = vmul.f32 %v1787_v22, %v1787_v22  ;;  %v2865_v6 = vpack.c.bf16 %v1787_v22, %v1787_v22  ;;  %v1790_v45 = vadd.f32 %v3076_v38, %v1629_v29  ;;  %v1781_v2 = vpop.f32.mrb[19].mxu1 }
 0x1ea   : > { %v1905_v7 = vsel %vm1178_vm2, %v1779_v59, 0.0  ;;  %v1975_v41 = vmul.f32 %v1779_v59, %v1779_v59  ;;  %v2863_v28 = vpack.c.bf16 %v1779_v59, %v1779_v59  ;;  %v1782_v47 = vadd.f32 %v1781_v2, %v1621_v9  ;;  %v2991_v63 = vpop.f32.mrb[24].mxu0  ;;  %v2789_v2 = vld [vmem:[%s4031_s30 + $0x20] sm:$0x1] }
 0x1eb   : > { %v2010_v26 = vsel %vm1178_vm2, %v1977_v8, 0.0  ;;  %v2194_v24 = vshrl.u32 %v2865_v6, 16  ;;  %v2197_v49 = vshll.u32 %v2865_v6, 16  ;;  %v1910_v60 = vsel %vm1178_vm2, %v1790_v45, 0.0  ;;  %v2992_v50 = vpop.f32.mrb[25].mxu0 }
 0x1ec   : > { %v2007_v51 = vsel %vm1178_vm2, %v1975_v41, 0.0  ;;  %v2177_v34 = vshrl.u32 %v2863_v28, 16  ;;  %v2180_v54 = vshll.u32 %v2863_v28, 16  ;;  %v1978_v14 = vmul.f32 %v1790_v45, %v1790_v45  ;;  %v2994_v48 = vpop.f32.mrb[26].mxu0 }
 0x1ed   : > { %v2196_v32 = vrot.slane %v2194_v24, 7  ;;  %v2866_v46 = vpack.c.bf16 %v1790_v45, %v1790_v45  ;;  %v1906_v5 = vsel %vm1178_vm2, %v1782_v47, 0.0  ;;  %v1976_v12 = vmul.f32 %v1782_v47, %v1782_v47  ;;  %v2995_v21 = vpop.f32.mrb[27].mxu0 }
 0x1ee   : > { %v2179_v37 = vrot.slane %v2177_v34, 7  ;;  %v2012_v43 = vsel %vm1178_vm2, %v1978_v14, 0.0  ;;  %v1907_v10 = vadd.f32 %v1906_v5, %v1905_v7  ;;  %v2864_v58 = vpack.c.bf16 %v1782_v47, %v1782_v47  ;;  %v3079_v57 = vpop.f32.mrb[20].mxu1  ;;  %v2784_v34 = vld [vmem:[%s4031_s30 + $0x14] sm:$0x1] }
 0x1ef   : > { %v2199_v62 = vor.u32 %v2197_v49, %v2196_v32  ;;  %v2200_v61 = vrot.slane %v2196_v32, 4  ;;  %v2202_v11 = vshrl.u32 %v2866_v46, 16  ;;  %v2205_v42 = vshll.u32 %v2866_v46, 16  ;;  %v1794_v56 = vpop.f32.mrb[21].mxu1 }
 0x1f0   : > { %v2182_v16 = vor.u32 %v2180_v54, %v2179_v37  ;;  %v2183_v18 = vrot.slane %v2179_v37, 4  ;;  %v1909_v9 = vadd.f32 %v1908_v3, %v1907_v10  ;;  %v2008_v39 = vsel %vm1178_vm2, %v1976_v12, 0.0  ;;  %v3080_v29 = vpop.f32.mrb[22].mxu1 }
 0x1f1   : > { %v2510_v22 = vsel %vm4199_vm10, %v2199_v62, %v2786_v36  ;;  %v2204_v59 = vrot.slane %v2202_v11, 7  ;;  %v2009_v38 = vadd.f32 %v2008_v39, %v2007_v51  ;;  %v2185_v8 = vshrl.u32 %v2864_v58, 16  ;;  %v1797_v6 = vpop.f32.mrb[23].mxu1 }
 0x1f2   : > { %2787 = vst [vmem:[%s4031_s30 + $0x18] sm:$0xf] %v2510_v22  ;;  %v2501_v3 = vsel %vm4199_vm10, %v2182_v16, %v2781_v27  ;;  %v2188_v7 = vshll.u32 %v2864_v58, 16  ;;  %v4225_v41 = vadd.f32 %v2992_v50, %v2991_v63  ;;  %v4227_v28 = vadd.f32 %v2995_v21, %v2994_v48 }
 0x1f3   : > { %2782 = vst [vmem:[%s4031_s30 + $0xc] sm:$0xf] %v2501_v3  ;;  %v2207_v47 = vor.u32 %v2205_v42, %v2204_v59  ;;  %v2209_v24 = vrot.slane %v2204_v59, 4  ;;  %v2011_v49 = vadd.f32 %v2010_v26, %v2009_v38  ;;  %v2187_v51 = vrot.slane %v2185_v8, 7  ;;  %v2796_v3 = vld [vmem:[%s4031_s30 + $0x30] sm:$0xf] }
 0x1f4   : > { %v1803_v54 = vadd.f32 %v3079_v57, %v4174_v19  ;;  %v1795_v14 = vadd.f32 %v1794_v56, %v4165_v53  ;;  %v1911_v32 = vadd.f32 %v1910_v60, %v1909_v9  ;;  %v1806_v46 = vadd.f32 %v3080_v29, %v4177_v15 }
 0x1f5   : > { %v2208_v63 = vsel %vm4211_vm11, %v2200_v61, %v2207_v47  ;;  %v2514_v50 = vsel %vm4220_vm12, %v2209_v24, %v2789_v2  ;;  %v2190_v48 = vor.u32 %v2188_v7, %v2187_v51  ;;  %v2192_v5 = vrot.slane %v2187_v51, 4 }
 0x1f6   : > { %2788 = vst.msk [vmem:[%s4031_s30 + $0x1c] sm:$0xf] %vm622_vm5, %v2208_v63  ;;  %2790 = vst [vmem:[%s4031_s30 + $0x20] sm:$0x1] %v2514_v50  ;;  %v1916_v19 = vsel %vm1178_vm2, %v1803_v54, 0.0  ;;  %v1981_v26 = vmul.f32 %v1803_v54, %v1803_v54  ;;  %v2869_v53 = vpack.c.bf16 %v1803_v54, %v1803_v54  ;;  %v1912_v60 = vsel %vm1178_vm2, %v1795_v14, 0.0 }
 0x1f7   : > { %v3083_v15 = vpop.f32.mrb[24].mxu1  ;;  %v4243_v12 = vpop.f32.mrb[28].mxu0  ;;  %v2191_v21 = vsel %vm4211_vm11, %v2183_v18, %v2190_v48  ;;  %v2507_v36 = vsel %vm4220_vm12, %v2192_v5, %v2784_v34  ;;  %v1913_v37 = vadd.f32 %v1912_v60, %v1911_v32  ;;  %v1979_v10 = vmul.f32 %v1795_v14, %v1795_v14  ;;  %v2799_v60 = vld [vmem:[%s4031_s30 + $0x38] sm:$0x1] }
 0x1f8   : > { %v4249_v58 = vpop.f32.mrb[25].mxu1  ;;  %v4251_v57 = vpop.f32.mrb[29].mxu0  ;;  %2783 = vst.msk [vmem:[%s4031_s30 + $0x10] sm:$0xf] %vm622_vm5, %v2191_v21  ;;  %2785 = vst [vmem:[%s4031_s30 + $0x14] sm:$0x1] %v2507_v36  ;;  %v2013_v11 = vadd.f32 %v2012_v43, %v2011_v49  ;;  %v2867_v18 = vpack.c.bf16 %v1795_v14, %v1795_v14  ;;  %v1982_v39 = vmul.f32 %v1806_v46, %v1806_v46 }
 0x1f9   : > { %v2018_v62 = vsel %vm1178_vm2, %v1981_v26, 0.0  ;;  %v2228_v61 = vshrl.u32 %v2869_v53, 16  ;;  %v2231_v27 = vshll.u32 %v2869_v53, 16  ;;  %v4257_v42 = vpop.f32.mrb[26].mxu1  ;;  %v4259_v56 = vpop.f32.mrb[30].mxu0  ;;  %v2014_v16 = vsel %vm1178_vm2, %v1979_v10, 0.0 }
 0x1fa   : > { %v1918_v9 = vsel %vm1178_vm2, %v1806_v46, 0.0  ;;  %v4263_v29 = vpop.f32.mrb[27].mxu1  ;;  %v4265_v22 = vpop.f32.mrb[31].mxu0  ;;  %v2015_v38 = vadd.f32 %v2014_v16, %v2013_v11  ;;  %v2870_v8 = vpack.c.bf16 %v1806_v46, %v1806_v46  ;;  %v1798_v43 = vadd.f32 %v1797_v6, %v4168_v55  ;;  %v2791_v6 = vld [vmem:[%s4031_s30 + $0x24] sm:$0xf] }
 0x1fb   : > { %v2230_v59 = vrot.slane %v2228_v61, 7  ;;  %v2211_v2 = vshrl.u32 %v2867_v18, 16  ;;  %v2214_v7 = vshll.u32 %v2867_v18, 16  ;;  %v2020_v47 = vsel %vm1178_vm2, %v1982_v39, 0.0 }
 0x1fc   : > { %v1819_v24 = vadd.f32 %v3083_v15, %v4183_v44  ;;  %v2236_v34 = vshrl.u32 %v2870_v8, 16  ;;  %v2239_v54 = vshll.u32 %v2870_v8, 16  ;;  %v1914_v32 = vsel %vm1178_vm2, %v1798_v43, 0.0 }
 0x1fd   : > { %v2233_v49 = vor.u32 %v2231_v27, %v2230_v59  ;;  %v2234_v51 = vrot.slane %v2230_v59, 4  ;;  %v2213_v14 = vrot.slane %v2211_v2, 7  ;;  %v1980_v46 = vmul.f32 %v1798_v43, %v1798_v43  ;;  %v2794_v2 = vld [vmem:[%s4031_s30 + $0x2c] sm:$0x1] }
 0x1fe   : > { %v2868_v63 = vpack.c.bf16 %v1798_v43, %v1798_v43  ;;  %v2238_v50 = vrot.slane %v2236_v34, 7  ;;  %v1915_v48 = vadd.f32 %v1914_v32, %v1913_v37  ;;  %v4276_v5 = vsel %vm1178_vm2, %v1819_v24, 0.0  ;;  %v4278_v44 = vpop.f32.mrb[28].mxu1 }
 0x1ff   : > { %v2524_v55 = vsel %vm4199_vm10, %v2233_v49, %v2796_v3  ;;  %v2216_v26 = vor.u32 %v2214_v7, %v2213_v14  ;;  %v2217_v53 = vrot.slane %v2213_v14, 4  ;;  %v2016_v15 = vsel %vm1178_vm2, %v1980_v46, 0.0  ;;  %v4283_v36 = vpop.f32.mrb[29].mxu1 }
 0x200   : > { %2797 = vst [vmem:[%s4031_s30 + $0x30] sm:$0xf] %v2524_v55  ;;  %v2219_v21 = vshrl.u32 %v2868_v63, 16  ;;  %v2241_v10 = vor.u32 %v2239_v54, %v2238_v50  ;;  %v2243_v61 = vrot.slane %v2238_v50, 4  ;;  %v1917_v37 = vadd.f32 %v1916_v19, %v1915_v48  ;;  %v4285_v11 = vpop.f32.mrb[30].mxu1 }
 0x201   : > { %v2017_v27 = vadd.f32 %v2016_v15, %v2015_v38  ;;  %v2517_v16 = vsel %vm4199_vm10, %v2216_v26, %v2791_v6  ;;  %v2222_v39 = vshll.u32 %v2868_v63, 16  ;;  %v1985_v59 = vmul.f32 %v1819_v24, %v1819_v24  ;;  %v4289_v8 = vpop.f32.mrb[31].mxu1 }
 0x202   : > { %v2221_v18 = vrot.slane %v2219_v21, 7  ;;  %2792 = vst [vmem:[%s4031_s30 + $0x24] sm:$0xf] %v2517_v16  ;;  %v2242_v43 = vsel %vm4211_vm11, %v2234_v51, %v2241_v10  ;;  %v2528_v3 = vsel %vm4220_vm12, %v2243_v61, %v2799_v60  ;;  %v2873_v38 = vpack.c.bf16 %v1819_v24, %v1819_v24  ;;  %v4297_v7 = vpop.f32.mrb[32].mxu0 }
 0x203   : > { %v2019_v19 = vadd.f32 %v2018_v62, %v2017_v27  ;;  %2798 = vst.msk [vmem:[%s4031_s30 + $0x34] sm:$0xf] %vm622_vm5, %v2242_v43  ;;  %2800 = vst [vmem:[%s4031_s30 + $0x38] sm:$0x1] %v2528_v3  ;;  %v4303_v54 = vsel %vm1178_vm2, %v1985_v59, 0.0  ;;  %v1811_v51 = vadd.f32 %v4249_v58, %v4180_v20  ;;  %v4307_v14 = vpop.f32.mrb[33].mxu0  ;;  %v1919_v24 = vadd.f32 %v1918_v9, %v1917_v37 }
 0x204   : > { %v2224_v49 = vor.u32 %v2222_v39, %v2221_v18  ;;  %v2226_v34 = vrot.slane %v2221_v18, 4  ;;  %v2262_v62 = vshrl.u32 %v2873_v38, 16  ;;  %v2265_v32 = vshll.u32 %v2873_v38, 16  ;;  %v4309_v63 = vpop.f32.mrb[34].mxu0  ;;  %v2801_v3 = vld [vmem:[%s4031_s30 + $0x3c] sm:$0xf] }
 0x205   : > { %v2021_v46 = vadd.f32 %v2020_v47, %v2019_v19  ;;  %v1920_v50 = vsel %vm1178_vm2, %v1811_v51, 0.0  ;;  %v1983_v48 = vmul.f32 %v1811_v51, %v1811_v51  ;;  %v4316_v26 = vpop.f32.mrb[35].mxu0  ;;  %v2871_v9 = vpack.c.bf16 %v1811_v51, %v1811_v51 }
 0x206   : > { %v2225_v55 = vsel %vm4211_vm11, %v2217_v53, %v2224_v49  ;;  %v2521_v6 = vsel %vm4220_vm12, %v2226_v34, %v2794_v2  ;;  %v2264_v20 = vrot.slane %v2262_v62, 7  ;;  %v1921_v58 = vadd.f32 %v1920_v50, %v1919_v24  ;;  %v4323_v60 = vpop.f32.mrb[32].mxu1  ;;  %v2806_v53 = vld [vmem:[%s4031_s30 + $0x48] sm:$0xf] }
 0x207   : > { %2793 = vst.msk [vmem:[%s4031_s30 + $0x28] sm:$0xf] %vm622_vm5, %v2225_v55  ;;  %2795 = vst [vmem:[%s4031_s30 + $0x2c] sm:$0x1] %v2521_v6  ;;  %v2999_v47 = vadd.f32 %v4251_v57, %v4243_v12  ;;  %v2022_v15 = vsel %vm1178_vm2, %v1983_v48, 0.0  ;;  %v1822_v21 = vadd.f32 %v4257_v42, %v4186_v52  ;;  %v1814_v10 = vadd.f32 %v4263_v29, %v4189_v35  ;;  %v4333_v37 = vpop.f32.mrb[33].mxu1 }
 0x208   : > { %v3002_v61 = vadd.f32 %v4265_v22, %v4259_v56  ;;  %v2267_v27 = vor.u32 %v2265_v32, %v2264_v20  ;;  %v2268_v12 = vrot.slane %v2264_v20, 4  ;;  %v2023_v57 = vadd.f32 %v2022_v15, %v2021_v46  ;;  %v4335_v18 = vpop.f32.mrb[34].mxu1  ;;  %v2809_v48 = vld [vmem:[%s4031_s30 + $0x50] sm:$0x1] }
 0x209   : > { %v2245_v16 = vshrl.u32 %v2871_v9, 16  ;;  %v2248_v39 = vshll.u32 %v2871_v9, 16  ;;  %v1926_v59 = vsel %vm1178_vm2, %v1822_v21, 0.0  ;;  %v1986_v52 = vmul.f32 %v1822_v21, %v1822_v21  ;;  %v4338_v43 = vpop.f32.mrb[35].mxu1 }
 0x20a   : > { %v2874_v42 = vpack.c.bf16 %v1822_v21, %v1822_v21  ;;  %v2538_v35 = vsel %vm4199_vm10, %v2267_v27, %v2806_v53  ;;  %v1922_v29 = vsel %vm1178_vm2, %v1814_v10, 0.0  ;;  %v1984_v22 = vmul.f32 %v1814_v10, %v1814_v10 }
 0x20b   : > { %v2247_v56 = vrot.slane %v2245_v16, 7  ;;  %2807 = vst [vmem:[%s4031_s30 + $0x48] sm:$0xf] %v2538_v35  ;;  %v2028_v19 = vsel %vm1178_vm2, %v1986_v52, 0.0  ;;  %v1923_v49 = vadd.f32 %v1922_v29, %v1921_v58  ;;  %v2872_v32 = vpack.c.bf16 %v1814_v10, %v1814_v10 }
 0x20c   : > { %v2270_v2 = vshrl.u32 %v2874_v42, 16  ;;  %v2273_v38 = vshll.u32 %v2874_v42, 16  ;;  %v2024_v62 = vsel %vm1178_vm2, %v1984_v22, 0.0  ;;  %v1674_v6 = vadd.f32 %v2999_v47, %v4158_v31 }
 0x20d   : > { %v2250_v34 = vor.u32 %v2248_v39, %v2247_v56  ;;  %v2251_v51 = vrot.slane %v2247_v56, 4  ;;  %v1925_v46 = vadd.f32 %v4276_v5, %v1923_v49  ;;  %v2025_v55 = vadd.f32 %v2024_v62, %v2023_v57  ;;  %v2804_v56 = vld [vmem:[%s4031_s30 + $0x44] sm:$0x1] }
 0x20e   : > { %v2272_v24 = vrot.slane %v2270_v2, 7  ;;  %v2253_v20 = vshrl.u32 %v2872_v32, 16  ;;  %v2256_v9 = vshll.u32 %v2872_v32, 16  ;;  %v1666_v58 = vadd.f32 %v4225_v41, %v4158_v31  ;;  %v4354_v53 = vpop.f32.mrb[36].mxu0  ;;  %v4356_v15 = vpop.f32.mrb[36].mxu1 }
 0x20f   : > { %v2531_v50 = vsel %vm4199_vm10, %v2250_v34, %v2801_v3  ;;  %v2027_v10 = vadd.f32 %v4303_v54, %v2025_v55  ;;  %v1835_v47 = vadd.f32 %v4278_v44, %v1674_v6  ;;  %v4361_v27 = vpop.f32.mrb[37].mxu0  ;;  %v4363_v57 = vpop.f32.mrb[37].mxu1  ;;  %v1927_v39 = vadd.f32 %v1926_v59, %v1925_v46 }
 0x210   : > { %2802 = vst [vmem:[%s4031_s30 + $0x3c] sm:$0xf] %v2531_v50  ;;  %v2275_v21 = vor.u32 %v2273_v38, %v2272_v24  ;;  %v2277_v5 = vrot.slane %v2272_v24, 4  ;;  %v2255_v16 = vrot.slane %v2253_v20, 7  ;;  %v1827_v41 = vadd.f32 %v4283_v36, %v1666_v58  ;;  %v4367_v42 = vpop.f32.mrb[38].mxu0  ;;  %v4369_v35 = vpop.f32.mrb[38].mxu1 }
 0x211   : > { %v1677_v52 = vadd.f32 %v3002_v61, %v4158_v31  ;;  %v4377_v29 = vsel %vm1178_vm2, %v1835_v47, 0.0  ;;  %v1989_v22 = vmul.f32 %v1835_v47, %v1835_v47  ;;  %v4379_v3 = vpop.f32.mrb[39].mxu0  ;;  %v4381_v36 = vpop.f32.mrb[39].mxu1  ;;  %v2029_v62 = vadd.f32 %v2028_v19, %v2027_v10 }
 0x212   : > { %v2276_v54 = vsel %vm4211_vm11, %v2268_v12, %v2275_v21  ;;  %v2542_v44 = vsel %vm4220_vm12, %v2277_v5, %v2809_v48  ;;  %v2258_v61 = vor.u32 %v2256_v9, %v2255_v16  ;;  %v2260_v59 = vrot.slane %v2255_v16, 4  ;;  %v2816_v5 = vld [vmem:[%s4031_s30 + $0x60] sm:$0xf] }
 0x213   : > { %2808 = vst.msk [vmem:[%s4031_s30 + $0x4c] sm:$0xf] %vm622_vm5, %v2276_v54  ;;  %2810 = vst [vmem:[%s4031_s30 + $0x50] sm:$0x1] %v2542_v44  ;;  %v2877_v12 = vpack.c.bf16 %v1835_v47, %v1835_v47  ;;  %v1928_v2 = vsel %vm1178_vm2, %v1827_v41, 0.0  ;;  %v4388_v38 = vsel %vm1178_vm2, %v1989_v22, 0.0  ;;  %v1987_v34 = vmul.f32 %v1827_v41, %v1827_v41 }
 0x214   : > { %v1929_v49 = vadd.f32 %v1928_v2, %v1927_v39  ;;  %v2259_v32 = vsel %vm4211_vm11, %v2251_v51, %v2258_v61  ;;  %v2535_v24 = vsel %vm4220_vm12, %v2260_v59, %v2804_v56  ;;  %v2875_v50 = vpack.c.bf16 %v1827_v41, %v1827_v41  ;;  %v2811_v61 = vld [vmem:[%s4031_s30 + $0x54] sm:$0xf] }
 0x215   : > { %v2296_v46 = vshrl.u32 %v2877_v12, 16  ;;  %v2299_v55 = vshll.u32 %v2877_v12, 16  ;;  %2803 = vst.msk [vmem:[%s4031_s30 + $0x40] sm:$0xf] %vm622_vm5, %v2259_v32  ;;  %2805 = vst [vmem:[%s4031_s30 + $0x44] sm:$0x1] %v2535_v24  ;;  %v1838_v48 = vadd.f32 %v4285_v11, %v1677_v52  ;;  %v1669_v19 = vadd.f32 %v4227_v28, %v4158_v31 }
 0x216   : > { %v2030_v6 = vsel %vm1178_vm2, %v1987_v34, 0.0  ;;  %v3005_v51 = vadd.f32 %v4307_v14, %v4297_v7  ;;  %v3008_v58 = vadd.f32 %v4316_v26, %v4309_v63  ;;  %v4405_v21 = vpop.f32.mrb[40].mxu1  ;;  %v2279_v10 = vshrl.u32 %v2875_v50, 16 }
 0x217   : > { %v2298_v20 = vrot.slane %v2296_v46, 7  ;;  %v2031_v9 = vadd.f32 %v2030_v6, %v2029_v62  ;;  %v2282_v47 = vshll.u32 %v2875_v50, 16  ;;  %v1934_v16 = vsel %vm1178_vm2, %v1838_v48, 0.0  ;;  %v4409_v41 = vpop.f32.mrb[41].mxu1 }
 0x218   : > { %v1990_v11 = vmul.f32 %v1838_v48, %v1838_v48  ;;  %v2878_v52 = vpack.c.bf16 %v1838_v48, %v1838_v48  ;;  %v1830_v7 = vadd.f32 %v4289_v8, %v1669_v19  ;;  %v4412_v14 = vpop.f32.mrb[42].mxu1  ;;  %v2281_v63 = vrot.slane %v2279_v10, 7 }
 0x219   : > { %v2301_v28 = vor.u32 %v2299_v55, %v2298_v20  ;;  %v2302_v39 = vrot.slane %v2298_v20, 4  ;;  %v1682_v54 = vadd.f32 %v3005_v51, %v4158_v31  ;;  %v1685_v44 = vadd.f32 %v3008_v58, %v4158_v31  ;;  %v4417_v56 = vpop.f32.mrb[43].mxu1  ;;  %v2819_v51 = vld [vmem:[%s4031_s30 + $0x68] sm:$0x1] }
 0x21a   : > { %v2036_v26 = vsel %vm1178_vm2, %v1990_v11, 0.0  ;;  %v2304_v59 = vshrl.u32 %v2878_v52, 16  ;;  %v2307_v12 = vshll.u32 %v2878_v52, 16  ;;  %v1930_v8 = vsel %vm1178_vm2, %v1830_v7, 0.0  ;;  %v4423_v2 = vpop.f32.mrb[40].mxu0 }
 0x21b   : > { %v2552_v22 = vsel %vm4199_vm10, %v2301_v28, %v2816_v5  ;;  %v2284_v34 = vor.u32 %v2282_v47, %v2281_v63  ;;  %v2285_v62 = vrot.slane %v2281_v63, 4  ;;  %v1931_v32 = vadd.f32 %v1930_v8, %v1929_v49  ;;  %v4426_v46 = vpop.f32.mrb[41].mxu0 }
 0x21c   : > { %2817 = vst [vmem:[%s4031_s30 + $0x60] sm:$0xf] %v2552_v22  ;;  %v1988_v24 = vmul.f32 %v1830_v7, %v1830_v7  ;;  %v2306_v55 = vrot.slane %v2304_v59, 7  ;;  %v2876_v6 = vpack.c.bf16 %v1830_v7, %v1830_v7  ;;  %v1843_v50 = vadd.f32 %v4333_v37, %v1682_v54  ;;  %v4430_v19 = vpop.f32.mrb[42].mxu0 }
 0x21d   : > { %v1846_v48 = vadd.f32 %v4338_v43, %v1685_v44  ;;  %v2545_v20 = vsel %vm4199_vm10, %v2284_v34, %v2811_v61  ;;  %v1933_v58 = vadd.f32 %v4377_v29, %v1931_v32  ;;  %v3011_v49 = vadd.f32 %v4361_v27, %v4354_v53  ;;  %v4439_v10 = vpop.f32.mrb[43].mxu0 }
 0x21e   : > { %v2032_v5 = vsel %vm1178_vm2, %v1988_v24, 0.0  ;;  %2812 = vst [vmem:[%s4031_s30 + $0x54] sm:$0xf] %v2545_v20  ;;  %v2309_v37 = vor.u32 %v2307_v12, %v2306_v55  ;;  %v2311_v43 = vrot.slane %v2306_v55, 4  ;;  %v2287_v11 = vshrl.u32 %v2876_v6, 16  ;;  %v4442_v28 = vpop.f32.mrb[44].mxu1 }
 0x21f   : > { %v2033_v47 = vadd.f32 %v2032_v5, %v2031_v9  ;;  %v2290_v52 = vshll.u32 %v2876_v6, 16  ;;  %v1935_v7 = vadd.f32 %v1934_v16, %v1933_v58  ;;  %v1936_v29 = vsel %vm1178_vm2, %v1843_v50, 0.0  ;;  %v4445_v54 = vpop.f32.mrb[45].mxu1  ;;  %v2814_v16 = vld [vmem:[%s4031_s30 + $0x5c] sm:$0x1] }
 0x220   : > { %v1991_v63 = vmul.f32 %v1843_v50, %v1843_v50  ;;  %v2310_v53 = vsel %vm4211_vm11, %v2302_v39, %v2309_v37  ;;  %v2556_v27 = vsel %vm4220_vm12, %v2311_v43, %v2819_v51  ;;  %v2289_v22 = vrot.slane %v2287_v11, 7  ;;  %v4452_v9 = vpop.f32.mrb[46].mxu1  ;;  %v2821_v11 = vld [vmem:[%s4031_s30 + $0x6c] sm:$0xf] }
 0x221   : > { %v2035_v44 = vadd.f32 %v4388_v38, %v2033_v47  ;;  %2818 = vst.msk [vmem:[%s4031_s30 + $0x64] sm:$0xf] %vm622_vm5, %v2310_v53  ;;  %2820 = vst [vmem:[%s4031_s30 + $0x68] sm:$0x1] %v2556_v27  ;;  %v1937_v61 = vadd.f32 %v1936_v29, %v1935_v7  ;;  %v2879_v12 = vpack.c.bf16 %v1843_v50, %v1843_v50  ;;  %v1938_v39 = vsel %vm1178_vm2, %v1846_v48, 0.0  ;;  %v4460_v8 = vpop.f32.mrb[47].mxu1 }
 0x222   : > { %v2038_v59 = vsel %vm1178_vm2, %v1991_v63, 0.0  ;;  %v2292_v34 = vor.u32 %v2290_v52, %v2289_v22  ;;  %v2294_v32 = vrot.slane %v2289_v22, 4  ;;  %v1992_v24 = vmul.f32 %v1846_v48, %v1846_v48 }
 0x223   : > { %v2037_v38 = vadd.f32 %v2036_v26, %v2035_v44  ;;  %v2313_v55 = vshrl.u32 %v2879_v12, 16  ;;  %v1939_v6 = vadd.f32 %v1938_v39, %v1937_v61  ;;  %v2880_v20 = vpack.c.bf16 %v1846_v48, %v1846_v48 }
 0x224   : > { %v1722_v51 = vadd.f32 %v4143_v0, %v4158_v31  ;;  %v2293_v58 = vsel %vm4211_vm11, %v2285_v62, %v2292_v34  ;;  %v2549_v50 = vsel %vm4220_vm12, %v2294_v32, %v2814_v16  ;;  %v2040_v37 = vsel %vm1178_vm2, %v1992_v24, 0.0  ;;  %v2824_v16 = vld [vmem:[%s4031_s30 + $0x74] sm:$0x1] }
 0x225   : > { %v2039_v5 = vadd.f32 %v2038_v59, %v2037_v38  ;;  %2813 = vst.msk [vmem:[%s4031_s30 + $0x58] sm:$0xf] %vm622_vm5, %v2293_v58  ;;  %2815 = vst [vmem:[%s4031_s30 + $0x5c] sm:$0x1] %v2549_v50  ;;  %v2315_v26 = vrot.slane %v2313_v55, 7  ;;  %v2316_v43 = vshll.u32 %v2879_v12, 16  ;;  %v1690_v48 = vadd.f32 %v3011_v49, %v4158_v31 }
 0x226   : > { %v2321_v47 = vshrl.u32 %v2880_v20, 16  ;;  %v3014_v62 = vadd.f32 %v4379_v3, %v4367_v42  ;;  %v4477_v52 = vadd.f32 %v4405_v21, %v1722_v51  ;;  %v4481_v7 = vadd.f32 %v4409_v41, %v4171_v17  ;;  %v4483_v29 = vpop.f32.mrb[44].mxu0 }
 0x227   : > { %v2041_v0 = vadd.f32 %v2040_v37, %v2039_v5  ;;  %v2318_v63 = vor.u32 %v2316_v43, %v2315_v26  ;;  %v2324_v27 = vshll.u32 %v2880_v20, 16  ;;  %v1851_v49 = vadd.f32 %v4323_v60, %v1690_v48  ;;  %v4486_v44 = vpop.f32.mrb[45].mxu0  ;;  %v2826_v48 = vld [vmem:[%s4031_s30 + $0x78] sm:$0xf] }
 0x228   : > { %v2323_v53 = vrot.slane %v2321_v47, 7  ;;  %v2319_v22 = vrot.slane %v2315_v26, 4  ;;  %v1693_v42 = vadd.f32 %v3014_v62, %v4158_v31  ;;  %v2889_v3 = vpack.c.bf16 %v4477_v52, %v4477_v52  ;;  %v4492_v17 = vpop.f32.mrb[46].mxu0 }
 0x229   : > { %v2559_v21 = vsel %vm4199_vm10, %v2318_v63, %v2821_v11  ;;  %v1940_v60 = vsel %vm1178_vm2, %v1851_v49, 0.0  ;;  %v4497_v59 = vpop.f32.mrb[47].mxu0  ;;  %v1993_v39 = vmul.f32 %v1851_v49, %v1851_v49  ;;  %v2881_v34 = vpack.c.bf16 %v1851_v49, %v1851_v49  ;;  %v2846_v63 = vld [vmem:[%s4031_s30 + $0xa8] sm:$0xf] }
 0x22a   : > { %v2326_v41 = vor.u32 %v2324_v27, %v2323_v53  ;;  %v2328_v61 = vrot.slane %v2323_v53, 4  ;;  %2822 = vst [vmem:[%s4031_s30 + $0x6c] sm:$0xf] %v2559_v21  ;;  %v1941_v12 = vadd.f32 %v1940_v60, %v1939_v6  ;;  %v1854_v32 = vadd.f32 %v4335_v18, %v1693_v42 }
 0x22b   : > { %v2398_v55 = vshrl.u32 %v2889_v3, 16  ;;  %v2042_v20 = vsel %vm1178_vm2, %v1993_v39, 0.0  ;;  %v2330_v51 = vshrl.u32 %v2881_v34, 16  ;;  %v2333_v26 = vshll.u32 %v2881_v34, 16 }
 0x22c   : > { %v2327_v38 = vsel %vm4211_vm11, %v2319_v22, %v2326_v41  ;;  %v2563_v24 = vsel %vm4220_vm12, %v2328_v61, %v2824_v16  ;;  %v1942_v6 = vsel %vm1178_vm2, %v1854_v32, 0.0  ;;  %v2043_v58 = vadd.f32 %v2042_v20, %v2041_v0  ;;  %v2829_v41 = vld [vmem:[%s4031_s30 + $0x80] sm:$0x1] }
 0x22d   : > { %2823 = vst.msk [vmem:[%s4031_s30 + $0x70] sm:$0xf] %vm622_vm5, %v2327_v38  ;;  %2825 = vst [vmem:[%s4031_s30 + $0x74] sm:$0x1] %v2563_v24  ;;  %v4510_v50 = vadd.f32 %v1942_v6, %v1941_v12  ;;  %v1994_v18 = vmul.f32 %v1854_v32, %v1854_v32  ;;  %v2882_v5 = vpack.c.bf16 %v1854_v32, %v1854_v32  ;;  %v2332_v37 = vrot.slane %v2330_v51, 7 }
 0x22e   : > { %v2400_v43 = vrot.slane %v2398_v55, 7  ;;  %v2401_v47 = vshll.u32 %v2889_v3, 16  ;;  %v1717_v53 = vadd.f32 %v4141_v1, %v4158_v31  ;;  %v1725_v22 = vadd.f32 %v4145_v4, %v4158_v31 }
 0x22f   : > { %v2044_v11 = vsel %vm1178_vm2, %v1994_v18, 0.0  ;;  %v2338_v62 = vshrl.u32 %v2882_v5, 16  ;;  %v2335_v27 = vor.u32 %v2333_v26, %v2332_v37  ;;  %v2341_v42 = vshll.u32 %v2882_v5, 16 }
 0x230   : > { %v4517_v0 = vadd.f32 %v2044_v11, %v2043_v58  ;;  %v2403_v49 = vor.u32 %v2401_v47, %v2400_v43  ;;  %v2887_v3 = vpack.c.bf16 %v4481_v7, %v4481_v7  ;;  %v4529_v61 = vadd.f32 %v4412_v14, %v1725_v22 }
 0x231   : > { %v2340_v16 = vrot.slane %v2338_v62, 7  ;;  %v2566_v21 = vsel %vm4199_vm10, %v2335_v27, %v2826_v48  ;;  %v4532_v4 = vadd.f32 %v4417_v56, %v1717_v53  ;;  %v2336_v60 = vrot.slane %v2332_v37, 4  ;;  %v2841_v56 = vld [vmem:[%s4031_s30 + $0x9c] sm:$0xf] }
 0x232   : > { %v2594_v1 = vsel %vm4199_vm10, %v2403_v49, %v2846_v63  ;;  %2827 = vst [vmem:[%s4031_s30 + $0x78] sm:$0xf] %v2566_v21  ;;  %v2381_v34 = vshrl.u32 %v2887_v3, 16  ;;  %v2890_v32 = vpack.c.bf16 %v4529_v61, %v4529_v61  ;;  %v2384_v55 = vshll.u32 %v2887_v3, 16  ;;  %v2844_v49 = vld [vmem:[%s4031_s30 + $0xa4] sm:$0x1] }
 0x233   : > { %v2343_v12 = vor.u32 %v2341_v42, %v2340_v16  ;;  %v2345_v39 = vrot.slane %v2340_v16, 4  ;;  %2847 = vst [vmem:[%s4031_s30 + $0xa8] sm:$0xf] %v2594_v1  ;;  %v2888_v51 = vpack.c.bf16 %v4532_v4, %v4532_v4  ;;  %v1738_v6 = vadd.f32 %v4151_v23, %v4158_v31  ;;  %v2849_v23 = vld [vmem:[%s4031_s30 + $0xb0] sm:$0x1] }
 0x234   : > { %v2383_v14 = vrot.slane %v2381_v34, 7  ;;  %v2406_v20 = vshrl.u32 %v2890_v32, 16  ;;  %v1730_v58 = vadd.f32 %v4147_v25, %v4158_v31  ;;  %v2404_v18 = vrot.slane %v2400_v43, 4 }
 0x235   : > { %v2344_v38 = vsel %vm4211_vm11, %v2336_v60, %v2343_v12  ;;  %v2570_v24 = vsel %vm4220_vm12, %v2345_v39, %v2829_v41  ;;  %v2409_v37 = vshll.u32 %v2890_v32, 16  ;;  %v3017_v26 = vadd.f32 %v4426_v46, %v4423_v2 }
 0x236   : > { %2828 = vst.msk [vmem:[%s4031_s30 + $0x7c] sm:$0xf] %vm622_vm5, %v2344_v38  ;;  %2830 = vst [vmem:[%s4031_s30 + $0x80] sm:$0x1] %v2570_v24  ;;  %v2386_v5 = vor.u32 %v2384_v55, %v2383_v14  ;;  %v2408_v47 = vrot.slane %v2406_v20, 7  ;;  %v2389_v48 = vshrl.u32 %v2888_v51, 16  ;;  %v3020_v62 = vadd.f32 %v4439_v10, %v4430_v19 }
 0x237   : > { %v2392_v11 = vshll.u32 %v2888_v51, 16  ;;  %v1698_v53 = vadd.f32 %v3017_v26, %v4158_v31  ;;  %v4561_v25 = vadd.f32 %v4442_v28, %v1738_v6  ;;  %v4564_v2 = vadd.f32 %v4445_v54, %v1730_v58 }
 0x238   : > { %v2587_v63 = vsel %vm4199_vm10, %v2386_v5, %v2841_v56  ;;  %v2411_v46 = vor.u32 %v2409_v37, %v2408_v47  ;;  %v2413_v43 = vrot.slane %v2408_v47, 4  ;;  %v2391_v27 = vrot.slane %v2389_v48, 7 }
 0x239   : > { %2842 = vst [vmem:[%s4031_s30 + $0x9c] sm:$0xf] %v2587_v63  ;;  %v1701_v19 = vadd.f32 %v3020_v62, %v4158_v31  ;;  %v2387_v10 = vrot.slane %v2383_v14, 4  ;;  %v1859_v22 = vadd.f32 %v4363_v57, %v1698_v53  ;;  %v2893_v28 = vpack.c.bf16 %v4561_v25, %v4561_v25  ;;  %v2856_v62 = vld [vmem:[%s4031_s30 + $0xc0] sm:$0xf] }
 0x23a   : > { %v2412_v16 = vsel %vm4211_vm11, %v2404_v18, %v2411_v46  ;;  %v2598_v54 = vsel %vm4220_vm12, %v2413_v43, %v2849_v23  ;;  %v2394_v42 = vor.u32 %v2392_v11, %v2391_v27  ;;  %v2396_v3 = vrot.slane %v2391_v27, 4 }
 0x23b   : > { %2848 = vst.msk [vmem:[%s4031_s30 + $0xac] sm:$0xf] %vm622_vm5, %v2412_v16  ;;  %2850 = vst [vmem:[%s4031_s30 + $0xb0] sm:$0x1] %v2598_v54  ;;  %v1944_v21 = vsel %vm1178_vm2, %v1859_v22, 0.0  ;;  %v1995_v41 = vmul.f32 %v1859_v22, %v1859_v22  ;;  %v2883_v1 = vpack.c.bf16 %v1859_v22, %v1859_v22  ;;  %v1862_v57 = vadd.f32 %v4381_v36, %v1701_v19 }
 0x23c   : > { %v2395_v60 = vsel %vm4211_vm11, %v2387_v10, %v2394_v42  ;;  %v2591_v12 = vsel %vm4220_vm12, %v2396_v3, %v2844_v49  ;;  %v1945_v39 = vadd.f32 %v1944_v21, %v4510_v50  ;;  %v2432_v51 = vshrl.u32 %v2893_v28, 16  ;;  %v2831_v50 = vld [vmem:[%s4031_s30 + $0x84] sm:$0xf]  ;;  %v2851_v16 = vld [vmem:[%s4031_s30 + $0xb4] sm:$0xf] }
 0x23d   : > { %2843 = vst.msk [vmem:[%s4031_s30 + $0xa0] sm:$0xf] %vm622_vm5, %v2395_v60  ;;  %2845 = vst [vmem:[%s4031_s30 + $0xa4] sm:$0x1] %v2591_v12  ;;  %v2046_v34 = vsel %vm1178_vm2, %v1995_v41, 0.0  ;;  %v2347_v32 = vshrl.u32 %v2883_v1, 16  ;;  %v1996_v14 = vmul.f32 %v1862_v57, %v1862_v57  ;;  %v2884_v55 = vpack.c.bf16 %v1862_v57, %v1862_v57 }
 0x23e   : > { %v1946_v38 = vsel %vm1178_vm2, %v1862_v57, 0.0  ;;  %v2047_v24 = vadd.f32 %v2046_v34, %v4517_v0  ;;  %v2350_v20 = vshll.u32 %v2883_v1, 16  ;;  %v1741_v18 = vadd.f32 %v4153_v30, %v4158_v31 }
 0x23f   : > { %v4592_v36 = vadd.f32 %v1946_v38, %v1945_v39  ;;  %v2349_v56 = vrot.slane %v2347_v32, 7  ;;  %v2048_v6 = vsel %vm1178_vm2, %v1996_v14, 0.0  ;;  %v2355_v58 = vshrl.u32 %v2884_v55, 16  ;;  %v2859_v39 = vld [vmem:[%s4031_s30 + $0xc8] sm:$0x1] }
 0x240   : > { %v1733_v0 = vadd.f32 %v4149_v33, %v4158_v31  ;;  %v4600_v37 = vadd.f32 %v2048_v6, %v2047_v24  ;;  %v2434_v26 = vrot.slane %v2432_v51, 7  ;;  %v2435_v47 = vshll.u32 %v2893_v28, 16  ;;  %v2834_v33 = vld [vmem:[%s4031_s30 + $0x8c] sm:$0x1]  ;;  %v3154_v32 = vld [vmem:[%s4730_s4] ss:$0 sm:$0xff] }
 0x241   : > { %v2352_v5 = vor.u32 %v2350_v20, %v2349_v56  ;;  %v2357_v48 = vrot.slane %v2355_v58, 7  ;;  %v2358_v11 = vshll.u32 %v2884_v55, 16  ;;  %v2891_v63 = vpack.c.bf16 %v4564_v2, %v4564_v2  ;;  %v2854_v6 = vld [vmem:[%s4031_s30 + $0xbc] sm:$0x1] }
 0x242   : > { %v4606_v23 = vadd.f32 %v4452_v9, %v1741_v18  ;;  %v2437_v31 = vor.u32 %v2435_v47, %v2434_v26  ;;  %v4612_v53 = vadd.f32 %v4460_v8, %v1733_v0  ;;  %v2353_v46 = vrot.slane %v2349_v56, 4 }
 0x243   : > { %v2573_v30 = vsel %vm4199_vm10, %v2352_v5, %v2831_v50  ;;  %v2360_v43 = vor.u32 %v2358_v11, %v2357_v48  ;;  %v2362_v27 = vrot.slane %v2357_v48, 4  ;;  %v2415_v19 = vshrl.u32 %v2891_v63, 16 }
 0x244   : > { %2832 = vst [vmem:[%s4031_s30 + $0x84] sm:$0xf] %v2573_v30  ;;  %v2608_v9 = vsel %vm4199_vm10, %v2437_v31, %v2856_v62  ;;  %v2894_v10 = vpack.c.bf16 %v4606_v23, %v4606_v23  ;;  %v2418_v28 = vshll.u32 %v2891_v63, 16  ;;  %v2892_v3 = vpack.c.bf16 %v4612_v53, %v4612_v53 }
 0x245   : > { %v2361_v49 = vsel %vm4211_vm11, %v2353_v46, %v2360_v43  ;;  %v2577_v22 = vsel %vm4220_vm12, %v2362_v27, %v2834_v33  ;;  %2857 = vst [vmem:[%s4031_s30 + $0xc0] sm:$0xf] %v2608_v9  ;;  %v2417_v8 = vrot.slane %v2415_v19, 7  ;;  %v3023_v21 = vadd.f32 %v4486_v44, %v4483_v29 }
 0x246   : > { %2833 = vst.msk [vmem:[%s4031_s30 + $0x88] sm:$0xf] %vm622_vm5, %v2361_v49  ;;  %2835 = vst [vmem:[%s4031_s30 + $0x8c] sm:$0x1] %v2577_v22  ;;  %v2440_v54 = vshrl.u32 %v2894_v10, 16  ;;  %v2443_v1 = vshll.u32 %v2894_v10, 16  ;;  %v3026_v57 = vadd.f32 %v4497_v59, %v4492_v17  ;;  %v1999_v24 = vmul.f32 %v4481_v7, %v4481_v7 }
 0x247   : > { %v2420_v42 = vor.u32 %v2418_v28, %v2417_v8  ;;  %v4636_v60 = vsel %vm1178_vm2, %v4477_v52, 0.0  ;;  %v2423_v34 = vshrl.u32 %v2892_v3, 16  ;;  %v1706_v29 = vadd.f32 %v3154_v32, %v3023_v21  ;;  %v2836_v28 = vld [vmem:[%s4031_s30 + $0x90] sm:$0xf] }
 0x248   : > { %v2442_v41 = vrot.slane %v2440_v54, 7  ;;  %v2438_v44 = vrot.slane %v2434_v26, 4  ;;  %v1709_v38 = vadd.f32 %v3154_v32, %v3026_v57  ;;  %v2426_v55 = vshll.u32 %v2892_v3, 16 }
 0x249   : > { %v2601_v12 = vsel %vm4199_vm10, %v2420_v42, %v2851_v16  ;;  %v2425_v14 = vrot.slane %v2423_v34, 7  ;;  %v1867_v56 = vadd.f32 %v4356_v15, %v1706_v29  ;;  %v2421_v20 = vrot.slane %v2417_v8, 4 }
 0x24a   : > { %2852 = vst [vmem:[%s4031_s30 + $0xb4] sm:$0xf] %v2601_v12  ;;  %v2445_v17 = vor.u32 %v2443_v1, %v2442_v41  ;;  %v2447_v59 = vrot.slane %v2442_v41, 4  ;;  %v1870_v58 = vadd.f32 %v4369_v35, %v1709_v38  ;;  %v2001_v33 = vmul.f32 %v4477_v52, %v4477_v52  ;;  %v2839_v41 = vld [vmem:[%s4031_s30 + $0x98] sm:$0x1] }
 0x24b   : > { %v2428_v18 = vor.u32 %v2426_v55, %v2425_v14  ;;  %v2430_v0 = vrot.slane %v2425_v14, 4  ;;  %v1948_v5 = vsel %vm1178_vm2, %v1867_v56, 0.0  ;;  %v1997_v15 = vmul.f32 %v1867_v56, %v1867_v56 }
 0x24c   : > { %v2446_v51 = vsel %vm4211_vm11, %v2438_v44, %v2445_v17  ;;  %v2612_v50 = vsel %vm4220_vm12, %v2447_v59, %v2859_v39  ;;  %v1949_v26 = vadd.f32 %v1948_v5, %v4592_v36  ;;  %v2885_v47 = vpack.c.bf16 %v1867_v56, %v1867_v56 }
 0x24d   : > { %2858 = vst.msk [vmem:[%s4031_s30 + $0xc4] sm:$0xf] %vm622_vm5, %v2446_v51  ;;  %2860 = vst [vmem:[%s4031_s30 + $0xc8] sm:$0x1] %v2612_v50  ;;  %v1950_v48 = vsel %vm1178_vm2, %v1870_v58, 0.0  ;;  %v1998_v11 = vmul.f32 %v1870_v58, %v1870_v58  ;;  %v2429_v62 = vsel %vm4211_vm11, %v2421_v20, %v2428_v18  ;;  %v2605_v35 = vsel %vm4220_vm12, %v2430_v0, %v2854_v6 }
 0x24e   : > { %v2050_v63 = vsel %vm1178_vm2, %v1997_v15, 0.0  ;;  %v2886_v30 = vpack.c.bf16 %v1870_v58, %v1870_v58  ;;  %2853 = vst.msk [vmem:[%s4031_s30 + $0xb8] sm:$0xf] %vm622_vm5, %v2429_v62  ;;  %2855 = vst [vmem:[%s4031_s30 + $0xbc] sm:$0x1] %v2605_v35  ;;  %v2364_v31 = vshrl.u32 %v2885_v47, 16  ;;  %v1951_v46 = vadd.f32 %v1950_v48, %v1949_v26 }
 0x24f   : > { %v2051_v36 = vadd.f32 %v2050_v63, %v4600_v37  ;;  %v1952_v43 = vsel %vm1178_vm2, %v4481_v7, 0.0  ;;  %v2000_v27 = vmul.f32 %v4532_v4, %v4532_v4  ;;  %v2052_v19 = vsel %vm1178_vm2, %v1998_v11, 0.0 }
 0x250   : > { %v2372_v9 = vshrl.u32 %v2886_v30, 16  ;;  %v2366_v10 = vrot.slane %v2364_v31, 7  ;;  %v2367_v52 = vshll.u32 %v2885_v47, 16  ;;  %v1953_v49 = vadd.f32 %v1952_v43, %v1951_v46 }
 0x251   : > { %v2053_v22 = vadd.f32 %v2052_v19, %v2051_v36  ;;  %v2054_v8 = vsel %vm1178_vm2, %v1999_v24, 0.0  ;;  %v1954_v37 = vsel %vm1178_vm2, %v4532_v4, 0.0  ;;  %v2375_v54 = vshll.u32 %v2886_v30, 16 }
 0x252   : > { %v2374_v16 = vrot.slane %v2372_v9, 7  ;;  %v2002_v7 = vmul.f32 %v4529_v61, %v4529_v61  ;;  %v2369_v42 = vor.u32 %v2367_v52, %v2366_v10  ;;  %v1955_v3 = vadd.f32 %v1954_v37, %v1953_v49 }
 0x253   : > { %v2055_v21 = vadd.f32 %v2054_v8, %v2053_v22  ;;  %v2056_v1 = vsel %vm1178_vm2, %v2000_v27, 0.0  ;;  %v2370_v57 = vrot.slane %v2366_v10, 4  ;;  %v2058_v4 = vsel %vm1178_vm2, %v2001_v33, 0.0 }
 0x254   : > { %v2377_v12 = vor.u32 %v2375_v54, %v2374_v16  ;;  %v2379_v39 = vrot.slane %v2374_v16, 4  ;;  %v2580_v34 = vsel %vm4199_vm10, %v2369_v42, %v2836_v28  ;;  %v1957_v32 = vadd.f32 %v4636_v60, %v1955_v3 }
 0x255   : > { %v2057_v29 = vadd.f32 %v2056_v1, %v2055_v21  ;;  %v1958_v44 = vsel %vm1178_vm2, %v4529_v61, 0.0  ;;  %v2003_v17 = vmul.f32 %v4564_v2, %v4564_v2  ;;  %2837 = vst [vmem:[%s4031_s30 + $0x90] sm:$0xf] %v2580_v34  ;;  %v2060_v13 = vsel %vm1178_vm2, %v2002_v7, 0.0 }
 0x256   : > { %v2378_v59 = vsel %vm4211_vm11, %v2370_v57, %v2377_v12  ;;  %v2584_v38 = vsel %vm4220_vm12, %v2379_v39, %v2839_v41  ;;  %v1959_v24 = vadd.f32 %v1958_v44, %v1957_v32  ;;  %v1960_v61 = vsel %vm1178_vm2, %v4564_v2, 0.0 }
 0x257   : > { %v2059_v14 = vadd.f32 %v2058_v4, %v2057_v29  ;;  %2838 = vst.msk [vmem:[%s4031_s30 + $0x94] sm:$0xf] %vm622_vm5, %v2378_v59  ;;  %2840 = vst [vmem:[%s4031_s30 + $0x98] sm:$0x1] %v2584_v38  ;;  %v2004_v60 = vmul.f32 %v4612_v53, %v4612_v53  ;;  %v2005_v40 = vmul.f32 %v4561_v25, %v4561_v25  ;;  %v2062_v45 = vsel %vm1178_vm2, %v2003_v17, 0.0 }
 0x258   : > { %v1961_v55 = vadd.f32 %v1960_v61, %v1959_v24  ;;  %v1962_v20 = vsel %vm1178_vm2, %v4612_v53, 0.0  ;;  %v1964_v6 = vsel %vm1178_vm2, %v4561_v25, 0.0  ;;  %v2006_v2 = vmul.f32 %v4606_v23, %v4606_v23 }
 0x259   : > { %v2061_v56 = vadd.f32 %v2060_v13, %v2059_v14  ;;  %v2064_v58 = vsel %vm1178_vm2, %v2004_v60, 0.0  ;;  %v2066_v5 = vsel %vm1178_vm2, %v2005_v40, 0.0  ;;  %v1966_v15 = vsel %vm1178_vm2, %v4606_v23, 0.0 }
 0x25a   : > { %v1963_v51 = vadd.f32 %v1962_v20, %v1961_v55  ;;  %v2068_v47 = vsel %vm1178_vm2, %v2006_v2, 0.0 }
 0x25b   : > { %v2063_v50 = vadd.f32 %v2062_v45, %v2061_v56 }
 0x25c   : > { %v1965_v18 = vadd.f32 %v1964_v6, %v1963_v51 }
 0x25d   : > { %v2065_v0 = vadd.f32 %v2064_v58, %v2063_v50 }
 0x25e   : > { %v1967_v26 = vadd.f32 %v1966_v15, %v1965_v18 }
 0x25f   : > { %v2067_v53 = vadd.f32 %v2066_v5, %v2065_v0 }
 0x260   : > { %v1968_v48 = vrot.slane %v1967_v26, 4 }
 0x261   : > { %v2069_v11 = vadd.f32 %v2068_v47, %v2067_v53 }
 0x262   : > { %v1969_v25 = vadd.f32 %v1968_v48, %v1967_v26 }
 0x263   : > { %v2070_v62 = vrot.slane %v2069_v11, 4 }
 0x264   : > { %v1970_v35 = vrot.slane %v1969_v25, 2 }
 0x265   : > { %v2071_v63 = vadd.f32 %v2070_v62, %v2069_v11 }
 0x266   : > { %v1971_v30 = vadd.f32 %v1970_v35, %v1969_v25 }
 0x267   : > { %v2072_v33 = vrot.slane %v2071_v63, 2 }
 0x268   : > { %v1972_v36 = vrot.slane %v1971_v30, 1 }
 0x269   : > { %v2073_v31 = vadd.f32 %v2072_v33, %v2071_v63 }
 0x26a   : > { %v1973_v23 = vadd.f32 %v1972_v36, %v1971_v30 }
 0x26b   : > { %v2074_v46 = vrot.slane %v2073_v31, 1 }
 0x26d   : > { %v2075_v43 = vadd.f32 %v2074_v46, %v2073_v31 }
 0x26f   : > { %v2615_v27 = vsel %vm2614_vm13, %v1973_v23, %v2075_v43 }
 0x270   : > { %2617 = vst.msk [vmem:[%s262_s18] sm:$0x3] %vm2616_vm14, %v2615_v27 }
 0x271 PF: > { %s17_s21 = sadd.s32 1, %s3161_s21  }
 0x272   : > { %p14_p4 = scmp.ge.s32.totalorder %s17_s21, 4  }
 0x274   :  { %16 = sbr.rel (!%p14_p4) target bundleno = 1 (0x1), region = 83 }

</bundles_post_ra>
